<compile_context>
chip_gen: v6e
topology: v6e:2x2x1
jax: 0.10.0
libtpu: 0.0.40
codegen_flags: <defaults>
</compile_context>

<pallas_src>
import numpy as np
import jax
import jax.numpy as jnp
from jax.experimental import pallas as pl
from jax.experimental.pallas import tpu as pltpu

# ----------------------------- small synthetic config -----------------------------
IMAGE_SIZE = 16          # image_size
PATCH = 2                # patch_size
EMB = 32                 # emb_dim
NUM_HEAD = 4             # num_head
NUM_LAYER = 2            # num_layer (small for the demo)
NUM_CLASSES = 10
BATCH = 2

T = (IMAGE_SIZE // PATCH) ** 2       # number of patch tokens = 64
T1 = T + 1                           # + cls token = 65
P = 3 * PATCH * PATCH                # flattened patch length = 12
HD = EMB // NUM_HEAD                 # head dim = 8
MLP = 4 * EMB                        # mlp hidden = 128
EPS = 1e-5                           # nn.LayerNorm default eps
SCALE = float(1.0 / np.sqrt(HD))
PAD_CLASSES = 128                    # lane-dense logits width; sliced to NUM_CLASSES outside


# ----------------------------- in-kernel helpers -----------------------------
def _layernorm(x, gamma, beta):
    mu = jnp.mean(x, axis=-1, keepdims=True)
    var = jnp.mean((x - mu) ** 2, axis=-1, keepdims=True)
    return (x - mu) * jax.lax.rsqrt(var + EPS) * gamma + beta


def _gelu(x):
    # TODO(synk): PyTorch nn.GELU is exact (erf); tanh approximation used since erf
    # has no guaranteed Mosaic lowering (~1e-3 drift).
    c = np.float32(np.sqrt(2.0 / np.pi))
    return 0.5 * x * (1.0 + jnp.tanh(c * (x + 0.044715 * x * x * x)))


def _bf16_dot(a, w_bf16, bias_f32):
    # f32 activations cast to bf16 only at the MXU input; f32 accumulation.
    return jnp.dot(a.astype(jnp.bfloat16), w_bf16,
                   preferred_element_type=jnp.float32) + bias_f32


def _attention(qkv):
    # qkv: (T1, 3*EMB) f32, columns ordered [q(h0..) | k(h0..) | v(h0..)].
    # Head-batched attention: one QK^T, one softmax, one PV for all heads.
    def heads(base):
        return jnp.stack(
            [qkv[:, base + h * HD: base + (h + 1) * HD] for h in range(NUM_HEAD)],
            axis=0)                                                    # (H, T1, HD)

    q, k, v = heads(0), heads(EMB), heads(2 * EMB)
    s = jax.lax.dot_general(q, k, (((2,), (2,)), ((0,), (0,))),
                            preferred_element_type=jnp.float32) * SCALE  # (H, T1, T1)
    s = s - jnp.max(s, axis=-1, keepdims=True)
    p = jnp.exp(s)
    p = p * pl.reciprocal(jnp.sum(p, axis=-1, keepdims=True), approx=True)
    o = jax.lax.dot_general(p, v, (((2,), (1,)), ((0,), (0,))),
                            preferred_element_type=jnp.float32)          # (H, T1, HD)
    return jnp.concatenate([o[h] for h in range(NUM_HEAD)], axis=-1)     # (T1, EMB)


# ----------------------------- fused forward kernel -----------------------------
def _make_fused_kernel(bc):
    m_rows = bc * T1

    def kernel(x_ref, pw_ref, pb_ref, pos_ref, cls_ref,
               ln1_ref, qkvw_ref, qkvb_ref, projw_ref, projb_ref,
               ln2_ref, fc1w_ref, fc1b_ref, fc2w_ref, fc2b_ref,
               lnf_ref, hw_ref, hb_ref, o_ref, act_ref):
        l = pl.program_id(1)

        # ---- patch embedding + pos embed + cls token (first layer step only) ----
        @pl.when(l == 0)
        def _():
            xp = x_ref[...].reshape(bc * T, P)
            emb = jnp.dot(xp.astype(jnp.bfloat16), pw_ref[...],
                          preferred_element_type=jnp.float32) + pb_ref[...]
            emb = (emb.reshape(bc, T, EMB) + pos_ref[...]).reshape(bc * T, EMB)
            parts = []
            for b in range(bc):
                parts.append(emb[b * T:(b + 1) * T, :])   # patch tokens of sample b
                parts.append(cls_ref[...])                # cls token at end of sample b
            act_ref[...] = jnp.concatenate(parts, axis=0)  # (bc*T1, EMB)

        # ---- transformer block l, batch flattened into M = bc*T1 rows ----
        x = act_ref[...]
        h = _layernorm(x, ln1_ref[0, 0:1, :], ln1_ref[0, 1:2, :])
        qkv = _bf16_dot(h, qkvw_ref[0], qkvb_ref[0])                     # (M, 3*EMB)
        att = [_attention(qkv[b * T1:(b + 1) * T1, :]) for b in range(bc)]
        att = att[0] if bc == 1 else jnp.concatenate(att, axis=0)        # (M, EMB)
        att = _bf16_dot(att, projw_ref[0], projb_ref[0])
        x = x + att

        h2 = _layernorm(x, ln2_ref[0, 0:1, :], ln2_ref[0, 1:2, :])
        h2 = _gelu(_bf16_dot(h2, fc1w_ref[0], fc1b_ref[0]))
        h2 = _bf16_dot(h2, fc2w_ref[0], fc2b_ref[0])
        x = x + h2
        act_ref[...] = x

        # ---- final LayerNorm + classification head (last layer step only) ----
        @pl.when(l == pl.num_programs(1) - 1)
        def _():
            feats = [x[b * T1 + T: b * T1 + T1, :] for b in range(bc)]   # cls rows
            feat = feats[0] if bc == 1 else jnp.concatenate(feats, axis=0)  # (bc, EMB)
            hf = _layernorm(feat, lnf_ref[0:1, :], lnf_ref[1:2, :])
            o_ref[0] = _bf16_dot(hf, hw_ref[...], hb_ref[...])           # (bc, 128)

    return kernel


# ----------------------------- glue -----------------------------
def extract_patches(img):
    # img: (B, 3, H, W) NCHW -> (B, T, 3*p*p); feature order (c, kh, kw) matches
    # the flattened Conv2d weight, token order (h, w) matches 'b c h w -> (h w) b c'.
    B, C, H, W = img.shape
    x = img.reshape(B, C, H // PATCH, PATCH, W // PATCH, PATCH)
    x = x.transpose(0, 2, 4, 1, 3, 5)
    return x.reshape(B, (H // PATCH) * (W // PATCH), C * PATCH * PATCH)


def vit_classifier_forward(img, params):
    B = img.shape[0]
    nb = 2 if (B % 2 == 0 and B >= 2) else 1   # parallel batch-chunk axis (v7x: 2 TCs)
    bc = B // nb
    x_patches = extract_patches(img)                                   # (B, T, P) f32

    rep = lambda shape: pl.BlockSpec(shape, lambda i, l: (0, 0))       # resident 2-D const
    per_layer = lambda shape: pl.BlockSpec((1,) + shape, lambda i, l: (l, 0, 0))

    logits_pad = pl.pallas_call(
        _make_fused_kernel(bc),
        out_shape=jax.ShapeDtypeStruct((nb, bc, PAD_CLASSES), jnp.float32),
        grid=(nb, NUM_LAYER),
        in_specs=[
            pl.BlockSpec((bc, T, P), lambda i, l: (i, 0, 0)),          # patches (per chunk)
            rep((P, EMB)), rep((1, EMB)), rep((T, EMB)), rep((1, EMB)),
            per_layer((2, EMB)),                                       # ln1 (gamma, beta)
            per_layer((EMB, 3 * EMB)), per_layer((1, 3 * EMB)),        # qkv
            per_layer((EMB, EMB)), per_layer((1, EMB)),                # proj
            per_layer((2, EMB)),                                       # ln2
            per_layer((EMB, MLP)), per_layer((1, MLP)),                # fc1
            per_layer((MLP, EMB)), per_layer((1, EMB)),                # fc2
            rep((2, EMB)),                                             # final LN
            rep((EMB, PAD_CLASSES)), rep((1, PAD_CLASSES)),            # head (lane-padded)
        ],
        out_specs=pl.BlockSpec((1, bc, PAD_CLASSES), lambda i, l: (i, 0, 0)),
        scratch_shapes=[pltpu.VMEM((bc * T1, EMB), jnp.float32)],      # resident activations
        compiler_params=pltpu.CompilerParams(
            dimension_semantics=("parallel", "arbitrary")),
    )(x_patches,
      params['patch_w'], params['patch_b'], params['pos'], params['cls'],
      params['ln1'], params['qkv_w'], params['qkv_b'],
      params['proj_w'], params['proj_b'],
      params['ln2'], params['fc1_w'], params['fc1_b'],
      params['fc2_w'], params['fc2_b'],
      params['ln_f'], params['head_w'], params['head_b'])

    return logits_pad.reshape(B, PAD_CLASSES)[:, :NUM_CLASSES]


# ----------------------------- deterministic parameter init -----------------------------
def init_params(key):
    keys = jax.random.split(key, 6 + NUM_LAYER)
    nrm = lambda k, shape, std: jax.random.normal(k, shape, jnp.float32) * std
    ln_id = jnp.stack([jnp.ones(EMB, jnp.float32), jnp.zeros(EMB, jnp.float32)])  # (2, C)

    head_w = jnp.zeros((EMB, PAD_CLASSES), jnp.float32)
    head_w = head_w.at[:, :NUM_CLASSES].set(nrm(keys[4], (EMB, NUM_CLASSES), 0.1))

    params = {
        # Conv2d(3, EMB, PATCH, PATCH) weight flattened to (c*kh*kw, EMB), bf16 for the MXU
        'patch_w': nrm(keys[0], (P, EMB), 0.1).astype(jnp.bfloat16),
        'patch_b': nrm(keys[1], (1, EMB), 0.1),
        'pos': nrm(keys[2], (T, EMB), 0.02),          # pos_embedding (T,1,C) -> (T,C)
        'cls': nrm(keys[3], (1, EMB), 0.02),          # cls_token (1,1,C) -> (1,C)
        'ln_f': ln_id,
        'head_w': head_w.astype(jnp.bfloat16),        # lane-padded to 128 cols
        'head_b': jnp.zeros((1, PAD_CLASSES), jnp.float32),
    }

    ln1, qkv_w, qkv_b, proj_w, proj_b = [], [], [], [], []
    ln2, fc1_w, fc1_b, fc2_w, fc2_b = [], [], [], [], []
    for l in range(NUM_LAYER):
        bk = jax.random.split(keys[6 + l], 4)
        ln1.append(ln_id)
        qkv_w.append(nrm(bk[0], (EMB, 3 * EMB), 0.05))
        qkv_b.append(jnp.zeros((1, 3 * EMB), jnp.float32))
        proj_w.append(nrm(bk[1], (EMB, EMB), 0.05))
        proj_b.append(jnp.zeros((1, EMB), jnp.float32))
        ln2.append(ln_id)
        fc1_w.append(nrm(bk[2], (EMB, MLP), 0.05))
        fc1_b.append(jnp.zeros((1, MLP), jnp.float32))
        fc2_w.append(nrm(bk[3], (MLP, EMB), 0.05))
        fc2_b.append(jnp.zeros((1, EMB), jnp.float32))

    # Stack per-layer params into (L, ...) arrays; big weights in bf16.
    params.update(
        ln1=jnp.stack(ln1),
        qkv_w=jnp.stack(qkv_w).astype(jnp.bfloat16), qkv_b=jnp.stack(qkv_b),
        proj_w=jnp.stack(proj_w).astype(jnp.bfloat16), proj_b=jnp.stack(proj_b),
        ln2=jnp.stack(ln2),
        fc1_w=jnp.stack(fc1_w).astype(jnp.bfloat16), fc1_b=jnp.stack(fc1_b),
        fc2_w=jnp.stack(fc2_w).astype(jnp.bfloat16), fc2_b=jnp.stack(fc2_b),
    )
    return params


# ----------------------------- demo -----------------------------
if __name__ == "__main__":
    key = jax.random.PRNGKey(0)
    k_img, k_par = jax.random.split(key)
    img = jax.random.normal(k_img, (BATCH, 3, IMAGE_SIZE, IMAGE_SIZE), jnp.float32)
    params = init_params(k_par)

    fwd = jax.jit(vit_classifier_forward)
    logits = jax.block_until_ready(fwd(img, params))
    assert logits.shape == (BATCH, NUM_CLASSES), logits.shape
    assert bool(jnp.all(jnp.isfinite(logits)))
    print("KERNEL_OK")
</pallas_src>

<mosaic_0001>
module attributes {stable_mosaic.version = 11 : i64} {
  func.func @kernel(%arg0: i32, %arg1: i32, %arg2: memref<1x64x12xf32, #tpu.memory_space<vmem>>, %arg3: memref<12x32xbf16, #tpu.memory_space<vmem>>, %arg4: memref<1x32xf32, #tpu.memory_space<vmem>>, %arg5: memref<64x32xf32, #tpu.memory_space<vmem>>, %arg6: memref<1x32xf32, #tpu.memory_space<vmem>>, %arg7: memref<1x2x32xf32, #tpu.memory_space<vmem>>, %arg8: memref<1x32x96xbf16, #tpu.memory_space<vmem>>, %arg9: memref<1x1x96xf32, #tpu.memory_space<vmem>>, %arg10: memref<1x32x32xbf16, #tpu.memory_space<vmem>>, %arg11: memref<1x1x32xf32, #tpu.memory_space<vmem>>, %arg12: memref<1x2x32xf32, #tpu.memory_space<vmem>>, %arg13: memref<1x32x128xbf16, #tpu.memory_space<vmem>>, %arg14: memref<1x1x128xf32, #tpu.memory_space<vmem>>, %arg15: memref<1x128x32xbf16, #tpu.memory_space<vmem>>, %arg16: memref<1x1x32xf32, #tpu.memory_space<vmem>>, %arg17: memref<2x32xf32, #tpu.memory_space<vmem>>, %arg18: memref<32x128xbf16, #tpu.memory_space<vmem>>, %arg19: memref<1x128xf32, #tpu.memory_space<vmem>>, %arg20: memref<1x1x128xf32, #tpu.memory_space<vmem>>, %arg21: memref<65x32xf32, #tpu.memory_space<vmem>>) attributes {dimension_semantics = [#tpu.dimension_semantics<parallel>, #tpu.dimension_semantics<arbitrary>], iteration_bounds = array<i64: 2, 2>, scalar_prefetch = 0 : i64, scratch_operands = 1 : i64, tpu.core_type = #tpu.core_type<tc>, window_params = [{transform_indices = @transform_0, window_bounds = array<i64: 1, 64, 12>}, {pipeline_mode = #tpu.pipeline_mode<synchronous>, transform_indices = @transform_1, window_bounds = array<i64: 12, 32>}, {pipeline_mode = #tpu.pipeline_mode<synchronous>, transform_indices = @transform_2, window_bounds = array<i64: 1, 32>}, {pipeline_mode = #tpu.pipeline_mode<synchronous>, transform_indices = @transform_3, window_bounds = array<i64: 64, 32>}, {pipeline_mode = #tpu.pipeline_mode<synchronous>, transform_indices = @transform_4, window_bounds = array<i64: 1, 32>}, {transform_indices = @transform_5, window_bounds = array<i64: 1, 2, 32>}, {transform_indices = @transform_6, window_bounds = array<i64: 1, 32, 96>}, {transform_indices = @transform_7, window_bounds = array<i64: 1, 1, 96>}, {transform_indices = @transform_8, window_bounds = array<i64: 1, 32, 32>}, {transform_indices = @transform_9, window_bounds = array<i64: 1, 1, 32>}, {transform_indices = @transform_10, window_bounds = array<i64: 1, 2, 32>}, {transform_indices = @transform_11, window_bounds = array<i64: 1, 32, 128>}, {transform_indices = @transform_12, window_bounds = array<i64: 1, 1, 128>}, {transform_indices = @transform_13, window_bounds = array<i64: 1, 128, 32>}, {transform_indices = @transform_14, window_bounds = array<i64: 1, 1, 32>}, {pipeline_mode = #tpu.pipeline_mode<synchronous>, transform_indices = @transform_15, window_bounds = array<i64: 2, 32>}, {pipeline_mode = #tpu.pipeline_mode<synchronous>, transform_indices = @transform_16, window_bounds = array<i64: 32, 128>}, {pipeline_mode = #tpu.pipeline_mode<synchronous>, transform_indices = @transform_17, window_bounds = array<i64: 1, 128>}, {transform_indices = @transform_18, window_bounds = array<i64: 1, 1, 128>}]} {
    %c0_i32 = arith.constant 0 : i32
    %0 = arith.cmpi eq, %arg1, %c0_i32 : i32
    %1 = arith.extui %0 : i1 to i32
    %c0_i32_0 = arith.constant 0 : i32
    %2 = arith.cmpi ne, %1, %c0_i32_0 : i32
    scf.if %2 {
      %c0_62 = arith.constant 0 : index
      %c0_63 = arith.constant 0 : index
      %c0_64 = arith.constant 0 : index
      %157 = vector.load %arg2[%c0_62, %c0_63, %c0_64] : memref<1x64x12xf32, #tpu.memory_space<vmem>>, vector<1x64x12xf32>
      %158 = vector.shape_cast %157 : vector<1x64x12xf32> to vector<64x12xf32>
      %159 = arith.truncf %158 : vector<64x12xf32> to vector<64x12xbf16>
      %c0_65 = arith.constant 0 : index
      %c0_66 = arith.constant 0 : index
      %160 = vector.load %arg3[%c0_65, %c0_66] : memref<12x32xbf16, #tpu.memory_space<vmem>>, vector<12x32xbf16>
      %cst_67 = arith.constant dense<0.000000e+00> : vector<64x32xf32>
      %161 = tpu.matmul %159, %160, %cst_67 {dimension_numbers = #tpu.dot_dimension_numbers<[1], [0], [0], [1], [0, 0, 1, 1], [], []>} : vector<64x12xbf16>, vector<12x32xbf16>, vector<64x32xf32> -> vector<64x32xf32>
      %c0_68 = arith.constant 0 : index
      %c0_69 = arith.constant 0 : index
      %162 = vector.load %arg4[%c0_68, %c0_69] : memref<1x32xf32, #tpu.memory_space<vmem>>, vector<1x32xf32>
      %163 = vector.broadcast %162 : vector<1x32xf32> to vector<64x32xf32>
      %164 = arith.addf %161, %163 : vector<64x32xf32>
      %165 = vector.shape_cast %164 : vector<64x32xf32> to vector<1x64x32xf32>
      %c0_70 = arith.constant 0 : index
      %c0_71 = arith.constant 0 : index
      %166 = vector.load %arg5[%c0_70, %c0_71] : memref<64x32xf32, #tpu.memory_space<vmem>>, vector<64x32xf32>
      %167 = vector.shape_cast %166 : vector<64x32xf32> to vector<1x64x32xf32>
      %168 = arith.addf %165, %167 : vector<1x64x32xf32>
      %169 = vector.shape_cast %168 : vector<1x64x32xf32> to vector<64x32xf32>
      %c0_72 = arith.constant 0 : index
      %c0_73 = arith.constant 0 : index
      %170 = vector.load %arg6[%c0_72, %c0_73] : memref<1x32xf32, #tpu.memory_space<vmem>>, vector<1x32xf32>
      %171 = tpu.concatenate %169, %170 in 0 : vector<64x32xf32>, vector<1x32xf32> -> vector<65x32xf32>
      %c0_74 = arith.constant 0 : index
      %c0_75 = arith.constant 0 : index
      %172 = vector.load %arg21[%c0_74, %c0_75] : memref<65x32xf32, #tpu.memory_space<vmem>>, vector<65x32xf32>
      tpu.vector_store %arg21[%c0_74, %c0_75], %171 {strides = array<i32>} : memref<65x32xf32, #tpu.memory_space<vmem>>, vector<65x32xf32>,
    } else {
    }
    %c0 = arith.constant 0 : index
    %c0_1 = arith.constant 0 : index
    %3 = vector.load %arg21[%c0, %c0_1] : memref<65x32xf32, #tpu.memory_space<vmem>>, vector<65x32xf32>
    %c0_2 = arith.constant 0 : index
    %c0_3 = arith.constant 0 : index
    %c0_4 = arith.constant 0 : index
    %4 = vector.load %arg7[%c0_2, %c0_3, %c0_4] : memref<1x2x32xf32, #tpu.memory_space<vmem>>, vector<1x1x32xf32>
    %5 = vector.shape_cast %4 : vector<1x1x32xf32> to vector<1x32xf32>
    %c0_5 = arith.constant 0 : index
    %c1 = arith.constant 1 : index
    %c0_6 = arith.constant 0 : index
    %6 = vector.load %arg7[%c0_5, %c1, %c0_6] : memref<1x2x32xf32, #tpu.memory_space<vmem>>, vector<1x1x32xf32>
    %7 = vector.shape_cast %6 : vector<1x1x32xf32> to vector<1x32xf32>
    %cst = arith.constant dense<0.000000e+00> : vector<65xf32>
    %8 = vector.multi_reduction <add>, %3, %cst [1] : vector<65x32xf32> to vector<65xf32>
    %9 = vector.shape_cast %8 : vector<65xf32> to vector<65x1xf32>
    %cst_7 = arith.constant 3.200000e+01 : f32
    %10 = vector.broadcast %cst_7 : f32 to vector<65x1xf32>
    %11 = arith.divf %9, %10 : vector<65x1xf32>
    %12 = vector.broadcast %11 : vector<65x1xf32> to vector<65x32xf32>
    %13 = arith.subf %3, %12 : vector<65x32xf32>
    %14 = arith.mulf %13, %13 : vector<65x32xf32>
    %cst_8 = arith.constant dense<0.000000e+00> : vector<65xf32>
    %15 = vector.multi_reduction <add>, %14, %cst_8 [1] : vector<65x32xf32> to vector<65xf32>
    %16 = vector.shape_cast %15 : vector<65xf32> to vector<65x1xf32>
    %cst_9 = arith.constant 3.200000e+01 : f32
    %17 = vector.broadcast %cst_9 : f32 to vector<65x1xf32>
    %18 = arith.divf %16, %17 : vector<65x1xf32>
    %19 = vector.broadcast %11 : vector<65x1xf32> to vector<65x32xf32>
    %20 = arith.subf %3, %19 : vector<65x32xf32>
    %cst_10 = arith.constant 9.99999974E-6 : f32
    %21 = vector.broadcast %cst_10 : f32 to vector<65x1xf32>
    %22 = arith.addf %18, %21 : vector<65x1xf32>
    %23 = math.rsqrt %22 : vector<65x1xf32>
    %24 = vector.broadcast %23 : vector<65x1xf32> to vector<65x32xf32>
    %25 = arith.mulf %20, %24 : vector<65x32xf32>
    %26 = vector.broadcast %5 : vector<1x32xf32> to vector<65x32xf32>
    %27 = arith.mulf %25, %26 : vector<65x32xf32>
    %28 = vector.broadcast %7 : vector<1x32xf32> to vector<65x32xf32>
    %29 = arith.addf %27, %28 : vector<65x32xf32>
    %c0_11 = arith.constant 0 : index
    %c0_12 = arith.constant 0 : index
    %c0_13 = arith.constant 0 : index
    %30 = vector.load %arg8[%c0_11, %c0_12, %c0_13] : memref<1x32x96xbf16, #tpu.memory_space<vmem>>, vector<1x32x96xbf16>
    %31 = vector.shape_cast %30 : vector<1x32x96xbf16> to vector<32x96xbf16>
    %c0_14 = arith.constant 0 : index
    %c0_15 = arith.constant 0 : index
    %c0_16 = arith.constant 0 : index
    %32 = vector.load %arg9[%c0_14, %c0_15, %c0_16] : memref<1x1x96xf32, #tpu.memory_space<vmem>>, vector<1x1x96xf32>
    %33 = vector.shape_cast %32 : vector<1x1x96xf32> to vector<1x96xf32>
    %34 = arith.truncf %29 : vector<65x32xf32> to vector<65x32xbf16>
    %cst_17 = arith.constant dense<0.000000e+00> : vector<65x96xf32>
    %35 = tpu.matmul %34, %31, %cst_17 {dimension_numbers = #tpu.dot_dimension_numbers<[1], [0], [0], [1], [0, 0, 1, 1], [], []>} : vector<65x32xbf16>, vector<32x96xbf16>, vector<65x96xf32> -> vector<65x96xf32>
    %36 = vector.broadcast %33 : vector<1x96xf32> to vector<65x96xf32>
    %37 = arith.addf %35, %36 : vector<65x96xf32>
    %38 = vector.extract_strided_slice %37 {offsets = [0, 0], sizes = [65, 8], strides = [1, 1]} : vector<65x96xf32> to vector<65x8xf32>
    %39 = vector.extract_strided_slice %37 {offsets = [0, 8], sizes = [65, 8], strides = [1, 1]} : vector<65x96xf32> to vector<65x8xf32>
    %40 = vector.extract_strided_slice %37 {offsets = [0, 16], sizes = [65, 8], strides = [1, 1]} : vector<65x96xf32> to vector<65x8xf32>
    %41 = vector.extract_strided_slice %37 {offsets = [0, 24], sizes = [65, 8], strides = [1, 1]} : vector<65x96xf32> to vector<65x8xf32>
    %42 = vector.shape_cast %38 : vector<65x8xf32> to vector<1x65x8xf32>
    %43 = vector.shape_cast %39 : vector<65x8xf32> to vector<1x65x8xf32>
    %44 = vector.shape_cast %40 : vector<65x8xf32> to vector<1x65x8xf32>
    %45 = vector.shape_cast %41 : vector<65x8xf32> to vector<1x65x8xf32>
    %46 = tpu.concatenate %42, %43, %44, %45 in 0 : vector<1x65x8xf32>, vector<1x65x8xf32>, vector<1x65x8xf32>, vector<1x65x8xf32> -> vector<4x65x8xf32>
    %47 = vector.extract_strided_slice %37 {offsets = [0, 32], sizes = [65, 8], strides = [1, 1]} : vector<65x96xf32> to vector<65x8xf32>
    %48 = vector.extract_strided_slice %37 {offsets = [0, 40], sizes = [65, 8], strides = [1, 1]} : vector<65x96xf32> to vector<65x8xf32>
    %49 = vector.extract_strided_slice %37 {offsets = [0, 48], sizes = [65, 8], strides = [1, 1]} : vector<65x96xf32> to vector<65x8xf32>
    %50 = vector.extract_strided_slice %37 {offsets = [0, 56], sizes = [65, 8], strides = [1, 1]} : vector<65x96xf32> to vector<65x8xf32>
    %51 = vector.shape_cast %47 : vector<65x8xf32> to vector<1x65x8xf32>
    %52 = vector.shape_cast %48 : vector<65x8xf32> to vector<1x65x8xf32>
    %53 = vector.shape_cast %49 : vector<65x8xf32> to vector<1x65x8xf32>
    %54 = vector.shape_cast %50 : vector<65x8xf32> to vector<1x65x8xf32>
    %55 = tpu.concatenate %51, %52, %53, %54 in 0 : vector<1x65x8xf32>, vector<1x65x8xf32>, vector<1x65x8xf32>, vector<1x65x8xf32> -> vector<4x65x8xf32>
    %56 = vector.extract_strided_slice %37 {offsets = [0, 64], sizes = [65, 8], strides = [1, 1]} : vector<65x96xf32> to vector<65x8xf32>
    %57 = vector.extract_strided_slice %37 {offsets = [0, 72], sizes = [65, 8], strides = [1, 1]} : vector<65x96xf32> to vector<65x8xf32>
    %58 = vector.extract_strided_slice %37 {offsets = [0, 80], sizes = [65, 8], strides = [1, 1]} : vector<65x96xf32> to vector<65x8xf32>
    %59 = vector.extract_strided_slice %37 {offsets = [0, 88], sizes = [65, 8], strides = [1, 1]} : vector<65x96xf32> to vector<65x8xf32>
    %60 = vector.shape_cast %56 : vector<65x8xf32> to vector<1x65x8xf32>
    %61 = vector.shape_cast %57 : vector<65x8xf32> to vector<1x65x8xf32>
    %62 = vector.shape_cast %58 : vector<65x8xf32> to vector<1x65x8xf32>
    %63 = vector.shape_cast %59 : vector<65x8xf32> to vector<1x65x8xf32>
    %64 = tpu.concatenate %60, %61, %62, %63 in 0 : vector<1x65x8xf32>, vector<1x65x8xf32>, vector<1x65x8xf32>, vector<1x65x8xf32> -> vector<4x65x8xf32>
    %cst_18 = arith.constant dense<0.000000e+00> : vector<4x65x65xf32>
    %65 = tpu.matmul %46, %55, %cst_18 {dimension_numbers = #tpu.dot_dimension_numbers<[2], [2], [1], [1], [0, 0, 0, 1, 1, 1], [0], [0]>} : vector<4x65x8xf32>, vector<4x65x8xf32>, vector<4x65x65xf32> -> vector<4x65x65xf32>
    %cst_19 = arith.constant 0.353553385 : f32
    %66 = vector.broadcast %cst_19 : f32 to vector<4x65x65xf32>
    %67 = arith.mulf %65, %66 : vector<4x65x65xf32>
    %cst_20 = arith.constant dense<0xFF800000> : vector<4x65xf32>
    %68 = vector.multi_reduction <maximumf>, %67, %cst_20 [2] : vector<4x65x65xf32> to vector<4x65xf32>
    %69 = vector.shape_cast %68 : vector<4x65xf32> to vector<4x65x1xf32>
    %70 = vector.broadcast %69 : vector<4x65x1xf32> to vector<4x65x65xf32>
    %71 = arith.subf %67, %70 : vector<4x65x65xf32>
    %72 = math.exp %71 : vector<4x65x65xf32>
    %cst_21 = arith.constant dense<0.000000e+00> : vector<4x65xf32>
    %73 = vector.multi_reduction <add>, %72, %cst_21 [2] : vector<4x65x65xf32> to vector<4x65xf32>
    %74 = vector.shape_cast %73 : vector<4x65xf32> to vector<4x65x1xf32>
    %75 = tpu.reciprocal %74 {approx = true} : vector<4x65x1xf32> -> vector<4x65x1xf32>
    %76 = vector.broadcast %75 : vector<4x65x1xf32> to vector<4x65x65xf32>
    %77 = arith.mulf %72, %76 : vector<4x65x65xf32>
    %cst_22 = arith.constant dense<0.000000e+00> : vector<4x65x8xf32>
    %78 = tpu.matmul %77, %64, %cst_22 {dimension_numbers = #tpu.dot_dimension_numbers<[2], [1], [1], [2], [0, 0, 0, 1, 1, 2], [0], [0]>} : vector<4x65x65xf32>, vector<4x65x8xf32>, vector<4x65x8xf32> -> vector<4x65x8xf32>
    %79 = vector.extract_strided_slice %78 {offsets = [0, 0, 0], sizes = [1, 65, 8], strides = [1, 1, 1]} : vector<4x65x8xf32> to vector<1x65x8xf32>
    %80 = vector.shape_cast %79 : vector<1x65x8xf32> to vector<65x8xf32>
    %81 = vector.extract_strided_slice %78 {offsets = [1, 0, 0], sizes = [1, 65, 8], strides = [1, 1, 1]} : vector<4x65x8xf32> to vector<1x65x8xf32>
    %82 = vector.shape_cast %81 : vector<1x65x8xf32> to vector<65x8xf32>
    %83 = vector.extract_strided_slice %78 {offsets = [2, 0, 0], sizes = [1, 65, 8], strides = [1, 1, 1]} : vector<4x65x8xf32> to vector<1x65x8xf32>
    %84 = vector.shape_cast %83 : vector<1x65x8xf32> to vector<65x8xf32>
    %85 = vector.extract_strided_slice %78 {offsets = [3, 0, 0], sizes = [1, 65, 8], strides = [1, 1, 1]} : vector<4x65x8xf32> to vector<1x65x8xf32>
    %86 = vector.shape_cast %85 : vector<1x65x8xf32> to vector<65x8xf32>
    %87 = tpu.concatenate %80, %82, %84, %86 in 1 : vector<65x8xf32>, vector<65x8xf32>, vector<65x8xf32>, vector<65x8xf32> -> vector<65x32xf32>
    %c0_23 = arith.constant 0 : index
    %c0_24 = arith.constant 0 : index
    %c0_25 = arith.constant 0 : index
    %88 = vector.load %arg10[%c0_23, %c0_24, %c0_25] : memref<1x32x32xbf16, #tpu.memory_space<vmem>>, vector<1x32x32xbf16>
    %89 = vector.shape_cast %88 : vector<1x32x32xbf16> to vector<32x32xbf16>
    %c0_26 = arith.constant 0 : index
    %c0_27 = arith.constant 0 : index
    %c0_28 = arith.constant 0 : index
    %90 = vector.load %arg11[%c0_26, %c0_27, %c0_28] : memref<1x1x32xf32, #tpu.memory_space<vmem>>, vector<1x1x32xf32>
    %91 = vector.shape_cast %90 : vector<1x1x32xf32> to vector<1x32xf32>
    %92 = arith.truncf %87 : vector<65x32xf32> to vector<65x32xbf16>
    %cst_29 = arith.constant dense<0.000000e+00> : vector<65x32xf32>
    %93 = tpu.matmul %92, %89, %cst_29 {dimension_numbers = #tpu.dot_dimension_numbers<[1], [0], [0], [1], [0, 0, 1, 1], [], []>} : vector<65x32xbf16>, vector<32x32xbf16>, vector<65x32xf32> -> vector<65x32xf32>
    %94 = vector.broadcast %91 : vector<1x32xf32> to vector<65x32xf32>
    %95 = arith.addf %93, %94 : vector<65x32xf32>
    %96 = arith.addf %3, %95 : vector<65x32xf32>
    %c0_30 = arith.constant 0 : index
    %c0_31 = arith.constant 0 : index
    %c0_32 = arith.constant 0 : index
    %97 = vector.load %arg12[%c0_30, %c0_31, %c0_32] : memref<1x2x32xf32, #tpu.memory_space<vmem>>, vector<1x1x32xf32>
    %98 = vector.shape_cast %97 : vector<1x1x32xf32> to vector<1x32xf32>
    %c0_33 = arith.constant 0 : index
    %c1_34 = arith.constant 1 : index
    %c0_35 = arith.constant 0 : index
    %99 = vector.load %arg12[%c0_33, %c1_34, %c0_35] : memref<1x2x32xf32, #tpu.memory_space<vmem>>, vector<1x1x32xf32>
    %100 = vector.shape_cast %99 : vector<1x1x32xf32> to vector<1x32xf32>
    %cst_36 = arith.constant dense<0.000000e+00> : vector<65xf32>
    %101 = vector.multi_reduction <add>, %96, %cst_36 [1] : vector<65x32xf32> to vector<65xf32>
    %102 = vector.shape_cast %101 : vector<65xf32> to vector<65x1xf32>
    %cst_37 = arith.constant 3.200000e+01 : f32
    %103 = vector.broadcast %cst_37 : f32 to vector<65x1xf32>
    %104 = arith.divf %102, %103 : vector<65x1xf32>
    %105 = vector.broadcast %104 : vector<65x1xf32> to vector<65x32xf32>
    %106 = arith.subf %96, %105 : vector<65x32xf32>
    %107 = arith.mulf %106, %106 : vector<65x32xf32>
    %cst_38 = arith.constant dense<0.000000e+00> : vector<65xf32>
    %108 = vector.multi_reduction <add>, %107, %cst_38 [1] : vector<65x32xf32> to vector<65xf32>
    %109 = vector.shape_cast %108 : vector<65xf32> to vector<65x1xf32>
    %cst_39 = arith.constant 3.200000e+01 : f32
    %110 = vector.broadcast %cst_39 : f32 to vector<65x1xf32>
    %111 = arith.divf %109, %110 : vector<65x1xf32>
    %112 = vector.broadcast %104 : vector<65x1xf32> to vector<65x32xf32>
    %113 = arith.subf %96, %112 : vector<65x32xf32>
    %cst_40 = arith.constant 9.99999974E-6 : f32
    %114 = vector.broadcast %cst_40 : f32 to vector<65x1xf32>
    %115 = arith.addf %111, %114 : vector<65x1xf32>
    %116 = math.rsqrt %115 : vector<65x1xf32>
    %117 = vector.broadcast %116 : vector<65x1xf32> to vector<65x32xf32>
    %118 = arith.mulf %113, %117 : vector<65x32xf32>
    %119 = vector.broadcast %98 : vector<1x32xf32> to vector<65x32xf32>
    %120 = arith.mulf %118, %119 : vector<65x32xf32>
    %121 = vector.broadcast %100 : vector<1x32xf32> to vector<65x32xf32>
    %122 = arith.addf %120, %121 : vector<65x32xf32>
    %c0_41 = arith.constant 0 : index
    %c0_42 = arith.constant 0 : index
    %c0_43 = arith.constant 0 : index
    %123 = vector.load %arg13[%c0_41, %c0_42, %c0_43] : memref<1x32x128xbf16, #tpu.memory_space<vmem>>, vector<1x32x128xbf16>
    %124 = vector.shape_cast %123 : vector<1x32x128xbf16> to vector<32x128xbf16>
    %c0_44 = arith.constant 0 : index
    %c0_45 = arith.constant 0 : index
    %c0_46 = arith.constant 0 : index
    %125 = vector.load %arg14[%c0_44, %c0_45, %c0_46] : memref<1x1x128xf32, #tpu.memory_space<vmem>>, vector<1x1x128xf32>
    %126 = vector.shape_cast %125 : vector<1x1x128xf32> to vector<1x128xf32>
    %127 = arith.truncf %122 : vector<65x32xf32> to vector<65x32xbf16>
    %cst_47 = arith.constant dense<0.000000e+00> : vector<65x128xf32>
    %128 = tpu.matmul %127, %124, %cst_47 {dimension_numbers = #tpu.dot_dimension_numbers<[1], [0], [0], [1], [0, 0, 1, 1], [], []>} : vector<65x32xbf16>, vector<32x128xbf16>, vector<65x128xf32> -> vector<65x128xf32>
    %129 = vector.broadcast %126 : vector<1x128xf32> to vector<65x128xf32>
    %130 = arith.addf %128, %129 : vector<65x128xf32>
    %cst_48 = arith.constant 5.000000e-01 : f32
    %131 = vector.broadcast %cst_48 : f32 to vector<65x128xf32>
    %132 = arith.mulf %131, %130 : vector<65x128xf32>
    %cst_49 = arith.constant 4.471500e-02 : f32
    %133 = vector.broadcast %cst_49 : f32 to vector<65x128xf32>
    %134 = arith.mulf %133, %130 : vector<65x128xf32>
    %135 = arith.mulf %134, %130 : vector<65x128xf32>
    %136 = arith.mulf %135, %130 : vector<65x128xf32>
    %137 = arith.addf %130, %136 : vector<65x128xf32>
    %cst_50 = arith.constant 0.797884583 : f32
    %138 = vector.broadcast %cst_50 : f32 to vector<65x128xf32>
    %139 = arith.mulf %138, %137 : vector<65x128xf32>
    %140 = math.tanh %139 : vector<65x128xf32>
    %cst_51 = arith.constant 1.000000e+00 : f32
    %141 = vector.broadcast %cst_51 : f32 to vector<65x128xf32>
    %142 = arith.addf %141, %140 : vector<65x128xf32>
    %143 = arith.mulf %132, %142 : vector<65x128xf32>
    %c0_52 = arith.constant 0 : index
    %c0_53 = arith.constant 0 : index
    %c0_54 = arith.constant 0 : index
    %144 = vector.load %arg15[%c0_52, %c0_53, %c0_54] : memref<1x128x32xbf16, #tpu.memory_space<vmem>>, vector<1x128x32xbf16>
    %145 = vector.shape_cast %144 : vector<1x128x32xbf16> to vector<128x32xbf16>
    %c0_55 = arith.constant 0 : index
    %c0_56 = arith.constant 0 : index
    %c0_57 = arith.constant 0 : index
    %146 = vector.load %arg16[%c0_55, %c0_56, %c0_57] : memref<1x1x32xf32, #tpu.memory_space<vmem>>, vector<1x1x32xf32>
    %147 = vector.shape_cast %146 : vector<1x1x32xf32> to vector<1x32xf32>
    %148 = arith.truncf %143 : vector<65x128xf32> to vector<65x128xbf16>
    %cst_58 = arith.constant dense<0.000000e+00> : vector<65x32xf32>
    %149 = tpu.matmul %148, %145, %cst_58 {dimension_numbers = #tpu.dot_dimension_numbers<[1], [0], [0], [1], [0, 0, 1, 1], [], []>} : vector<65x128xbf16>, vector<128x32xbf16>, vector<65x32xf32> -> vector<65x32xf32>
    %150 = vector.broadcast %147 : vector<1x32xf32> to vector<65x32xf32>
    %151 = arith.addf %149, %150 : vector<65x32xf32>
    %152 = arith.addf %96, %151 : vector<65x32xf32>
    %c0_59 = arith.constant 0 : index
    %c0_60 = arith.constant 0 : index
    %153 = vector.load %arg21[%c0_59, %c0_60] : memref<65x32xf32, #tpu.memory_space<vmem>>, vector<65x32xf32>
    tpu.vector_store %arg21[%c0_59, %c0_60], %152 {strides = array<i32>} : memref<65x32xf32, #tpu.memory_space<vmem>>, vector<65x32xf32>,
    %c1_i32 = arith.constant 1 : i32
    %154 = arith.cmpi eq, %arg1, %c1_i32 : i32
    %155 = arith.extui %154 : i1 to i32
    %c0_i32_61 = arith.constant 0 : i32
    %156 = arith.cmpi ne, %155, %c0_i32_61 : i32
    scf.if %156 {
      %157 = vector.extract_strided_slice %152 {offsets = [64, 0], sizes = [1, 32], strides = [1, 1]} : vector<65x32xf32> to vector<1x32xf32>
      %c0_62 = arith.constant 0 : index
      %c0_63 = arith.constant 0 : index
      %158 = vector.load %arg17[%c0_62, %c0_63] : memref<2x32xf32, #tpu.memory_space<vmem>>, vector<1x32xf32>
      %c1_64 = arith.constant 1 : index
      %c0_65 = arith.constant 0 : index
      %159 = vector.load %arg17[%c1_64, %c0_65] : memref<2x32xf32, #tpu.memory_space<vmem>>, vector<1x32xf32>
      %cst_66 = arith.constant dense<0.000000e+00> : vector<1xf32>
      %160 = vector.multi_reduction <add>, %157, %cst_66 [1] : vector<1x32xf32> to vector<1xf32>
      %161 = vector.shape_cast %160 : vector<1xf32> to vector<1x1xf32>
      %cst_67 = arith.constant 3.200000e+01 : f32
      %162 = vector.broadcast %cst_67 : f32 to vector<1x1xf32>
      %163 = arith.divf %161, %162 : vector<1x1xf32>
      %164 = vector.broadcast %163 : vector<1x1xf32> to vector<1x32xf32>
      %165 = arith.subf %157, %164 : vector<1x32xf32>
      %166 = arith.mulf %165, %165 : vector<1x32xf32>
      %cst_68 = arith.constant dense<0.000000e+00> : vector<1xf32>
      %167 = vector.multi_reduction <add>, %166, %cst_68 [1] : vector<1x32xf32> to vector<1xf32>
      %168 = vector.shape_cast %167 : vector<1xf32> to vector<1x1xf32>
      %cst_69 = arith.constant 3.200000e+01 : f32
      %169 = vector.broadcast %cst_69 : f32 to vector<1x1xf32>
      %170 = arith.divf %168, %169 : vector<1x1xf32>
      %171 = vector.broadcast %163 : vector<1x1xf32> to vector<1x32xf32>
      %172 = arith.subf %157, %171 : vector<1x32xf32>
      %cst_70 = arith.constant 9.99999974E-6 : f32
      %173 = vector.broadcast %cst_70 : f32 to vector<1x1xf32>
      %174 = arith.addf %170, %173 : vector<1x1xf32>
      %175 = math.rsqrt %174 : vector<1x1xf32>
      %176 = vector.broadcast %175 : vector<1x1xf32> to vector<1x32xf32>
      %177 = arith.mulf %172, %176 : vector<1x32xf32>
      %178 = arith.mulf %177, %158 : vector<1x32xf32>
      %179 = arith.addf %178, %159 : vector<1x32xf32>
      %c0_71 = arith.constant 0 : index
      %c0_72 = arith.constant 0 : index
      %180 = vector.load %arg18[%c0_71, %c0_72] : memref<32x128xbf16, #tpu.memory_space<vmem>>, vector<32x128xbf16>
      %c0_73 = arith.constant 0 : index
      %c0_74 = arith.constant 0 : index
      %181 = vector.load %arg19[%c0_73, %c0_74] : memref<1x128xf32, #tpu.memory_space<vmem>>, vector<1x128xf32>
      %182 = arith.truncf %179 : vector<1x32xf32> to vector<1x32xbf16>
      %cst_75 = arith.constant dense<0.000000e+00> : vector<1x128xf32>
      %183 = tpu.matmul %182, %180, %cst_75 {dimension_numbers = #tpu.dot_dimension_numbers<[1], [0], [0], [1], [0, 0, 1, 1], [], []>} : vector<1x32xbf16>, vector<32x128xbf16>, vector<1x128xf32> -> vector<1x128xf32>
      %184 = arith.addf %183, %181 : vector<1x128xf32>
      %c0_76 = arith.constant 0 : index
      %c0_77 = arith.constant 0 : index
      %c0_78 = arith.constant 0 : index
      %185 = vector.load %arg20[%c0_76, %c0_77, %c0_78] : memref<1x1x128xf32, #tpu.memory_space<vmem>>, vector<1x1x128xf32>
      %186 = vector.shape_cast %185 : vector<1x1x128xf32> to vector<1x128xf32>
      %187 = vector.shape_cast %184 : vector<1x128xf32> to vector<1x1x128xf32>
      tpu.vector_store %arg20[%c0_76, %c0_77, %c0_78], %187 {strides = array<i32>} : memref<1x1x128xf32, #tpu.memory_space<vmem>>, vector<1x1x128xf32>,
    } else {
    }
    return
  }
  func.func @transform_0(%arg0: i32, %arg1: i32) -> (i32, i32, i32) {
    %c0_i32 = arith.constant 0 : i32
    %c0_i32_0 = arith.constant 0 : i32
    %c0_i32_1 = arith.constant 0 : i32
    return %arg0, %c0_i32, %c0_i32_0 : i32, i32, i32
  }
  func.func @transform_1(%arg0: i32, %arg1: i32) -> (i32, i32) {
    %c0_i32 = arith.constant 0 : i32
    %c0_i32_0 = arith.constant 0 : i32
    %c0_i32_1 = arith.constant 0 : i32
    return %c0_i32, %c0_i32_0 : i32, i32
  }
  func.func @transform_2(%arg0: i32, %arg1: i32) -> (i32, i32) {
    %c0_i32 = arith.constant 0 : i32
    %c0_i32_0 = arith.constant 0 : i32
    %c0_i32_1 = arith.constant 0 : i32
    return %c0_i32, %c0_i32_0 : i32, i32
  }
  func.func @transform_3(%arg0: i32, %arg1: i32) -> (i32, i32) {
    %c0_i32 = arith.constant 0 : i32
    %c0_i32_0 = arith.constant 0 : i32
    %c0_i32_1 = arith.constant 0 : i32
    return %c0_i32, %c0_i32_0 : i32, i32
  }
  func.func @transform_4(%arg0: i32, %arg1: i32) -> (i32, i32) {
    %c0_i32 = arith.constant 0 : i32
    %c0_i32_0 = arith.constant 0 : i32
    %c0_i32_1 = arith.constant 0 : i32
    return %c0_i32, %c0_i32_0 : i32, i32
  }
  func.func @transform_5(%arg0: i32, %arg1: i32) -> (i32, i32, i32) {
    %c0_i32 = arith.constant 0 : i32
    %c0_i32_0 = arith.constant 0 : i32
    %c0_i32_1 = arith.constant 0 : i32
    return %arg1, %c0_i32, %c0_i32_0 : i32, i32, i32
  }
  func.func @transform_6(%arg0: i32, %arg1: i32) -> (i32, i32, i32) {
    %c0_i32 = arith.constant 0 : i32
    %c0_i32_0 = arith.constant 0 : i32
    %c0_i32_1 = arith.constant 0 : i32
    return %arg1, %c0_i32, %c0_i32_0 : i32, i32, i32
  }
  func.func @transform_7(%arg0: i32, %arg1: i32) -> (i32, i32, i32) {
    %c0_i32 = arith.constant 0 : i32
    %c0_i32_0 = arith.constant 0 : i32
    %c0_i32_1 = arith.constant 0 : i32
    return %arg1, %c0_i32, %c0_i32_0 : i32, i32, i32
  }
  func.func @transform_8(%arg0: i32, %arg1: i32) -> (i32, i32, i32) {
    %c0_i32 = arith.constant 0 : i32
    %c0_i32_0 = arith.constant 0 : i32
    %c0_i32_1 = arith.constant 0 : i32
    return %arg1, %c0_i32, %c0_i32_0 : i32, i32, i32
  }
  func.func @transform_9(%arg0: i32, %arg1: i32) -> (i32, i32, i32) {
    %c0_i32 = arith.constant 0 : i32
    %c0_i32_0 = arith.constant 0 : i32
    %c0_i32_1 = arith.constant 0 : i32
    return %arg1, %c0_i32, %c0_i32_0 : i32, i32, i32
  }
  func.func @transform_10(%arg0: i32, %arg1: i32) -> (i32, i32, i32) {
    %c0_i32 = arith.constant 0 : i32
    %c0_i32_0 = arith.constant 0 : i32
    %c0_i32_1 = arith.constant 0 : i32
    return %arg1, %c0_i32, %c0_i32_0 : i32, i32, i32
  }
  func.func @transform_11(%arg0: i32, %arg1: i32) -> (i32, i32, i32) {
    %c0_i32 = arith.constant 0 : i32
    %c0_i32_0 = arith.constant 0 : i32
    %c0_i32_1 = arith.constant 0 : i32
    return %arg1, %c0_i32, %c0_i32_0 : i32, i32, i32
  }
  func.func @transform_12(%arg0: i32, %arg1: i32) -> (i32, i32, i32) {
    %c0_i32 = arith.constant 0 : i32
    %c0_i32_0 = arith.constant 0 : i32
    %c0_i32_1 = arith.constant 0 : i32
    return %arg1, %c0_i32, %c0_i32_0 : i32, i32, i32
  }
  func.func @transform_13(%arg0: i32, %arg1: i32) -> (i32, i32, i32) {
    %c0_i32 = arith.constant 0 : i32
    %c0_i32_0 = arith.constant 0 : i32
    %c0_i32_1 = arith.constant 0 : i32
    return %arg1, %c0_i32, %c0_i32_0 : i32, i32, i32
  }
  func.func @transform_14(%arg0: i32, %arg1: i32) -> (i32, i32, i32) {
    %c0_i32 = arith.constant 0 : i32
    %c0_i32_0 = arith.constant 0 : i32
    %c0_i32_1 = arith.constant 0 : i32
    return %arg1, %c0_i32, %c0_i32_0 : i32, i32, i32
  }
  func.func @transform_15(%arg0: i32, %arg1: i32) -> (i32, i32) {
    %c0_i32 = arith.constant 0 : i32
    %c0_i32_0 = arith.constant 0 : i32
    %c0_i32_1 = arith.constant 0 : i32
    return %c0_i32, %c0_i32_0 : i32, i32
  }
  func.func @transform_16(%arg0: i32, %arg1: i32) -> (i32, i32) {
    %c0_i32 = arith.constant 0 : i32
    %c0_i32_0 = arith.constant 0 : i32
    %c0_i32_1 = arith.constant 0 : i32
    return %c0_i32, %c0_i32_0 : i32, i32
  }
  func.func @transform_17(%arg0: i32, %arg1: i32) -> (i32, i32) {
    %c0_i32 = arith.constant 0 : i32
    %c0_i32_0 = arith.constant 0 : i32
    %c0_i32_1 = arith.constant 0 : i32
    return %c0_i32, %c0_i32_0 : i32, i32
  }
  func.func @transform_18(%arg0: i32, %arg1: i32) -> (i32, i32, i32) {
    %c0_i32 = arith.constant 0 : i32
    %c0_i32_0 = arith.constant 0 : i32
    %c0_i32_1 = arith.constant 0 : i32
    return %arg0, %c0_i32, %c0_i32_0 : i32, i32, i32
  }
}

</mosaic_0001>

<bundles_post_ra>
// kernel: vit_classifier_forward.1
= control target key start
LH: loop header
LB: loop body
LE: loop exit
PB: predicated region body
PF: predicated region fallthrough
CT: control target
= control target key end

     0   :  { %s7215_s0 = inlined_call_operand.vmem [shape: f32[2,64,12], index: 0, kind: input, shape index: {}]   ;;  %s7216_s1 = inlined_call_operand.vmem [shape: bf16[12,32], index: 1, kind: input, shape index: {}]   ;;  %s7217_s2 = inlined_call_operand.vmem [shape: f32[1,32], index: 2, kind: input, shape index: {}]   ;;  %s7218_s3 = inlined_call_operand.vmem [shape: f32[64,32], index: 3, kind: input, shape index: {}]   ;;  %s7219_s4 = inlined_call_operand.vmem [shape: f32[1,32], index: 4, kind: input, shape index: {}]   ;;  %s7220_s5 = inlined_call_operand.vmem [shape: f32[2,2,32], index: 5, kind: input, shape index: {}]   ;;  %s7221_s6 = inlined_call_operand.vmem [shape: bf16[2,32,96], index: 6, kind: input, shape index: {}]   ;;  %s7222_s7 = inlined_call_operand.vmem [shape: f32[2,1,96], index: 7, kind: input, shape index: {}]   ;;  %s7223_s8 = inlined_call_operand.vmem [shape: bf16[2,32,32], index: 8, kind: input, shape index: {}]   ;;  %s7224_s9 = inlined_call_operand.vmem [shape: f32[2,1,32], index: 9, kind: input, shape index: {}]   ;;  %s7225_s10 = inlined_call_operand.vmem [shape: f32[2,2,32], index: 10, kind: input, shape index: {}]   ;;  %s7226_s11 = inlined_call_operand.vmem [shape: bf16[2,32,128], index: 11, kind: input, shape index: {}]   ;;  %s7227_s12 = inlined_call_operand.vmem [shape: f32[2,1,128], index: 12, kind: input, shape index: {}]   ;;  %s7228_s13 = inlined_call_operand.vmem [shape: bf16[2,128,32], index: 13, kind: input, shape index: {}]   ;;  %s7229_s14 = inlined_call_operand.vmem [shape: f32[2,1,32], index: 14, kind: input, shape index: {}]   ;;  %s7230_s15 = inlined_call_operand.vmem [shape: f32[2,32], index: 15, kind: input, shape index: {}]   ;;  %s7231_s16 = inlined_call_operand.vmem [shape: bf16[32,128], index: 16, kind: input, shape index: {}]   ;;  %s7232_s17 = inlined_call_operand.vmem [shape: f32[1,128], index: 17, kind: input, shape index: {}]   ;;  %s7233_s18 = inlined_call_operand.hbm [shape: f32[2,1,128], index: 18, kind: output, shape index: {}]  }
   0x1   :  { %7262 = sst [smem:[#allocation36_spill]] %s7215_s0 }
   0x2   :  { %7263 = sst [smem:[#allocation37_spill]] %s7216_s1 }
   0x3   :  { %7264 = sst [smem:[#allocation38_spill]] %s7217_s2 }
   0x4   :  { %7265 = sst [smem:[#allocation39_spill]] %s7218_s3 }
   0x5   :  { %7266 = sst [smem:[#allocation40_spill]] %s7220_s5 }
   0x6   :  { %7267 = sst [smem:[#allocation41_spill]] %s7221_s6 }
   0x7   :  { %7268 = sst [smem:[#allocation42_spill]] %s7223_s8 }
   0x8   :  { %7269 = sst [smem:[#allocation43_spill]] %s7230_s15 }
   0x9   :  { %7270 = sst [smem:[#allocation44_spill]] %s7231_s16 }
   0xa   :  { %7271 = sst [smem:[#allocation45_spill]] %s7232_s17 }
   0xb   :  { %7272 = sst [smem:[#allocation46_spill]] %s7233_s18 }
   0xc   :  { %23 = vsyncpa [#allocation4], 0 }
   0xd   :  { %25 = vsyncpa [#allocation4 + $0x1], 0  ;;  %s5471_s27 = smov 0   ;;  %s5473_s28 = smov 0  }
   0xe   :  { %s5475_s29 = smov 0   ;;  %s5477_s30 = smov 0  }
   0xf   :  { %s5479_s0 = smov 0   ;;  %s5481_s19 = smov 0  }
  0x10   :  { %s5483_s1 = smov 0   ;;  %s5485_s20 = smov 0  }
  0x11 LB: > { %7273 = sst [smem:[#allocation6_spill]] %s5333_s27  ;;  %s4021_s21 = sadd.s32 4294967295, %s5361_s20   ;;  %s5361_s20 = sphi %s5485_s20, %s31_s20   ;;  %s5357_s1 = sphi %s5483_s1, %s7350_s1   ;;  %s5353_s19 = sphi %s5481_s19, %s7349_s19   ;;  %s5349_s0 = sphi %s5479_s0, %s7348_s0   ;;  %s5345_s30 = sphi %s5477_s30, %s7347_s30   ;;  %s5341_s29 = sphi %s5475_s29, %s7353_s29   ;;  %s5337_s28 = sphi %s5473_s28, %s7352_s28   ;;  %s5333_s27 = sphi %s5471_s27, %s7351_s27  }
  0x12   : > { %7274 = sst [smem:[#allocation7_spill]] %s5341_s29  ;;  %s4022_s22 = sadd.s32 4294967294, %s5361_s20  }
  0x13   : > { %7275 = sst [smem:[#allocation8_spill]] %s5349_s0  ;;  %s40_s2 = sadd.s32 1, %s5353_s19 }
  0x14   : > { %7276 = sst [smem:[#allocation9_spill]] %s5353_s19  ;;  %p41_p0 = scmp.ge.s32.totalorder %s40_s2, 2 }
  0x15   : > { %7277 = sst [smem:[#allocation10_spill]] %s5357_s1  ;;  %s43_s23 = sadd.s32 1, %s5357_s1 }
  0x16   : > { %7278 = sst [smem:[#allocation11_spill]] %s5361_s20  ;;  %p493_p1 = scmp.ne.s32.totalorder %s5341_s29, %s5337_s28 }
  0x17   : > { %p494_p2 = scmp.eq.s32.totalorder %s4021_s21, 3  ;;  %s7355_s2 = smov (%p41_p0, %s40_s2), 0 }
  0x18   : > { %7279 = sst [smem:[#allocation12_spill]] %s7355_s2  ;;  %s7357_s23 = smov (!%p41_p0, %s43_s23), %s5357_s1 }
  0x19   : > { %p5520_p3 = por %p494_p2, %p493_p1  ;;  %p499_p4 = scmp.ne.s32.totalorder %s5337_s28, %s5333_s27 }
  0x1a   : > { %p45_p5 = scmp.ge.s32.totalorder %s7357_s23, 2  ;;  %p500_p6 = scmp.eq.s32.totalorder %s4022_s22, 3 }
  0x1b   : > { %s7280_s24 = scalar_select %p5520_p3, 1, 0 }
  0x1c   : > { %p4025_p7 = scmp.ge.s32.totalorder %s5361_s20, 1  ;;  %p617_p8 = scmp.lt.s32.totalorder %s5361_s20, 5 }
  0x1d   : > { %7281 = sst [smem:[#allocation13_spill]] %s7280_s24  ;;  %s7359_s23 = smov (%p45_p5, %s7357_s23), 0 }
  0x1e   : > { %7282 = sst [smem:[#allocation14_spill]] %s7359_s23  ;;  %p5530_p9 = por %p500_p6, %p499_p4 }
  0x1f   : > { %p618_p10 = pnand %p4025_p7, %p617_p8  ;;  %s480_s26 = ssub.s32 %s5357_s1, %s7359_s23 }
  0x20   : > { %s7283_s25 = scalar_select %p5530_p9, 1, 0 }
  0x21   : > { %s483_s21 = sadd.s32 1, %s5341_s29  ;;  %p481_p11 = scmp.eq.s32.totalorder %s480_s26, 0 }
  0x22   : > { %7284 = sst [smem:[#allocation15_spill]] %s7283_s25  ;;  %621 = sbr.rel (%p618_p10) target bundleno = 3566 (0xdee), region = 92 }
  0x23   : > { %s5538_s2 = scalar_select %p481_p11, %s5341_s29, %s483_s21  }
  0x25   : > { %7285 = sst [smem:[#allocation16_spill]] %s5538_s2 }
  0x27   : > { %p710_p12 = scmp.lt.s32.totalorder %s5349_s0, 1  ;;  %p715_p13 = scmp.lt.s32.totalorder %s5345_s30, 1 }
  0x28   : > { %s7286_s1 = sld [smem:[#allocation36_spill]]  ;;  %p4038_p0 = scmp.ne.s32.totalorder %s5345_s30, 0 }
  0x29   : > { %s711_s19 = scalar_select %p710_p12, %s5349_s0, 1 }
  0x2a   : > { %s5545_s27 = scalar_select %p715_p13, %s5345_s30, 1 }
  0x2b   : > { %s4201_s26 = sshll.u32 %s711_s19, 6  ;;  %s7287_s5 = sld [smem:[#allocation40_spill]] }
  0x2c   : > { %s4028_s22 = sshll.u32 %s5545_s27, 1  ;;  %s4202_s18 = sshll.u32 %s5545_s27, 4 }
  0x2d   : > { %s7289_s6 = sld [smem:[#allocation41_spill]]  ;;  %s746_s3 = scalar_lea.vmem %s7227_s12, %s5545_s27 }
  0x2e   : > { %s5550_s2 = scalar_lea.vmem %s7286_s1, %s4201_s26  ;;  %s7290_s8 = sld [smem:[#allocation42_spill]] }
  0x2f   : > { %s4205_s23 = sshll.u32 %s5545_s27, 6  ;;  %s7292_s24 = sld [smem:[#allocation37_spill]] (!%p4038_p0) }
  0x30   : > { %s5595_s26 = scalar_lea.vmem %s7228_s13, %s4205_s23  ;;  %s7293_s16 = sld [smem:[#allocation38_spill]] (!%p4038_p0) }
  0x31   : > { %s5556_s20 = scalar_lea.vmem %s7287_s5, %s4028_s22  ;;  %s754_s5 = scalar_lea.vmem %s7229_s14, %s5545_s27 }
  0x32   : > { %7288 = sst [smem:[#allocation17_spill]] %s5556_s20  ;;  %s5580_s20 = scalar_lea.vmem %s7225_s10, %s4028_s22 }
  0x33   : > { %s5562_s17 = scalar_lea.vmem %s7289_s6, %s4202_s18  ;;  %s5585_s6 = scalar_lea.vmem %s7226_s11, %s4202_s18 }
  0x34   : > { %s5571_s1 = scalar_lea.vmem %s7290_s8, %s4202_s18  ;;  %s7291_s22 = sand.u32 1, %s5337_s28  }
  0x35   : > { %s5603_s25 = scalar_lea.vmem [#allocation3], %s7291_s22  ;;  %759 = sbr.rel (%p4038_p0) target bundleno = 268 (0x10c), region = 96 }
  0x36   : > { %s7294_s21 = sld [smem:[#allocation39_spill]] (!%p4038_p0) }
  0x3a   : > { %v4983_v0 = vld [vmem:[%s7292_s24] sm:$0x3f]   ;;  %vm799_vm0 = vcmask 1045504   ;;  %v761_v2 = vld [vmem:[%s5550_s2 + $0x8] sm:$0xff]  ;;  %vm786_vm1 = vcmask 97280   ;;  %v762_v7 = vld [vmem:[%s5550_s2 + $0x10] sm:$0xff] }
  0x3b   : > { %v760_v1 = vld [vmem:[%s5550_s2] sm:$0xff]  ;;  %4898 = vmatprep.subr.msk.bf16.mxu0 %vm799_vm0, %v4983_v0  ;;  %4899 = vmatprep.subr.msk.bf16.mxu1 %vm799_vm0, %v4983_v0  ;;  %v801_v4 = vsel %vm799_vm0, %v4983_v0, 0  ;;  %v765_v6 = vld [vmem:[%s5550_s2 + $0x28] sm:$0xff]  ;;  %v763_v8 = vld [vmem:[%s5550_s2 + $0x18] sm:$0xff]  ;;  %vm894_vm2 = vcmask 253952   ;;  %vm885_vm3 = vcmask 261120  }
  0x3c   : > { %v764_v3 = vld [vmem:[%s5550_s2 + $0x20] sm:$0xff]  ;;  %v768_v5 = vpack.c.bf16 %v761_v2, %v760_v1  ;;  %4393 = vmatpush3.bf16.msra.mxu0 %v801_v4  ;;  %4879 = vmatpush3.bf16.msra.mxu1 %v801_v4  ;;  %v769_v10 = vpack.c.bf16 %v763_v8, %v762_v7  ;;  %v766_v11 = vld [vmem:[%s5550_s2 + $0x30] sm:$0xff]  ;;  %v767_v12 = vld [vmem:[%s5550_s2 + $0x38] sm:$0xff] }
  0x3d   : > { %v770_v9 = vpack.c.bf16 %v765_v6, %v764_v3  ;;  %v771_v13 = vpack.c.bf16 %v767_v12, %v766_v11  ;;  %v884_v14 = vld [vmem:[%s7219_s4] sm:$0x1]  ;;  %v870_v17 = vld [vmem:[%s7294_s21 + $0x10] sm:$0xff]  ;;  %v871_v31 = vld [vmem:[%s7294_s21 + $0x18] sm:$0xff] }
  0x3e   : > { %4394 = vmatprep.mubr.msk.bf16.mxu0 %vm786_vm1, %v768_v5  ;;  %895 = vst.msk [vmem:[#allocation2 + $0x40] sm:$0x1] %vm894_vm2, %v884_v14  ;;  %v4039_v15 = vld [vmem:[%s7293_s16] ss:$0 sm:$0xff]  ;;  %v874_v19 = vld [vmem:[%s7294_s21 + $0x30] sm:$0xff]  ;;  %v875_v33 = vld [vmem:[%s7294_s21 + $0x38] sm:$0xff] }
  0x3f   : > { %4398 = vmatprep.mubr.msk.bf16.mxu1 %vm786_vm1, %v770_v9  ;;  %4395 = vmatmul.mubr.msk.bf16.vlgmr.msra.gmra.mxu0 %vm786_vm1, %v769_v10  ;;  %v868_v23 = vld [vmem:[%s7294_s21] sm:$0xff]  ;;  %v869_v39 = vld [vmem:[%s7294_s21 + $0x8] sm:$0xff] }
  0x40   : > { %4399 = vmatmul.mubr.msk.bf16.vlgmr.msra.gmra.mxu1 %vm786_vm1, %v771_v13  ;;  %v872_v25 = vld [vmem:[%s7294_s21 + $0x20] sm:$0xff]  ;;  %v873_v41 = vld [vmem:[%s7294_s21 + $0x28] sm:$0xff] }
  0xff   : > { %v4396_v16 = vpop.f32.mrf.mxu0 }
 0x100   : > { %v4400_v18 = vpop.f32.mrf.mxu1  ;;  %v846_v20 = vadd.f32 %v4396_v16, %v4039_v15 }
 0x101   : > { %v862_v21 = vadd.f32 %v4400_v18, %v4039_v15  ;;  %v837_v22 = vpop.f32.mrf.mxu0 }
 0x102   : > { %v853_v24 = vpop.f32.mrf.mxu1  ;;  %v878_v26 = vadd.f32 %v870_v17, %v846_v20  ;;  %v838_v28 = vadd.f32 %v4039_v15, %v837_v22 }
 0x103   : > { %v882_v27 = vadd.f32 %v874_v19, %v862_v21  ;;  %v854_v29 = vadd.f32 %v4039_v15, %v853_v24  ;;  %v4397_v30 = vpop.f32.mrf.mxu0 }
 0x104   : > { %v4401_v32 = vpop.f32.mrf.mxu1  ;;  %888 = vst.msk [vmem:[#allocation2 + $0x10] sm:$0xff] %vm885_vm3, %v878_v26  ;;  %v876_v34 = vadd.f32 %v868_v23, %v838_v28  ;;  %v849_v36 = vadd.f32 %v4397_v30, %v4039_v15 }
 0x105   : > { %892 = vst.msk [vmem:[#allocation2 + $0x30] sm:$0xff] %vm885_vm3, %v882_v27  ;;  %v880_v35 = vadd.f32 %v872_v25, %v854_v29  ;;  %v865_v37 = vadd.f32 %v4401_v32, %v4039_v15  ;;  %v840_v38 = vpop.f32.mrf.mxu0 }
 0x106   : > { %v856_v40 = vpop.f32.mrf.mxu1  ;;  %886 = vst.msk [vmem:[#allocation2] sm:$0xff] %vm885_vm3, %v876_v34  ;;  %v879_v42 = vadd.f32 %v871_v31, %v849_v36  ;;  %v841_v44 = vadd.f32 %v4039_v15, %v840_v38 }
 0x107   : > { %890 = vst.msk [vmem:[#allocation2 + $0x20] sm:$0xff] %vm885_vm3, %v880_v35  ;;  %v883_v43 = vadd.f32 %v875_v33, %v865_v37  ;;  %v857_v45 = vadd.f32 %v4039_v15, %v856_v40 }
 0x108   : > { %889 = vst.msk [vmem:[#allocation2 + $0x18] sm:$0xff] %vm885_vm3, %v879_v42  ;;  %v877_v46 = vadd.f32 %v869_v39, %v841_v44 }
 0x109   : > { %893 = vst.msk [vmem:[#allocation2 + $0x38] sm:$0xff] %vm885_vm3, %v883_v43  ;;  %v881_v47 = vadd.f32 %v873_v41, %v857_v45 }
 0x10a   : > { %887 = vst.msk [vmem:[#allocation2 + $0x8] sm:$0xff] %vm885_vm3, %v877_v46 }
 0x10b   : > { %891 = vst.msk [vmem:[#allocation2 + $0x28] sm:$0xff] %vm885_vm3, %v881_v47 }
 0x10c PF: > { %vm907_vm4 = vcmask 261120   ;;  %v898_v49 = vld [vmem:[#allocation2 + $0x10] sm:$0xff]  ;;  %vm932_vm5 = vcmask 253952   ;;  %v904_v0 = vld [vmem:[#allocation2 + $0x40] sm:$0x1]  ;;  %v5044_v47 = vld [vmem:[%s5562_s17 + $0x8] sm:$0xff]   ;;  %s7296_s19 = scalar_lea.vmem %s7222_s7, %s5545_s27  ;;  %s7334_s24 = scalar_lea.vmem %s7224_s9, %s5545_s27 }
 0x10d   : > { %v896_v48 = vld [vmem:[#allocation2] sm:$0xff]  ;;  %v914_v52 = vsel %vm907_vm4, %v898_v49, 0.0  ;;  %v902_v56 = vld [vmem:[#allocation2 + $0x30] sm:$0xff]  ;;  %v933_v1 = vsel %vm932_vm5, %v904_v0, 0.0  ;;  %vm5364_vm6 = vmmov 0   ;;  %s5365_s29 = smov 120  }
 0x10e   : > { %v908_v51 = vsel %vm907_vm4, %v896_v48, 0.0  ;;  %v900_v54 = vld [vmem:[#allocation2 + $0x20] sm:$0xff]  ;;  %915 = vadd.xlane.f32.xlu1 %v914_v52  ;;  %v926_v62 = vsel %vm907_vm4, %v902_v56, 0.0  ;;  %s5366_s15 = smov 112   ;;  %s5367_s16 = smov 104   ;;  %vm1249_vm7 = vcmask 64512  }
 0x10f   : > { %v899_v53 = vld [vmem:[#allocation2 + $0x18] sm:$0xff]  ;;  %909 = vadd.xlane.f32.xlu0 %v908_v51  ;;  %v920_v60 = vsel %vm907_vm4, %v900_v54, 0.0  ;;  %s5368_s2 = smov 96   ;;  %s5369_s23 = smov 64   ;;  %vm2375_vm8 = vcmask 1040384   ;;  %vm1924_vm9 = vcmask 531456  }
 0x110   : > { %v903_v57 = vld [vmem:[#allocation2 + $0x38] sm:$0xff]  ;;  %v917_v59 = vsel %vm907_vm4, %v899_v53, 0.0  ;;  %vm1949_vm10 = vcmask 524288   ;;  %s5370_s22 = smov 8   ;;  %s5371_s18 = smov 16   ;;  %vm3100_vm11 = vcmask 130048  }
 0x111   : > { %v897_v50 = vld [vmem:[#allocation2 + $0x8] sm:$0xff]  ;;  %v929_v63 = vsel %vm907_vm4, %v903_v57, 0.0  ;;  %s5372_s0 = smov 24   ;;  %vm3110_vm12 = vcmask 195584   ;;  %p4194_p1 = scmp.ne.s32.totalorder %s5345_s30, 1 }
 0x112   : > { %v901_v55 = vld [vmem:[#allocation2 + $0x28] sm:$0xff]  ;;  %v911_v58 = vsel %vm907_vm4, %v897_v50, 0.0  ;;  %918 = vadd.xlane.f32.xlu1 %v917_v59  ;;  %s7335_s8 = sld [smem:[#allocation44_spill]] (!%p4194_p1) }
 0x113   : > { %v923_v61 = vsel %vm907_vm4, %v901_v55, 0.0  ;;  %912 = vadd.xlane.f32.xlu0 %v911_v58 }
 0x116   : > { %924 = vadd.xlane.f32.xlu1 %v923_v61 }
 0x117   : > { %921 = vadd.xlane.f32.xlu0 %v920_v60 }
 0x11a   : > { %930 = vadd.xlane.f32.xlu1 %v929_v63 }
 0x11b   : > { %927 = vadd.xlane.f32.xlu0 %v926_v62 }
 0x11f   : > { %934 = vadd.xlane.f32.xlu0 %v933_v1 }
 0x197   : > { %v916_v3 = vpop.xlane.xlu1 %915 }
 0x198   : > { %v910_v2 = vpop.xlane.xlu0 %909  ;;  %v939_v5 = vmul.f32 0.03125, %v916_v3 }
 0x199   : > { %v937_v4 = vmul.f32 0.03125, %v910_v2 }
 0x19a   : > { %v5670_v7 = vsub.f32 %v898_v49, %v939_v5  ;;  %v5045_v49 = vld [vmem:[%s5562_s17] sm:$0xff]   ;;  %s7295_s17 = sld [smem:[#allocation17_spill]] }
 0x19b   : > { %v5668_v6 = vsub.f32 %v896_v48, %v937_v4  ;;  %v919_v9 = vpop.xlane.xlu1 %918  ;;  %v7250_v48 = vmov 0.0  }
 0x19c   : > { %v913_v8 = vpop.xlane.xlu0 %912  ;;  %v940_v11 = vmul.f32 0.03125, %v919_v9  ;;  %v957_v13 = vmul.f32 %v5670_v7, %v5670_v7  ;;  %4402 = vmatprep.subr.bf16.mxu0 %v7250_v48  ;;  %4406 = vmatprep.mubr.msk.bf16.mxu0 %vm5364_vm6, %v7250_v48 }
 0x19d   : > { %v938_v10 = vmul.f32 0.03125, %v913_v8  ;;  %v955_v12 = vmul.f32 %v5668_v6, %v5668_v6  ;;  %4403 = vmatpush3.bf16.msra.mxu0 %v5044_v47  ;;  %4426 = vmatprep.subr.mxu1 %v7250_v48 }
 0x19e   : > { %v5678_v15 = vsub.f32 %v899_v53, %v940_v11  ;;  %v970_v19 = vsel %vm907_vm4, %v957_v13, 0.0  ;;  %4404 = vmatprep.subr.bf16.mxu0 %v7250_v48  ;;  %4444 = vmatprep.mubr.msk.f32.mxu1 %vm5364_vm6, %v7250_v48 }
 0x19f   : > { %v5676_v14 = vsub.f32 %v897_v50, %v938_v10  ;;  %v964_v16 = vsel %vm907_vm4, %v955_v12, 0.0  ;;  %v925_v18 = vpop.xlane.xlu1 %924 }
 0x1a0   : > { %965 = vadd.xlane.f32.xlu1 %v964_v16  ;;  %v922_v17 = vpop.xlane.xlu0 %921  ;;  %v942_v21 = vmul.f32 0.03125, %v925_v18  ;;  %v958_v23 = vmul.f32 %v5678_v15, %v5678_v15  ;;  %v4045_v12 = vld [vmem:[%s7295_s17] ss:$0 sm:$0xff] }
 0x1a1   : > { %v941_v20 = vmul.f32 0.03125, %v922_v17  ;;  %v956_v22 = vmul.f32 %v5676_v14, %v5676_v14  ;;  %4405 = vmatpush3.bf16.msra.mxu0 %v5045_v49 }
 0x1a2   : > { %v5688_v25 = vsub.f32 %v901_v55, %v942_v21  ;;  %v973_v29 = vsel %vm907_vm4, %v958_v23, 0.0  ;;  %4471 = vmatprep.subr.mxu0 %v7250_v48 }
 0x1a3   : > { %v5686_v24 = vsub.f32 %v900_v54, %v941_v20  ;;  %v967_v26 = vsel %vm907_vm4, %v956_v22, 0.0  ;;  %v931_v28 = vpop.xlane.xlu1 %930  ;;  %v4046_v22 = vld [vmem:[%s7295_s17 + $0x1] ss:$0 sm:$0xff] }
 0x1a4   : > { %971 = vadd.xlane.f32.xlu1 %v970_v19  ;;  %968 = vadd.xlane.f32.xlu0 %v967_v26  ;;  %v928_v27 = vpop.xlane.xlu0 %927  ;;  %v944_v31 = vmul.f32 0.03125, %v931_v28  ;;  %v960_v33 = vmul.f32 %v5688_v25, %v5688_v25 }
 0x1a5   : > { %v943_v30 = vmul.f32 0.03125, %v928_v27  ;;  %v959_v32 = vmul.f32 %v5686_v24, %v5686_v24 }
 0x1a6   : > { %v5698_v35 = vsub.f32 %v903_v57, %v944_v31  ;;  %v979_v39 = vsel %vm907_vm4, %v960_v33, 0.0 }
 0x1a7   : > { %v5696_v34 = vsub.f32 %v902_v56, %v943_v30  ;;  %v976_v36 = vsel %vm907_vm4, %v959_v32, 0.0 }
 0x1a8   : > { %974 = vadd.xlane.f32.xlu0 %v973_v29  ;;  %977 = vadd.xlane.f32.xlu1 %v976_v36  ;;  %v935_v37 = vpop.xlane.xlu0 %934  ;;  %v962_v41 = vmul.f32 %v5698_v35, %v5698_v35 }
 0x1a9   : > { %v945_v38 = vmul.f32 0.03125, %v935_v37  ;;  %v961_v40 = vmul.f32 %v5696_v34, %v5696_v34 }
 0x1aa   : > { %v985_v44 = vsel %vm907_vm4, %v962_v41, 0.0 }
 0x1ab   : > { %v5706_v42 = vsub.f32 %v904_v0, %v945_v38  ;;  %v982_v43 = vsel %vm907_vm4, %v961_v40, 0.0 }
 0x1ac   : > { %980 = vadd.xlane.f32.xlu0 %v979_v39  ;;  %983 = vadd.xlane.f32.xlu1 %v982_v43 }
 0x1ad   : > { %v963_v45 = vmul.f32 %v5706_v42, %v5706_v42 }
 0x1af   : > { %v988_v46 = vsel %vm932_vm5, %v963_v45, 0.0 }
 0x1b0   : > { %986 = vadd.xlane.f32.xlu0 %v985_v44  ;;  %989 = vadd.xlane.f32.xlu1 %v988_v46 }
 0x229   : > { %v966_v50 = vpop.xlane.xlu1 %965 }
 0x22a   : > { %v991_v51 = vmul.f32 0.03125, %v966_v50 }
 0x22c   : > { %v1000_v52 = vadd.f32 1e-05, %v991_v51 }
 0x22d   : > { %v972_v53 = vpop.xlane.xlu1 %971  ;;  %v969_v54 = vpop.xlane.xlu0 %968 }
 0x22e   : > { %5058 = vrsqrt.f32 %v1000_v52  ;;  %v993_v55 = vmul.f32 0.03125, %v972_v53  ;;  %v992_v56 = vmul.f32 0.03125, %v969_v54 }
 0x230   : > { %v1001_v57 = vadd.f32 1e-05, %v992_v56  ;;  %v1002_v58 = vadd.f32 1e-05, %v993_v55 }
 0x231   : > { %v975_v59 = vpop.xlane.xlu0 %974  ;;  %v978_v60 = vpop.xlane.xlu1 %977 }
 0x232   : > { %v994_v61 = vmul.f32 0.03125, %v975_v59  ;;  %5060 = vrsqrt.f32 %v1001_v57  ;;  %v995_v63 = vmul.f32 0.03125, %v978_v60 }
 0x233   : > { %5062 = vrsqrt.f32 %v1002_v58 }
 0x234   : > { %v1003_v62 = vadd.f32 1e-05, %v994_v61  ;;  %v1004_v3 = vadd.f32 1e-05, %v995_v63 }
 0x235   : > { %v981_v0 = vpop.xlane.xlu0 %980  ;;  %v984_v4 = vpop.xlane.xlu1 %983 }
 0x236   : > { %v996_v1 = vmul.f32 0.03125, %v981_v0  ;;  %5064 = vrsqrt.f32 %v1003_v62  ;;  %v997_v10 = vmul.f32 0.03125, %v984_v4 }
 0x238   : > { %v1005_v2 = vadd.f32 1e-05, %v996_v1  ;;  %v1006_v17 = vadd.f32 1e-05, %v997_v10 }
 0x239   : > { %v987_v5 = vpop.xlane.xlu0 %986  ;;  %v990_v18 = vpop.xlane.xlu1 %989 }
 0x23a   : > { %5066 = vrsqrt.f32 %v1005_v2  ;;  %v998_v9 = vmul.f32 0.03125, %v987_v5  ;;  %v999_v23 = vmul.f32 0.03125, %v990_v18 }
 0x23b   : > { %v5059_v8 = vpop.eup %5058  ;;  %5068 = vrsqrt.f32 %v1004_v3  ;;  %v4047_v3 = vld [vmem:[%s7296_s19] ss:$0 sm:$0xff] }
 0x23c   : > { %v1018_v11 = vmul.f32 %v5059_v8, %v5668_v6  ;;  %v1007_v13 = vadd.f32 1e-05, %v998_v9  ;;  %v1008_v31 = vadd.f32 1e-05, %v999_v23 }
 0x23e   : > { %v1031_v20 = vmul.f32 %v4045_v12, %v1018_v11  ;;  %5070 = vrsqrt.f32 %v1007_v13 }
 0x23f   : > { %v5061_v16 = vpop.eup %5060  ;;  %5072 = vrsqrt.f32 %v1006_v17 }
 0x240   : > { %v1019_v19 = vmul.f32 %v5061_v16, %v5676_v14  ;;  %v5063_v21 = vpop.eup %5062  ;;  %v1044_v28 = vadd.f32 %v4046_v22, %v1031_v20  ;;  %5074 = vrsqrt.f32 %v1008_v31 }
 0x241   : > { %v1020_v30 = vmul.f32 %v5063_v21, %v5670_v7 }
 0x242   : > { %v1032_v26 = vmul.f32 %v4045_v12, %v1019_v19 }
 0x243   : > { %v5065_v27 = vpop.eup %5064  ;;  %v1033_v14 = vmul.f32 %v4045_v12, %v1020_v30 }
 0x244   : > { %v1045_v29 = vadd.f32 %v4046_v22, %v1032_v26  ;;  %v1021_v6 = vmul.f32 %v5065_v27, %v5678_v15 }
 0x245   : > { %v1046_v40 = vadd.f32 %v4046_v22, %v1033_v14 }
 0x246   : > { %v1058_v32 = vpack.c.bf16 %v1045_v29, %v1044_v28  ;;  %v1034_v33 = vmul.f32 %v4045_v12, %v1021_v6 }
 0x247   : > { %v5067_v36 = vpop.eup %5066 }
 0x248   : > { %4407 = vmatmul.mubr.msk.bf16.vlgmr.msra.gmra.mxu0 %vm907_vm4, %v1058_v32  ;;  %v5069_v37 = vpop.eup %5068  ;;  %v1047_v38 = vadd.f32 %v4046_v22, %v1034_v33  ;;  %v1023_v39 = vmul.f32 %v5067_v36, %v5688_v25 }
 0x249   : > { %4410 = vmatprep.mubr.msk.bf16.mxu0 %vm5364_vm6, %v7250_v48  ;;  %v1022_v7 = vmul.f32 %v5069_v37, %v5686_v24 }
 0x24a   : > { %v1059_v41 = vpack.c.bf16 %v1047_v38, %v1046_v40  ;;  %v1036_v15 = vmul.f32 %v4045_v12, %v1023_v39 }
 0x24b   : > { %v5071_v43 = vpop.eup %5070  ;;  %v1035_v45 = vmul.f32 %v4045_v12, %v1022_v7 }
 0x24c   : > { %v5073_v44 = vpop.eup %5072  ;;  %v1049_v46 = vadd.f32 %v4046_v22, %v1036_v15  ;;  %v1025_v47 = vmul.f32 %v5071_v43, %v5698_v35 }
 0x24d   : > { %v1048_v49 = vadd.f32 %v4046_v22, %v1035_v45  ;;  %v1024_v50 = vmul.f32 %v5073_v44, %v5696_v34  ;;  %v5075_v52 = vpop.eup %5074 }
 0x24e   : > { %v1038_v51 = vmul.f32 %v4045_v12, %v1025_v47  ;;  %v1026_v54 = vmul.f32 %v5075_v52, %v5706_v42 }
 0x24f   : > { %v1060_v25 = vpack.c.bf16 %v1049_v46, %v1048_v49  ;;  %v1037_v24 = vmul.f32 %v4045_v12, %v1024_v50 }
 0x250   : > { %4411 = vmatmul.mubr.msk.bf16.gmra.mxu0 %vm907_vm4, %v1059_v41  ;;  %v1051_v53 = vadd.f32 %v4046_v22, %v1038_v51  ;;  %v1039_v57 = vmul.f32 %v4045_v12, %v1026_v54 }
 0x251   : > { %4414 = vmatprep.mubr.msk.bf16.mxu0 %vm5364_vm6, %v7250_v48  ;;  %v1050_v55 = vadd.f32 %v4046_v22, %v1037_v24 }
 0x252   : > { %v1052_v34 = vadd.f32 %v4046_v22, %v1039_v57 }
 0x253   : > { %v1061_v56 = vpack.c.bf16 %v1051_v53, %v1050_v55 }
 0x254   : > { %v1062_v35 = vpack.c.bf16 %v1052_v34, %v1052_v34 }
 0x258   : > { %4415 = vmatmul.mubr.msk.bf16.gmra.mxu0 %vm907_vm4, %v1060_v25 }
 0x259   : > { %4418 = vmatprep.mubr.msk.bf16.mxu0 %vm5364_vm6, %v7250_v48 }
 0x260   : > { %4419 = vmatmul.mubr.msk.bf16.gmra.mxu0 %vm907_vm4, %v1061_v56 }
 0x261   : > { %4422 = vmatprep.mubr.msk.bf16.mxu0 %vm5364_vm6, %v7250_v48 }
 0x268   : > { %4423 = vmatmul.mubr.msk.bf16.gmra.mxu0 %vm907_vm4, %v1062_v35 }
 0x269   : > { %4489 = vmatprep.mubr.msk.f32.mxu0 %vm5364_vm6, %v7250_v48 }
 0x308   : > { %v1130_v58 = vpop.f32.mrf.mxu0 }
 0x309   : > { %v5779_v28 = vadd.f32 %v4047_v3, %v1130_v58 }
 0x30a   : > { %v4408_v59 = vpop.f32.mrf.mxu0 }
 0x30c   : > { %v1133_v60 = vpop.f32.mrf.mxu0 }
 0x30d   : > { %v5769_v22 = vadd.f32 %v4047_v3, %v1133_v60 }
 0x30e   : > { %v4409_v42 = vpop.f32.mrf.mxu0 }
 0x310   : > { %v1138_v61 = vpop.f32.mrf.mxu0 }
 0x311   : > { %v5775_v27 = vadd.f32 %v4047_v3, %v1138_v61 }
 0x312   : > { %v4412_v62 = vpop.f32.mrf.mxu0 }
 0x314   : > { %v1141_v63 = vpop.f32.mrf.mxu0 }
 0x315   : > { %v5763_v18 = vadd.f32 %v4047_v3, %v1141_v63 }
 0x316   : > { %v4413_v0 = vpop.f32.mrf.mxu0 }
 0x318   : > { %v1146_v1 = vpop.f32.mrf.mxu0 }
 0x319   : > { %v5771_v23 = vadd.f32 %v4047_v3, %v1146_v1 }
 0x31a   : > { %v4416_v2 = vpop.f32.mrf.mxu0 }
 0x31c   : > { %v1149_v4 = vpop.f32.mrf.mxu0 }
 0x31d   : > { %v5754_v5 = vadd.f32 %v4047_v3, %v1149_v4 }
 0x31e   : > { %v4417_v8 = vpop.f32.mrf.mxu0 }
 0x31f   : > { %1187 = vrot.lane.b32.xlu1 %v5754_v5, %s5365_s29 }
 0x320   : > { %v1154_v9 = vpop.f32.mrf.mxu0 }
 0x321   : > { %v5757_v10 = vadd.f32 %v4047_v3, %v1154_v9 }
 0x322   : > { %v4420_v11 = vpop.f32.mrf.mxu0 }
 0x323   : > { %1189 = vrot.lane.b32.xlu1 %v5757_v10, %s5365_s29 }
 0x324   : > { %v1157_v12 = vpop.f32.mrf.mxu0 }
 0x325   : > { %v5760_v13 = vadd.f32 %v4047_v3, %v1157_v12 }
 0x326   : > { %v4421_v16 = vpop.f32.mrf.mxu0 }
 0x327   : > { %1191 = vrot.lane.b32.xlu1 %v5760_v13, %s5365_s29 }
 0x328   : > { %v1162_v17 = vpop.f32.mrf.mxu0 }
 0x329   : > { %v5765_v19 = vadd.f32 %v4047_v3, %v1162_v17 }
 0x32a   : > { %v4424_v20 = vpop.f32.mrf.mxu0 }
 0x32b   : > { %1183 = vrot.lane.b32.xlu1 %v5763_v18, %s5365_s29  ;;  %1193 = vrot.lane.b32.xlu0 %v5765_v19, %s5365_s29 }
 0x32c   : > { %v1165_v21 = vpop.f32.mrf.mxu0 }
 0x32e   : > { %v4425_v26 = vpop.f32.mrf.mxu0 }
 0x32f   : > { %1179 = vrot.lane.b32.xlu1 %v5769_v22, %s5365_s29  ;;  %1185 = vrot.lane.b32.xlu0 %v5771_v23, %s5365_s29 }
 0x333   : > { %1209 = vrot.lane.b32.xlu1 %v5760_v13, %s5366_s15  ;;  %1181 = vrot.lane.b32.xlu0 %v5775_v27, %s5365_s29 }
 0x337   : > { %1225 = vrot.lane.b32.xlu1 %v5757_v10, %s5367_s16  ;;  %1177 = vrot.lane.b32.xlu0 %v5779_v28, %s5365_s29 }
 0x33b   : > { %1205 = vrot.lane.b32.xlu1 %v5754_v5, %s5366_s15  ;;  %1227 = vrot.lane.b32.xlu0 %v5760_v13, %s5367_s16 }
 0x33f   : > { %1243 = vrot.lane.b32.xlu1 %v5757_v10, %s5368_s2  ;;  %1207 = vrot.lane.b32.xlu0 %v5757_v10, %s5366_s15 }
 0x343   : > { %1221 = vrot.lane.b32.xlu1 %v5771_v23, %s5367_s16  ;;  %1245 = vrot.lane.b32.xlu0 %v5760_v13, %s5368_s2 }
 0x347   : > { %1211 = vrot.lane.b32.xlu1 %v5765_v19, %s5366_s15  ;;  %1223 = vrot.lane.b32.xlu0 %v5754_v5, %s5367_s16 }
 0x34b   : > { %1201 = vrot.lane.b32.xlu1 %v5763_v18, %s5366_s15  ;;  %1203 = vrot.lane.b32.xlu0 %v5771_v23, %s5366_s15 }
 0x34f   : > { %1247 = vrot.lane.b32.xlu1 %v5765_v19, %s5368_s2  ;;  %1229 = vrot.lane.b32.xlu0 %v5765_v19, %s5367_s16 }
 0x353   : > { %1239 = vrot.lane.b32.xlu1 %v5771_v23, %s5368_s2  ;;  %1241 = vrot.lane.b32.xlu0 %v5754_v5, %s5368_s2 }
 0x357   : > { %1199 = vrot.lane.b32.xlu1 %v5775_v27, %s5366_s15  ;;  %1219 = vrot.lane.b32.xlu0 %v5763_v18, %s5367_s16 }
 0x35b   : > { %1237 = vrot.lane.b32.xlu1 %v5763_v18, %s5368_s2  ;;  %1217 = vrot.lane.b32.xlu0 %v5775_v27, %s5367_s16 }
 0x35f   : > { %1197 = vrot.lane.b32.xlu1 %v5769_v22, %s5366_s15  ;;  %1215 = vrot.lane.b32.xlu0 %v5769_v22, %s5367_s16 }
 0x363   : > { %1235 = vrot.lane.b32.xlu1 %v5775_v27, %s5368_s2 }
 0x367   : > { %1195 = vrot.lane.b32.xlu1 %v5779_v28, %s5366_s15 }
 0x36b   : > { %1233 = vrot.lane.b32.xlu1 %v5769_v22, %s5368_s2 }
 0x36f   : > { %1231 = vrot.lane.b32.xlu1 %v5779_v28, %s5368_s2 }
 0x391   : > { %v5824_v29 = vpop.permute.xlu1 %1187 }
 0x395   : > { %v5826_v30 = vpop.permute.xlu1 %1189 }
 0x399   : > { %v5828_v6 = vpop.permute.xlu1 %1191 }
 0x39a   : > { %1410 = vrot.lane.b32.xlu0 %v5828_v6, %s5368_s2 }
 0x39d   : > { %v5832_v31 = vpop.permute.xlu1 %1183  ;;  %v5834_v32 = vpop.permute.xlu0 %1193 }
 0x39e   : > { %1402 = vrot.lane.b32.xlu1 %v5832_v31, %s5368_s2  ;;  %1412 = vrot.lane.b32.xlu0 %v5834_v32, %s5368_s2 }
 0x3a1   : > { %v5840_v33 = vpop.permute.xlu1 %1179  ;;  %v5842_v36 = vpop.permute.xlu0 %1185 }
 0x3a2   : > { %1398 = vrot.lane.b32.xlu1 %v5840_v33, %s5368_s2  ;;  %1408 = vrot.lane.b32.xlu0 %v5826_v30, %s5368_s2 }
 0x3a5   : > { %v5848_v14 = vpop.permute.xlu1 %1209  ;;  %v5850_v37 = vpop.permute.xlu0 %1181 }
 0x3a6   : > { %1213 = vrot.lane.b32.xlu0 %v5779_v28, %s5367_s16  ;;  %s7336_s16 = sld [smem:[#allocation43_spill]] (!%p4194_p1) }
 0x3a9   : > { %v5854_v38 = vpop.permute.xlu1 %1225  ;;  %v5856_v39 = vpop.permute.xlu0 %1177 }
 0x3aa   : > { %1406 = vrot.lane.b32.xlu0 %v5824_v29, %s5368_s2 }
 0x3ad   : > { %v5860_v40 = vpop.permute.xlu1 %1205  ;;  %v5862_v7 = vpop.permute.xlu0 %1227 }
 0x3ae   : > { %1404 = vrot.lane.b32.xlu0 %v5842_v36, %s5368_s2 }
 0x3b1   : > { %v1244_v41 = vpop.permute.xlu1 %1243  ;;  %v5866_v15 = vpop.permute.xlu0 %1207 }
 0x3b2   : > { %1400 = vrot.lane.b32.xlu0 %v5850_v37, %s5368_s2 }
 0x3b5   : > { %v5870_v43 = vpop.permute.xlu1 %1221  ;;  %v1246_v44 = vpop.permute.xlu0 %1245 }
 0x3b6   : > { %1396 = vrot.lane.b32.xlu0 %v5856_v39, %s5368_s2 }
 0x3b9   : > { %v5874_v45 = vpop.permute.xlu1 %1211  ;;  %v5876_v46 = vpop.permute.xlu0 %1223 }
 0x3ba   : > { %1576 = vrot.lane.b32.xlu1 %v5874_v45, %s5368_s2 }
 0x3bd   : > { %v5880_v47 = vpop.permute.xlu1 %1201  ;;  %v5882_v49 = vpop.permute.xlu0 %1203 }
 0x3be   : > { %1574 = vrot.lane.b32.xlu1 %v5848_v14, %s5368_s2 }
 0x3c1   : > { %v1248_v50 = vpop.permute.xlu1 %1247  ;;  %v5886_v25 = vpop.permute.xlu0 %1229 }
 0x3c2   : > { %4427 = vmatpush3.xpose.msk.msra.mxu1 %vm1249_vm7, %v1248_v50  ;;  %1572 = vrot.lane.b32.xlu1 %v5866_v15, %s5368_s2 }
 0x3c3   : > { %1740 = vrot.lane.b32.xlu0 %v5886_v25, %s5368_s2  ;;  %4428 = vmatprep.subr.mxu1 %v7250_v48 }
 0x3c5   : > { %v1240_v51 = vpop.permute.xlu1 %1239  ;;  %v1242_v24 = vpop.permute.xlu0 %1241 }
 0x3c6   : > { %1570 = vrot.lane.b32.xlu1 %v5860_v40, %s5368_s2  ;;  %4429 = vmatpush3.xpose.msk.msra.mxu1 %vm1249_vm7, %v1246_v44 }
 0x3c7   : > { %1738 = vrot.lane.b32.xlu0 %v5862_v7, %s5368_s2  ;;  %4430 = vmatprep.subr.mxu1 %v7250_v48 }
 0x3c9   : > { %v5900_v52 = vpop.permute.xlu1 %1199  ;;  %v5916_v55 = vpop.permute.xlu0 %1219 }
 0x3ca   : > { %4431 = vmatpush3.xpose.msk.msra.mxu1 %vm1249_vm7, %v1244_v41  ;;  %1568 = vrot.lane.b32.xlu1 %v5882_v49, %s5368_s2 }
 0x3cb   : > { %1736 = vrot.lane.b32.xlu0 %v5854_v38, %s5368_s2  ;;  %4432 = vmatprep.subr.mxu1 %v7250_v48 }
 0x3cd   : > { %v1238_v53 = vpop.permute.xlu1 %1237  ;;  %v5930_v57 = vpop.permute.xlu0 %1217 }
 0x3ce   : > { %1566 = vrot.lane.b32.xlu1 %v5880_v47, %s5368_s2  ;;  %4433 = vmatpush3.xpose.msk.msra.mxu1 %vm1249_vm7, %v1242_v24 }
 0x3cf   : > { %1734 = vrot.lane.b32.xlu0 %v5876_v46, %s5368_s2  ;;  %4434 = vmatprep.subr.mxu1 %v7250_v48 }
 0x3d1   : > { %v5914_v54 = vpop.permute.xlu1 %1197  ;;  %v5940_v58 = vpop.permute.xlu0 %1215 }
 0x3d2   : > { %1564 = vrot.lane.b32.xlu1 %v5900_v52, %s5368_s2  ;;  %4435 = vmatpush3.xpose.msk.msra.mxu1 %vm1249_vm7, %v1240_v51 }
 0x3d3   : > { %1732 = vrot.lane.b32.xlu0 %v5870_v43, %s5368_s2  ;;  %4436 = vmatprep.subr.mxu1 %v7250_v48 }
 0x3d5   : > { %v1236_v56 = vpop.permute.xlu1 %1235 }
 0x3d6   : > { %1562 = vrot.lane.b32.xlu1 %v5914_v54, %s5368_s2  ;;  %4437 = vmatpush3.xpose.msk.msra.mxu1 %vm1249_vm7, %v1238_v53 }
 0x3d7   : > { %1730 = vrot.lane.b32.xlu0 %v5916_v55, %s5368_s2  ;;  %4438 = vmatprep.subr.mxu1 %v7250_v48 }
 0x3d9   : > { %v5932_v34 = vpop.permute.xlu1 %1195 }
 0x3da   : > { %1560 = vrot.lane.b32.xlu1 %v5932_v34, %s5368_s2  ;;  %4439 = vmatpush3.xpose.msk.msra.mxu1 %vm1249_vm7, %v1236_v56 }
 0x3db   : > { %1728 = vrot.lane.b32.xlu0 %v5930_v57, %s5368_s2  ;;  %4440 = vmatprep.subr.mxu1 %v7250_v48 }
 0x3dd   : > { %v1234_v35 = vpop.permute.xlu1 %1233 }
 0x3de   : > { %2336 = vrot.lane.b32.xlu1 %v5760_v13, %s5369_s23  ;;  %4441 = vmatpush3.xpose.msk.msra.mxu1 %vm1249_vm7, %v1234_v35 }
 0x3df   : > { %1726 = vrot.lane.b32.xlu0 %v5940_v58, %s5368_s2  ;;  %4442 = vmatprep.subr.mxu1 %v7250_v48 }
 0x3e1   : > { %v1232_v59 = vpop.permute.xlu1 %1231 }
 0x3e2   : > { %2330 = vrot.lane.b32.xlu1 %v5771_v23, %s5369_s23  ;;  %4443 = vmatpush3.xpose.msk.msra.mxu1 %vm1249_vm7, %v1232_v59 }
 0x3e3   : > { %4516 = vmatprep.subr.mxu1 %v7250_v48 }
 0x3e5   : > { %4445 = vmatmul.mubr.msk.f32.vlgmr.msra.gmra.mxu1 %vm1249_vm7, %v5779_v28 }
 0x3e6   : > { %2322 = vrot.lane.b32.xlu1 %v5779_v28, %s5369_s23  ;;  %4447 = vmatprep.mubr.msk.f32.mxu1 %vm5364_vm6, %v7250_v48 }
 0x3e9   : > { %4448 = vmatmul.mubr.msk.f32.gmra.mxu1 %vm1249_vm7, %v5769_v22 }
 0x3ea   : > { %2500 = vrot.lane.b32.xlu1 %v5826_v30, %s5369_s23  ;;  %4450 = vmatprep.mubr.msk.f32.mxu1 %vm5364_vm6, %v7250_v48 }
 0x3ed   : > { %4451 = vmatmul.mubr.msk.f32.gmra.mxu1 %vm1249_vm7, %v5775_v27 }
 0x3ee   : > { %2496 = vrot.lane.b32.xlu1 %v5842_v36, %s5369_s23  ;;  %4453 = vmatprep.mubr.msk.f32.mxu1 %vm5364_vm6, %v7250_v48 }
 0x3f1   : > { %4454 = vmatmul.mubr.msk.f32.gmra.mxu1 %vm1249_vm7, %v5763_v18 }
 0x3f2   : > { %2492 = vrot.lane.b32.xlu1 %v5850_v37, %s5369_s23  ;;  %4456 = vmatprep.mubr.msk.f32.mxu1 %vm5364_vm6, %v7250_v48 }
 0x3f5   : > { %4457 = vmatmul.mubr.msk.f32.gmra.mxu1 %vm1249_vm7, %v5771_v23 }
 0x3f6   : > { %2488 = vrot.lane.b32.xlu1 %v5856_v39, %s5369_s23  ;;  %4459 = vmatprep.mubr.msk.f32.mxu1 %vm5364_vm6, %v7250_v48 }
 0x3f9   : > { %4460 = vmatmul.mubr.msk.f32.gmra.mxu1 %vm1249_vm7, %v5754_v5 }
 0x3fa   : > { %2667 = vrot.lane.b32.xlu1 %v5848_v14, %s5369_s23  ;;  %4462 = vmatprep.mubr.msk.f32.mxu1 %vm5364_vm6, %v7250_v48 }
 0x3fd   : > { %4463 = vmatmul.mubr.msk.f32.gmra.mxu1 %vm1249_vm7, %v5757_v10 }
 0x3fe   : > { %2832 = vrot.lane.b32.xlu1 %v5862_v7, %s5369_s23  ;;  %4465 = vmatprep.mubr.msk.f32.mxu1 %vm5364_vm6, %v7250_v48 }
 0x401   : > { %4466 = vmatmul.mubr.msk.f32.gmra.mxu1 %vm1249_vm7, %v5760_v13 }
 0x402   : > { %2665 = vrot.lane.b32.xlu1 %v5866_v15, %s5369_s23  ;;  %4468 = vmatprep.mubr.msk.f32.mxu1 %vm5364_vm6, %v7250_v48 }
 0x405   : > { %4469 = vmatmul.mubr.msk.f32.gmra.mxu1 %vm1249_vm7, %v5765_v19 }
 0x406   : > { %2663 = vrot.lane.b32.xlu1 %v5860_v40, %s5369_s23  ;;  %4534 = vmatprep.mubr.msk.f32.mxu1 %vm5364_vm6, %v7250_v48 }
 0x40a   : > { %2826 = vrot.lane.b32.xlu1 %v5870_v43, %s5369_s23 }
 0x40c   : > { %v1411_v60 = vpop.permute.xlu0 %1410 }
 0x40e   : > { %2824 = vrot.lane.b32.xlu1 %v5916_v55, %s5369_s23 }
 0x410   : > { %v1413_v42 = vpop.permute.xlu0 %1412  ;;  %v1403_v1 = vpop.permute.xlu1 %1402 }
 0x411   : > { %4472 = vmatpush3.xpose.msk.msra.mxu0 %vm1249_vm7, %v1413_v42 }
 0x412   : > { %2822 = vrot.lane.b32.xlu1 %v5930_v57, %s5369_s23  ;;  %4473 = vmatprep.subr.mxu0 %v7250_v48 }
 0x414   : > { %v1409_v61 = vpop.permute.xlu0 %1408  ;;  %v1399_v2 = vpop.permute.xlu1 %1398 }
 0x415   : > { %4474 = vmatpush3.xpose.msk.msra.mxu0 %vm1249_vm7, %v1411_v60 }
 0x416   : > { %2834 = vrot.lane.b32.xlu1 %v5886_v25, %s5369_s23  ;;  %4475 = vmatprep.subr.mxu0 %v7250_v48 }
 0x418   : > { %v6018_v62 = vpop.permute.xlu0 %1213 }
 0x419   : > { %4476 = vmatpush3.xpose.msk.msra.mxu0 %vm1249_vm7, %v1409_v61  ;;  %1724 = vrot.lane.b32.xlu0 %v6018_v62, %s5368_s2 }
 0x41a   : > { %4477 = vmatprep.subr.mxu0 %v7250_v48 }
 0x41c   : > { %v1407_v63 = vpop.permute.xlu0 %1406 }
 0x41d   : > { %2338 = vrot.lane.b32.xlu0 %v5765_v19, %s5369_s23  ;;  %4478 = vmatpush3.xpose.msk.msra.mxu0 %vm1249_vm7, %v1407_v63 }
 0x41e   : > { %4479 = vmatprep.subr.mxu0 %v7250_v48 }
 0x420   : > { %v1405_v0 = vpop.permute.xlu0 %1404 }
 0x421   : > { %2334 = vrot.lane.b32.xlu0 %v5757_v10, %s5369_s23  ;;  %4480 = vmatpush3.xpose.msk.msra.mxu0 %vm1249_vm7, %v1405_v0 }
 0x422   : > { %4481 = vmatprep.subr.mxu0 %v7250_v48 }
 0x424   : > { %v1401_v3 = vpop.permute.xlu0 %1400 }
 0x425   : > { %2332 = vrot.lane.b32.xlu0 %v5754_v5, %s5369_s23  ;;  %4482 = vmatpush3.xpose.msk.msra.mxu0 %vm1249_vm7, %v1403_v1 }
 0x426   : > { %4483 = vmatprep.subr.mxu0 %v7250_v48 }
 0x428   : > { %v1397_v8 = vpop.permute.xlu0 %1396 }
 0x429   : > { %2328 = vrot.lane.b32.xlu0 %v5763_v18, %s5369_s23  ;;  %4484 = vmatpush3.xpose.msk.msra.mxu0 %vm1249_vm7, %v1401_v3 }
 0x42a   : > { %4485 = vmatprep.subr.mxu0 %v7250_v48 }
 0x42c   : > { %v1577_v4 = vpop.permute.xlu1 %1576 }
 0x42d   : > { %4517 = vmatpush3.xpose.msk.msra.mxu1 %vm1249_vm7, %v1577_v4  ;;  %2326 = vrot.lane.b32.xlu0 %v5775_v27, %s5369_s23 }
 0x42e   : > { %4486 = vmatpush3.xpose.msk.msra.mxu0 %vm1249_vm7, %v1399_v2  ;;  %4518 = vmatprep.subr.mxu1 %v7250_v48 }
 0x42f   : > { %4487 = vmatprep.subr.mxu0 %v7250_v48 }
 0x430   : > { %v1575_v5 = vpop.permute.xlu1 %1574 }
 0x431   : > { %4519 = vmatpush3.xpose.msk.msra.mxu1 %vm1249_vm7, %v1575_v5  ;;  %2324 = vrot.lane.b32.xlu0 %v5769_v22, %s5369_s23 }
 0x432   : > { %4488 = vmatpush3.xpose.msk.msra.mxu0 %vm1249_vm7, %v1397_v8  ;;  %4520 = vmatprep.subr.mxu1 %v7250_v48 }
 0x433   : > { %4561 = vmatprep.subr.mxu0 %v7250_v48 }
 0x434   : > { %v1573_v9 = vpop.permute.xlu1 %1572 }
 0x435   : > { %4490 = vmatmul.mubr.msk.f32.vlgmr.msra.gmra.mxu0 %vm1249_vm7, %v5856_v39  ;;  %v1741_v10 = vpop.permute.xlu0 %1740  ;;  %4521 = vmatpush3.xpose.msk.msra.mxu1 %vm1249_vm7, %v1573_v9 }
 0x436   : > { %2502 = vrot.lane.b32.xlu0 %v5828_v6, %s5369_s23  ;;  %4562 = vmatpush3.xpose.msk.msra.mxu0 %vm1249_vm7, %v1741_v10 }
 0x437   : > { %4492 = vmatprep.mubr.msk.f32.mxu0 %vm5364_vm6, %v7250_v48  ;;  %4522 = vmatprep.subr.mxu1 %v7250_v48 }
 0x438   : > { %v1571_v11 = vpop.permute.xlu1 %1570  ;;  %4563 = vmatprep.subr.mxu0 %v7250_v48 }
 0x439   : > { %4493 = vmatmul.mubr.msk.f32.gmra.mxu0 %vm1249_vm7, %v5840_v33  ;;  %v1739_v12 = vpop.permute.xlu0 %1738  ;;  %4523 = vmatpush3.xpose.msk.msra.mxu1 %vm1249_vm7, %v1571_v11 }
 0x43a   : > { %2498 = vrot.lane.b32.xlu0 %v5824_v29, %s5369_s23  ;;  %4564 = vmatpush3.xpose.msk.msra.mxu0 %vm1249_vm7, %v1739_v12 }
 0x43b   : > { %4495 = vmatprep.mubr.msk.f32.mxu0 %vm5364_vm6, %v7250_v48  ;;  %4524 = vmatprep.subr.mxu1 %v7250_v48 }
 0x43c   : > { %v1569_v13 = vpop.permute.xlu1 %1568  ;;  %4565 = vmatprep.subr.mxu0 %v7250_v48 }
 0x43d   : > { %4496 = vmatmul.mubr.msk.f32.gmra.mxu0 %vm1249_vm7, %v5850_v37  ;;  %v1737_v16 = vpop.permute.xlu0 %1736  ;;  %4525 = vmatpush3.xpose.msk.msra.mxu1 %vm1249_vm7, %v1569_v13 }
 0x43e   : > { %2494 = vrot.lane.b32.xlu0 %v5832_v31, %s5369_s23  ;;  %4566 = vmatpush3.xpose.msk.msra.mxu0 %vm1249_vm7, %v1737_v16 }
 0x43f   : > { %4498 = vmatprep.mubr.msk.f32.mxu0 %vm5364_vm6, %v7250_v48  ;;  %4526 = vmatprep.subr.mxu1 %v7250_v48 }
 0x440   : > { %v1567_v17 = vpop.permute.xlu1 %1566  ;;  %4567 = vmatprep.subr.mxu0 %v7250_v48 }
 0x441   : > { %4499 = vmatmul.mubr.msk.f32.gmra.mxu0 %vm1249_vm7, %v5832_v31  ;;  %v1735_v18 = vpop.permute.xlu0 %1734  ;;  %4527 = vmatpush3.xpose.msk.msra.mxu1 %vm1249_vm7, %v1567_v17 }
 0x442   : > { %2490 = vrot.lane.b32.xlu0 %v5840_v33, %s5369_s23  ;;  %4568 = vmatpush3.xpose.msk.msra.mxu0 %vm1249_vm7, %v1735_v18 }
 0x443   : > { %4501 = vmatprep.mubr.msk.f32.mxu0 %vm5364_vm6, %v7250_v48  ;;  %4528 = vmatprep.subr.mxu1 %v7250_v48 }
 0x444   : > { %v1565_v19 = vpop.permute.xlu1 %1564  ;;  %4569 = vmatprep.subr.mxu0 %v7250_v48 }
 0x445   : > { %4502 = vmatmul.mubr.msk.f32.gmra.mxu0 %vm1249_vm7, %v5842_v36  ;;  %v1733_v20 = vpop.permute.xlu0 %1732  ;;  %4529 = vmatpush3.xpose.msk.msra.mxu1 %vm1249_vm7, %v1565_v19 }
 0x446   : > { %2830 = vrot.lane.b32.xlu0 %v5854_v38, %s5369_s23  ;;  %4570 = vmatpush3.xpose.msk.msra.mxu0 %vm1249_vm7, %v1733_v20 }
 0x447   : > { %4504 = vmatprep.mubr.msk.f32.mxu0 %vm5364_vm6, %v7250_v48  ;;  %4530 = vmatprep.subr.mxu1 %v7250_v48 }
 0x448   : > { %v1563_v21 = vpop.permute.xlu1 %1562  ;;  %4571 = vmatprep.subr.mxu0 %v7250_v48 }
 0x449   : > { %4505 = vmatmul.mubr.msk.f32.gmra.mxu0 %vm1249_vm7, %v5824_v29  ;;  %v1731_v22 = vpop.permute.xlu0 %1730  ;;  %4531 = vmatpush3.xpose.msk.msra.mxu1 %vm1249_vm7, %v1563_v21 }
 0x44a   : > { %2828 = vrot.lane.b32.xlu0 %v5876_v46, %s5369_s23  ;;  %4572 = vmatpush3.xpose.msk.msra.mxu0 %vm1249_vm7, %v1731_v22 }
 0x44b   : > { %4507 = vmatprep.mubr.msk.f32.mxu0 %vm5364_vm6, %v7250_v48  ;;  %4532 = vmatprep.subr.mxu1 %v7250_v48 }
 0x44c   : > { %v1561_v23 = vpop.permute.xlu1 %1560  ;;  %4573 = vmatprep.subr.mxu0 %v7250_v48 }
 0x44d   : > { %4508 = vmatmul.mubr.msk.f32.gmra.mxu0 %vm1249_vm7, %v5826_v30  ;;  %v1729_v26 = vpop.permute.xlu0 %1728  ;;  %4533 = vmatpush3.xpose.msk.msra.mxu1 %vm1249_vm7, %v1561_v23 }
 0x44e   : > { %2661 = vrot.lane.b32.xlu0 %v5882_v49, %s5369_s23  ;;  %4574 = vmatpush3.xpose.msk.msra.mxu0 %vm1249_vm7, %v1729_v26 }
 0x44f   : > { %4510 = vmatprep.mubr.msk.f32.mxu0 %vm5364_vm6, %v7250_v48  ;;  %4575 = vmatprep.subr.mxu0 %v7250_v48 }
 0x450   : > { %4535 = vmatmul.mubr.msk.f32.vlgmr.msra.gmra.mxu1 %vm1249_vm7, %v5932_v34  ;;  %4880 = vmatprep.subr.mxu1 %v7250_v48  ;;  %v2337_v30 = vpop.permute.xlu1 %2336 }
 0x451   : > { %4511 = vmatmul.mubr.msk.f32.gmra.mxu0 %vm1249_vm7, %v5828_v6  ;;  %v1727_v27 = vpop.permute.xlu0 %1726  ;;  %4537 = vmatprep.mubr.msk.f32.mxu1 %vm5364_vm6, %v7250_v48 }
 0x452   : > { %2659 = vrot.lane.b32.xlu0 %v5880_v47, %s5369_s23  ;;  %4576 = vmatpush3.xpose.msk.msra.mxu0 %vm1249_vm7, %v1727_v27 }
 0x453   : > { %4513 = vmatprep.mubr.msk.f32.mxu0 %vm5364_vm6, %v7250_v48  ;;  %4577 = vmatprep.subr.mxu0 %v7250_v48 }
 0x454   : > { %4538 = vmatmul.mubr.msk.f32.gmra.mxu1 %vm1249_vm7, %v5914_v54 }
 0x455   : > { %4514 = vmatmul.mubr.msk.f32.gmra.mxu0 %vm1249_vm7, %v5834_v32  ;;  %4540 = vmatprep.mubr.msk.f32.mxu1 %vm5364_vm6, %v7250_v48 }
 0x456   : > { %2657 = vrot.lane.b32.xlu0 %v5900_v52, %s5369_s23  ;;  %4579 = vmatprep.mubr.msk.f32.mxu0 %vm5364_vm6, %v7250_v48 }
 0x458   : > { %4541 = vmatmul.mubr.msk.f32.gmra.mxu1 %vm1249_vm7, %v5900_v52 }
 0x459   : > { %4543 = vmatprep.mubr.msk.f32.mxu1 %vm5364_vm6, %v7250_v48 }
 0x45a   : > { %2655 = vrot.lane.b32.xlu0 %v5914_v54, %s5369_s23 }
 0x45c   : > { %4544 = vmatmul.mubr.msk.f32.gmra.mxu1 %vm1249_vm7, %v5880_v47 }
 0x45d   : > { %4546 = vmatprep.mubr.msk.f32.mxu1 %vm5364_vm6, %v7250_v48 }
 0x45e   : > { %2504 = vrot.lane.b32.xlu0 %v5834_v32, %s5369_s23  ;;  %v2331_v32 = vpop.permute.xlu1 %2330 }
 0x460   : > { %4547 = vmatmul.mubr.msk.f32.gmra.mxu1 %vm1249_vm7, %v5882_v49 }
 0x461   : > { %4549 = vmatprep.mubr.msk.f32.mxu1 %vm5364_vm6, %v7250_v48 }
 0x462   : > { %2669 = vrot.lane.b32.xlu0 %v5874_v45, %s5369_s23  ;;  %v2323_v37 = vpop.permute.xlu1 %2322 }
 0x464   : > { %4550 = vmatmul.mubr.msk.f32.gmra.mxu1 %vm1249_vm7, %v5860_v40 }
 0x465   : > { %4552 = vmatprep.mubr.msk.f32.mxu1 %vm5364_vm6, %v7250_v48 }
 0x468   : > { %4553 = vmatmul.mubr.msk.f32.gmra.mxu1 %vm1249_vm7, %v5866_v15 }
 0x469   : > { %4555 = vmatprep.mubr.msk.f32.mxu1 %vm5364_vm6, %v7250_v48 }
 0x46c   : > { %4556 = vmatmul.mubr.msk.f32.gmra.mxu1 %vm1249_vm7, %v5848_v14 }
 0x46d   : > { %4558 = vmatprep.mubr.msk.f32.mxu1 %vm5364_vm6, %v7250_v48 }
 0x470   : > { %4559 = vmatmul.mubr.msk.f32.gmra.mxu1 %vm1249_vm7, %v5874_v45 }
 0x471   : > { %4636 = vmatprep.mubr.msk.f32.mxu1 %vm5364_vm6, %v7250_v48 }
 0x48b   : > { %v1725_v28 = vpop.permute.xlu0 %1724 }
 0x48c   : > { %4578 = vmatpush3.xpose.msk.msra.mxu0 %vm1249_vm7, %v1725_v28 }
 0x48d   : > { %4606 = vmatprep.subr.mxu0 %v7250_v48 }
 0x48f   : > { %4580 = vmatmul.mubr.msk.f32.vlgmr.msra.gmra.mxu0 %vm1249_vm7, %v6018_v62  ;;  %v2339_v29 = vpop.permute.xlu0 %2338 }
 0x490   : > { %4607 = vmatpush3.msk.msra.mxu0 %vm2375_vm8, %v2339_v29  ;;  %4889 = vmatpush3.msk.msra.mxu1 %vm2375_vm8, %v2339_v29 }
 0x491   : > { %4608 = vmatprep.subr.mxu0 %v7250_v48  ;;  %4881 = vmatprep.subr.mxu1 %v7250_v48 }
 0x492   : > { %4582 = vmatprep.mubr.msk.f32.mxu0 %vm5364_vm6, %v7250_v48  ;;  %4609 = vmatpush3.msra.mxu0 %v2337_v30 }
 0x493   : > { %4890 = vmatpush3.msra.mxu1 %v2337_v30  ;;  %4583 = vmatmul.mubr.msk.f32.gmra.mxu0 %vm1249_vm7, %v5940_v58  ;;  %v2335_v6 = vpop.permute.xlu0 %2334 }
 0x494   : > { %4610 = vmatprep.subr.mxu0 %v7250_v48  ;;  %4882 = vmatprep.subr.mxu1 %v7250_v48 }
 0x495   : > { %4611 = vmatpush3.msra.mxu0 %v2335_v6  ;;  %4891 = vmatpush3.msra.mxu1 %v2335_v6 }
 0x496   : > { %4585 = vmatprep.mubr.msk.f32.mxu0 %vm5364_vm6, %v7250_v48  ;;  %4612 = vmatprep.subr.mxu0 %v7250_v48 }
 0x497   : > { %4586 = vmatmul.mubr.msk.f32.gmra.mxu0 %vm1249_vm7, %v5930_v57  ;;  %4883 = vmatprep.subr.mxu1 %v7250_v48  ;;  %v2333_v31 = vpop.permute.xlu0 %2332 }
 0x498   : > { %4613 = vmatpush3.msra.mxu0 %v2333_v31  ;;  %4892 = vmatpush3.msra.mxu1 %v2333_v31 }
 0x499   : > { %4614 = vmatprep.subr.mxu0 %v7250_v48  ;;  %4884 = vmatprep.subr.mxu1 %v7250_v48 }
 0x49a   : > { %4588 = vmatprep.mubr.msk.f32.mxu0 %vm5364_vm6, %v7250_v48  ;;  %4615 = vmatpush3.msra.mxu0 %v2331_v32 }
 0x49b   : > { %4893 = vmatpush3.msra.mxu1 %v2331_v32  ;;  %4589 = vmatmul.mubr.msk.f32.gmra.mxu0 %vm1249_vm7, %v5916_v55  ;;  %v2329_v33 = vpop.permute.xlu0 %2328  ;;  %v6290_v32 = vpop.permute.xlu1 %2500 }
 0x49c   : > { %4616 = vmatprep.subr.mxu0 %v7250_v48  ;;  %4885 = vmatprep.subr.mxu1 %v7250_v48 }
 0x49d   : > { %4617 = vmatpush3.msra.mxu0 %v2329_v33  ;;  %4894 = vmatpush3.msra.mxu1 %v2329_v33 }
 0x49e   : > { %4591 = vmatprep.mubr.msk.f32.mxu0 %vm5364_vm6, %v7250_v48  ;;  %4618 = vmatprep.subr.mxu0 %v7250_v48 }
 0x49f   : > { %4592 = vmatmul.mubr.msk.f32.gmra.mxu0 %vm1249_vm7, %v5870_v43  ;;  %4886 = vmatprep.subr.mxu1 %v7250_v48  ;;  %v2327_v36 = vpop.permute.xlu0 %2326 }
 0x4a0   : > { %4619 = vmatpush3.msra.mxu0 %v2327_v36  ;;  %4895 = vmatpush3.msra.mxu1 %v2327_v36 }
 0x4a1   : > { %4594 = vmatprep.mubr.msk.f32.mxu0 %vm5364_vm6, %v7250_v48  ;;  %4620 = vmatprep.subr.mxu0 %v7250_v48 }
 0x4a2   : > { %4887 = vmatprep.subr.mxu1 %v7250_v48 }
 0x4a3   : > { %4595 = vmatmul.mubr.msk.f32.gmra.mxu0 %vm1249_vm7, %v5876_v46  ;;  %v2325_v14 = vpop.permute.xlu0 %2324 }
 0x4a4   : > { %4621 = vmatpush3.msra.mxu0 %v2325_v14  ;;  %4896 = vmatpush3.msra.mxu1 %v2325_v14 }
 0x4a5   : > { %v1352_v39 = vpop.f32.mrf.mxu1  ;;  %4622 = vmatprep.subr.mxu0 %v7250_v48  ;;  %4888 = vmatprep.subr.mxu1 %v7250_v48 }
 0x4a6   : > { %v6220_v40 = vmul.f32 0.35355338, %v1352_v39  ;;  %4597 = vmatprep.mubr.msk.f32.mxu0 %vm5364_vm6, %v7250_v48  ;;  %4623 = vmatpush3.msra.mxu0 %v2323_v37 }
 0x4a7   : > { %4897 = vmatpush3.msra.mxu1 %v2323_v37  ;;  %v4446_v41 = vpop.f32.mrf.mxu1  ;;  %4598 = vmatmul.mubr.msk.f32.gmra.mxu0 %vm1249_vm7, %v5854_v38 }
 0x4a8   : > { %v1925_v15 = vsel %vm1924_vm9, %v6220_v40, -inf  ;;  %4600 = vmatprep.mubr.msk.f32.mxu0 %vm5364_vm6, %v7250_v48  ;;  %4651 = vmatprep.subr.mxu0 %v7250_v48  ;;  %v6280_v20 = vpop.permute.xlu0 %2502 }
 0x4a9   : > { %v1357_v43 = vpop.f32.mrf.mxu1  ;;  %1926 = vmax.xlane.f32.xlu1 %v1925_v15  ;;  %4696 = vmatprep.subr.mxu1 %v7250_v48 }
 0x4aa   : > { %v6232_v44 = vmul.f32 0.35355338, %v1357_v43  ;;  %v6300_v43 = vpop.permute.xlu1 %2496 }
 0x4ab   : > { %v4449_v45 = vpop.f32.mrf.mxu1  ;;  %4601 = vmatmul.mubr.msk.f32.gmra.mxu0 %vm1249_vm7, %v5862_v7 }
 0x4ac   : > { %v1928_v38 = vsel %vm1924_vm9, %v6232_v44, -inf  ;;  %4603 = vmatprep.mubr.msk.f32.mxu0 %vm5364_vm6, %v7250_v48  ;;  %v6284_v27 = vpop.permute.xlu0 %2498 }
 0x4ad   : > { %v1362_v46 = vpop.f32.mrf.mxu1  ;;  %1929 = vmax.xlane.f32.xlu0 %v1928_v38 }
 0x4ae   : > { %v6240_v47 = vmul.f32 0.35355338, %v1362_v46 }
 0x4af   : > { %v4452_v49 = vpop.f32.mrf.mxu1  ;;  %4604 = vmatmul.mubr.msk.f32.gmra.mxu0 %vm1249_vm7, %v5886_v25 }
 0x4b0   : > { %v1931_v50 = vsel %vm1924_vm9, %v6240_v47, -inf  ;;  %4624 = vmatprep.mubr.msk.f32.mxu0 %vm5364_vm6, %v7250_v48  ;;  %v6294_v36 = vpop.permute.xlu0 %2494 }
 0x4b1   : > { %v1367_v7 = vpop.f32.mrf.mxu1  ;;  %1932 = vmax.xlane.f32.xlu0 %v1931_v50 }
 0x4b2   : > { %v6248_v51 = vmul.f32 0.35355338, %v1367_v7 }
 0x4b3   : > { %v4455_v52 = vpop.f32.mrf.mxu1 }
 0x4b4   : > { %v1934_v24 = vsel %vm1924_vm9, %v6248_v51, -inf  ;;  %v6304_v38 = vpop.permute.xlu0 %2490 }
 0x4b5   : > { %v1372_v53 = vpop.f32.mrf.mxu1  ;;  %1935 = vmax.xlane.f32.xlu0 %v1934_v24 }
 0x4b6   : > { %v6252_v54 = vmul.f32 0.35355338, %v1372_v53 }
 0x4b7   : > { %v4458_v55 = vpop.f32.mrf.mxu1 }
 0x4b8   : > { %v1937_v25 = vsel %vm1924_vm9, %v6252_v54, -inf }
 0x4b9   : > { %v1377_v56 = vpop.f32.mrf.mxu1  ;;  %1938 = vmax.xlane.f32.xlu1 %v1937_v25 }
 0x4ba   : > { %v6256_v57 = vmul.f32 0.35355338, %v1377_v56  ;;  %v6314_v56 = vpop.permute.xlu1 %2492 }
 0x4bb   : > { %v4461_v35 = vpop.f32.mrf.mxu1 }
 0x4bc   : > { %v1940_v59 = vsel %vm1924_vm9, %v6256_v57, -inf }
 0x4bd   : > { %v1382_v60 = vpop.f32.mrf.mxu1  ;;  %1941 = vmax.xlane.f32.xlu1 %v1940_v59 }
 0x4be   : > { %v6260_v42 = vmul.f32 0.35355338, %v1382_v60  ;;  %v6318_v60 = vpop.permute.xlu0 %2830 }
 0x4bf   : > { %v4464_v61 = vpop.f32.mrf.mxu1  ;;  %7297 = vst [vmem:[#allocation18_spill] sm:$0xff] %v6318_v60 }
 0x4c0   : > { %v1943_v63 = vsel %vm1924_vm9, %v6260_v42, -inf }
 0x4c1   : > { %v1387_v0 = vpop.f32.mrf.mxu1  ;;  %1944 = vmax.xlane.f32.xlu1 %v1943_v63 }
 0x4c2   : > { %v6264_v1 = vmul.f32 0.35355338, %v1387_v0 }
 0x4c3   : > { %v4467_v2 = vpop.f32.mrf.mxu1 }
 0x4c4   : > { %v1946_v3 = vsel %vm1924_vm9, %v6264_v1, -inf }
 0x4c5   : > { %v1392_v4 = vpop.f32.mrf.mxu1  ;;  %1947 = vmax.xlane.f32.xlu1 %v1946_v3 }
 0x4c6   : > { %v6268_v5 = vmul.f32 0.35355338, %v1392_v4 }
 0x4c7   : > { %v4470_v8 = vpop.f32.mrf.mxu1 }
 0x4c8   : > { %v1950_v9 = vsel %vm1949_vm10, %v6268_v5, -inf }
 0x4c9   : > { %1951 = vmax.xlane.f32.xlu1 %v1950_v9 }
 0x4f5   : > { %v1516_v10 = vpop.f32.mrf.mxu0 }
 0x4f6   : > { %v6272_v11 = vmul.f32 0.35355338, %v1516_v10 }
 0x4f7   : > { %v4491_v12 = vpop.f32.mrf.mxu0 }
 0x4f8   : > { %v1953_v13 = vsel %vm1924_vm9, %v6272_v11, -inf }
 0x4f9   : > { %1954 = vmax.xlane.f32.xlu1 %v1953_v13  ;;  %v1521_v16 = vpop.f32.mrf.mxu0  ;;  %v6330_v13 = vpop.permute.xlu1 %2488 }
 0x4fa   : > { %v6276_v17 = vmul.f32 0.35355338, %v1521_v16  ;;  %v6332_v16 = vpop.permute.xlu0 %2828 }
 0x4fb   : > { %v4494_v18 = vpop.f32.mrf.mxu0  ;;  %7298 = vst [vmem:[#allocation19_spill] sm:$0xff] %v6332_v16 }
 0x4fc   : > { %v1956_v19 = vsel %vm1924_vm9, %v6276_v17, -inf }
 0x4fd   : > { %1957 = vmax.xlane.f32.xlu0 %v1956_v19  ;;  %v1526_v21 = vpop.f32.mrf.mxu0 }
 0x4fe   : > { %v6324_v3 = vmul.f32 0.35355338, %v1526_v21 }
 0x4ff   : > { %v4497_v22 = vpop.f32.mrf.mxu0 }
 0x500   : > { %v1959_v18 = vsel %vm1924_vm9, %v6324_v3, -inf }
 0x501   : > { %v1531_v23 = vpop.f32.mrf.mxu0 }
 0x502   : > { %v6282_v26 = vmul.f32 0.35355338, %v1531_v23  ;;  %v6336_v23 = vpop.permute.xlu1 %2667 }
 0x503   : > { %v4500_v28 = vpop.f32.mrf.mxu0 }
 0x504   : > { %v1962_v29 = vsel %vm1924_vm9, %v6282_v26, -inf  ;;  %v6338_v28 = vpop.permute.xlu0 %2661 }
 0x505   : > { %1963 = vmax.xlane.f32.xlu0 %v1962_v29  ;;  %v1536_v30 = vpop.f32.mrf.mxu0 }
 0x506   : > { %v6288_v6 = vmul.f32 0.35355338, %v1536_v30 }
 0x507   : > { %v4503_v31 = vpop.f32.mrf.mxu0 }
 0x508   : > { %v1965_v33 = vsel %vm1924_vm9, %v6288_v6, -inf }
 0x509   : > { %1966 = vmax.xlane.f32.xlu0 %v1965_v33  ;;  %v1541_v14 = vpop.f32.mrf.mxu0  ;;  %v6340_v33 = vpop.permute.xlu1 %2832 }
 0x50a   : > { %v6296_v37 = vmul.f32 0.35355338, %v1541_v14  ;;  %7299 = vst [vmem:[#allocation20_spill] sm:$0xff] %v6340_v33  ;;  %v6342_v14 = vpop.permute.xlu0 %2659 }
 0x50b   : > { %v4506_v39 = vpop.f32.mrf.mxu0 }
 0x50c   : > { %v1968_v41 = vsel %vm1924_vm9, %v6296_v37, -inf }
 0x50d   : > { %1969 = vmax.xlane.f32.xlu0 %v1968_v41  ;;  %v1546_v15 = vpop.f32.mrf.mxu0 }
 0x50e   : > { %v6302_v45 = vmul.f32 0.35355338, %v1546_v15 }
 0x50f   : > { %v4509_v46 = vpop.f32.mrf.mxu0 }
 0x510   : > { %v1680_v49 = vpop.f32.mrf.mxu1  ;;  %v1971_v50 = vsel %vm1924_vm9, %v6302_v45, -inf  ;;  %v6346_v46 = vpop.permute.xlu1 %2665 }
 0x511   : > { %v6308_v7 = vmul.f32 0.35355338, %v1680_v49  ;;  %1972 = vmax.xlane.f32.xlu0 %v1971_v50  ;;  %v1551_v52 = vpop.f32.mrf.mxu0  ;;  %v6348_v49 = vpop.permute.xlu0 %2657 }
 0x512   : > { %v6310_v24 = vmul.f32 0.35355338, %v1551_v52  ;;  %v4536_v53 = vpop.f32.mrf.mxu1 }
 0x513   : > { %v4512_v55 = vpop.f32.mrf.mxu0  ;;  %v1980_v25 = vsel %vm1924_vm9, %v6308_v7, -inf }
 0x514   : > { %v1685_v35 = vpop.f32.mrf.mxu1  ;;  %1981 = vmax.xlane.f32.xlu1 %v1980_v25  ;;  %v1974_v59 = vsel %vm1924_vm9, %v6310_v24, -inf  ;;  %v6354_v55 = vpop.permute.xlu1 %2663 }
 0x515   : > { %v6320_v61 = vmul.f32 0.35355338, %v1685_v35  ;;  %1975 = vmax.xlane.f32.xlu0 %v1974_v59  ;;  %v1556_v63 = vpop.f32.mrf.mxu0  ;;  %v6356_v25 = vpop.permute.xlu0 %2655 }
 0x516   : > { %v6322_v0 = vmul.f32 0.35355338, %v1556_v63  ;;  %v4539_v2 = vpop.f32.mrf.mxu1 }
 0x517   : > { %v4515_v4 = vpop.f32.mrf.mxu0  ;;  %v1983_v8 = vsel %vm1924_vm9, %v6320_v61, -inf }
 0x518   : > { %v1690_v9 = vpop.f32.mrf.mxu1  ;;  %1984 = vmax.xlane.f32.xlu1 %v1983_v8  ;;  %v1977_v10 = vsel %vm1949_vm10, %v6322_v0, -inf  ;;  %v6358_v35 = vpop.permute.xlu1 %2826 }
 0x519   : > { %1978 = vmax.xlane.f32.xlu0 %v1977_v10  ;;  %7300 = vst [vmem:[#allocation21_spill] sm:$0xff] %v6358_v35  ;;  %v6360_v59 = vpop.permute.xlu0 %2504 }
 0x51a   : > { %v4542_v12 = vpop.f32.mrf.mxu1 }
 0x51c   : > { %v1695_v19 = vpop.f32.mrf.mxu1  ;;  %1960 = vmax.xlane.f32.xlu1 %v1959_v18  ;;  %v6362_v63 = vpop.permute.xlu1 %2824  ;;  %v6371_v18 = vmul.f32 0.35355338, %v1690_v9 }
 0x51d   : > { %7301 = vst [vmem:[#allocation22_spill] sm:$0xff] %v6362_v63  ;;  %v6364_v2 = vpop.permute.xlu0 %2669 }
 0x51e   : > { %v4545_v21 = vpop.f32.mrf.mxu1 }
 0x520   : > { %v1700_v22 = vpop.f32.mrf.mxu1  ;;  %v6366_v8 = vpop.permute.xlu1 %2822 }
 0x521   : > { %7302 = vst [vmem:[#allocation23_spill] sm:$0xff] %v6366_v8 }
 0x522   : > { %v4548_v29 = vpop.f32.mrf.mxu1 }
 0x524   : > { %v1705_v30 = vpop.f32.mrf.mxu1  ;;  %v6369_v12 = vpop.permute.xlu1 %2834 }
 0x525   : > { %7303 = vst [vmem:[#allocation24_spill] sm:$0xff] %v6369_v12  ;;  %v6391_v63 = vmul.f32 0.35355338, %v1705_v30 }
 0x526   : > { %v4551_v31 = vpop.f32.mrf.mxu1 }
 0x527   : > { %v6373_v31 = vmul.f32 0.35355338, %v1695_v19 }
 0x528   : > { %v1710_v39 = vpop.f32.mrf.mxu1 }
 0x52a   : > { %v4554_v41 = vpop.f32.mrf.mxu1 }
 0x52c   : > { %v6344_v15 = vpop.f32.mrf.mxu1 }
 0x52d   : > { %2820 = vrot.lane.b32.xlu1 %v5940_v58, %s5369_s23  ;;  %v6413_v60 = vmul.f32 0.35355338, %v6344_v15 }
 0x52e   : > { %v4557_v50 = vpop.f32.mrf.mxu1 }
 0x52f   : > { %v1986_v50 = vsel %vm1924_vm9, %v6371_v18, -inf  ;;  %7304 = vst [vmem:[#allocation25_spill] sm:$0xff] %v6413_v60  ;;  %v2001_v15 = vsel %vm1924_vm9, %v6413_v60, -inf }
 0x530   : > { %v6352_v52 = vpop.f32.mrf.mxu1 }
 0x532   : > { %v4560_v53 = vpop.f32.mrf.mxu1  ;;  %v1927_v21 = vpop.xlane.xlu1 %1926 }
 0x536   : > { %v1930_v4 = vpop.xlane.xlu0 %1929 }
 0x537   : > { %v2035_v58 = vsub.f32 %v6232_v44, %v1930_v4 }
 0x539   : > { %v2072_v10 = vmul.f32 1.442695, %v2035_v58  ;;  %v6381_v58 = vmul.f32 0.35355338, %v1700_v22 }
 0x53a   : > { %v1933_v48 = vpop.xlane.xlu0 %1932 }
 0x53b   : > { %5076 = vpow2.f32 %v2072_v10  ;;  %v2034_v10 = vsub.f32 %v6220_v40, %v1927_v21  ;;  %v2036_v35 = vsub.f32 %v6240_v47, %v1933_v48  ;;  %v1992_v21 = vsel %vm1924_vm9, %v6381_v58, -inf }
 0x53c   : > { %v1995_v48 = vsel %vm1924_vm9, %v6391_v63, -inf  ;;  %v6404_v47 = vmul.f32 0.35355338, %v1710_v39 }
 0x53d   : > { %v2070_v22 = vmul.f32 1.442695, %v2034_v10  ;;  %v2074_v10 = vmul.f32 1.442695, %v2036_v35 }
 0x53f   : > { %5078 = vpow2.f32 %v2070_v22 }
 0x542   : > { %v1939_v4 = vpop.xlane.xlu1 %1938 }
 0x546   : > { %v1942_v30 = vpop.xlane.xlu1 %1941 }
 0x54f   : > { %v1844_v29 = vpop.f32.mrf.mxu0 }
 0x550   : > { %v6375_v41 = vmul.f32 0.35355338, %v1844_v29  ;;  %v1989_v29 = vsel %vm1924_vm9, %v6373_v31, -inf }
 0x551   : > { %1987 = vmax.xlane.f32.xlu1 %v1986_v50  ;;  %v4581_v53 = vpop.f32.mrf.mxu0  ;;  %v2038_v50 = vsub.f32 %v6252_v54, %v1939_v4  ;;  %v6400_v4 = vpop.eup %5076 }
 0x552   : > { %v2007_v44 = vsel %vm1924_vm9, %v6375_v41, -inf }
 0x553   : > { %2008 = vmax.xlane.f32.xlu0 %v2007_v44  ;;  %v1849_v9 = vpop.f32.mrf.mxu0 }
 0x554   : > { %v6384_v19 = vmul.f32 0.35355338, %v1849_v9  ;;  %v1936_v9 = vpop.xlane.xlu0 %1935 }
 0x555   : > { %1990 = vmax.xlane.f32.xlu1 %v1989_v29  ;;  %v4584_v8 = vpop.f32.mrf.mxu0  ;;  %v2078_v29 = vmul.f32 1.442695, %v2038_v50  ;;  %v2039_v50 = vsub.f32 %v6256_v57, %v1942_v30 }
 0x556   : > { %v2010_v53 = vsel %vm1924_vm9, %v6384_v19, -inf }
 0x557   : > { %2011 = vmax.xlane.f32.xlu0 %v2010_v53  ;;  %v1854_v44 = vpop.f32.mrf.mxu0  ;;  %5080 = vpow2.f32 %v2078_v29  ;;  %v2080_v22 = vmul.f32 1.442695, %v2039_v50  ;;  %v1945_v29 = vpop.xlane.xlu1 %1944 }
 0x558   : > { %v6394_v40 = vmul.f32 0.35355338, %v1854_v44  ;;  %v2037_v44 = vsub.f32 %v6248_v51, %v1936_v9  ;;  %5082 = vpow2.f32 %v2074_v10  ;;  %v1998_v51 = vsel %vm1924_vm9, %v6404_v47, -inf  ;;  %v6433_v50 = vpop.eup %5078 }
 0x559   : > { %1993 = vmax.xlane.f32.xlu1 %v1992_v21  ;;  %v4587_v8 = vpop.f32.mrf.mxu0  ;;  %v2040_v10 = vsub.f32 %v6260_v42, %v1945_v29 }
 0x55a   : > { %v2013_v54 = vsel %vm1924_vm9, %v6394_v40, -inf  ;;  %v2076_v39 = vmul.f32 1.442695, %v2037_v44 }
 0x55b   : > { %2014 = vmax.xlane.f32.xlu0 %v2013_v54  ;;  %v1859_v53 = vpop.f32.mrf.mxu0  ;;  %v2145_v54 = vsel %vm1924_vm9, %v6400_v4, 0.0 }
 0x55c   : > { %v6408_v8 = vmul.f32 0.35355338, %v1859_v53  ;;  %v6422_v53 = vmul.f32 0.35355338, %v6352_v52  ;;  %5084 = vpow2.f32 %v2076_v39 }
 0x55d   : > { %1996 = vmax.xlane.f32.xlu1 %v1995_v48  ;;  %v4590_v21 = vpop.f32.mrf.mxu0  ;;  %5086 = vpow2.f32 %v2080_v22 }
 0x55e   : > { %v2016_v57 = vsel %vm1924_vm9, %v6408_v8, -inf  ;;  %7305 = vst [vmem:[#allocation26_spill] sm:$0xff] %v6422_v53  ;;  %v2004_v52 = vsel %vm1949_vm10, %v6422_v53, -inf }
 0x55f   : > { %2146 = vadd.xlane.f32.xlu0 %v2145_v54  ;;  %v1864_v16 = vpop.f32.mrf.mxu0  ;;  %v1948_v54 = vpop.xlane.xlu1 %1947 }
 0x560   : > { %v6417_v9 = vmul.f32 0.35355338, %v1864_v16 }
 0x561   : > { %1999 = vmax.xlane.f32.xlu1 %v1998_v51  ;;  %v4593_v35 = vpop.f32.mrf.mxu0  ;;  %v2082_v51 = vmul.f32 1.442695, %v2040_v10 }
 0x562   : > { %v2019_v44 = vsel %vm1924_vm9, %v6417_v9, -inf }
 0x563   : > { %2017 = vmax.xlane.f32.xlu0 %v2016_v57  ;;  %v1869_v30 = vpop.f32.mrf.mxu0  ;;  %v2142_v57 = vsel %vm1924_vm9, %v6433_v50, 0.0  ;;  %5088 = vpow2.f32 %v2082_v51 }
 0x564   : > { %v6427_v16 = vmul.f32 0.35355338, %v1869_v30  ;;  %v6437_v42 = vpop.eup %5080 }
 0x565   : > { %2002 = vmax.xlane.f32.xlu1 %v2001_v15  ;;  %v4596_v48 = vpop.f32.mrf.mxu0  ;;  %v6441_v29 = vpop.eup %5082  ;;  %v2041_v15 = vsub.f32 %v6264_v1, %v1948_v54  ;;  %v2154_v10 = vsel %vm1924_vm9, %v6437_v42, 0.0 }
 0x566   : > { %v2022_v35 = vsel %vm1924_vm9, %v6427_v16, -inf }
 0x567   : > { %2020 = vmax.xlane.f32.xlu0 %v2019_v44  ;;  %v1874_v21 = vpop.f32.mrf.mxu0  ;;  %v1952_v44 = vpop.xlane.xlu1 %1951 }
 0x568   : > { %v6444_v48 = vmul.f32 0.35355338, %v1874_v21  ;;  %v2042_v51 = vsub.f32 %v6268_v5, %v1952_v44 }
 0x569   : > { %2005 = vmax.xlane.f32.xlu1 %v2004_v52  ;;  %v4599_v39 = vpop.f32.mrf.mxu0 }
 0x56a   : > { %7306 = vst [vmem:[#allocation27_spill] sm:$0xff] %v6444_v48  ;;  %v2148_v39 = vsel %vm1924_vm9, %v6441_v29, 0.0  ;;  %v2025_v1 = vsel %vm1924_vm9, %v6444_v48, -inf }
 0x56b   : > { %2023 = vmax.xlane.f32.xlu0 %v2022_v35  ;;  %v1879_v22 = vpop.f32.mrf.mxu0  ;;  %v6450_v35 = vpop.eup %5084 }
 0x56c   : > { %v6455_v21 = vpop.eup %5086  ;;  %v2151_v54 = vsel %vm1924_vm9, %v6450_v35, 0.0 }
 0x56d   : > { %2143 = vadd.xlane.f32.xlu1 %v2142_v57  ;;  %v4602_v30 = vpop.f32.mrf.mxu0  ;;  %v2084_v57 = vmul.f32 1.442695, %v2041_v15 }
 0x56e   : > { %v2086_v30 = vmul.f32 1.442695, %v2042_v51 }
 0x56f   : > { %2155 = vadd.xlane.f32.xlu0 %v2154_v10  ;;  %v1884_v52 = vpop.f32.mrf.mxu0  ;;  %5090 = vpow2.f32 %v2084_v57  ;;  %v6459_v10 = vmul.f32 0.35355338, %v1879_v22 }
 0x570   : > { %5092 = vpow2.f32 %v2086_v30  ;;  %v6465_v15 = vpop.eup %5088  ;;  %v6467_v44 = vmul.f32 0.35355338, %v1884_v52 }
 0x571   : > { %2149 = vadd.xlane.f32.xlu1 %v2148_v39  ;;  %v4605_v53 = vpop.f32.mrf.mxu0  ;;  %7307 = vst [vmem:[#allocation28_spill] sm:$0xff] %v6459_v10  ;;  %v2028_v5 = vsel %vm1924_vm9, %v6459_v10, -inf  ;;  %v2160_v39 = vsel %vm1924_vm9, %v6465_v15, 0.0 }
 0x572   : > { %v2157_v53 = vsel %vm1924_vm9, %v6455_v21, 0.0  ;;  %7308 = vst [vmem:[#allocation29_spill] sm:$0xff] %v6467_v44  ;;  %v2031_v22 = vsel %vm1949_vm10, %v6467_v44, -inf }
 0x573   : > { %2026 = vmax.xlane.f32.xlu0 %v2025_v1 }
 0x575   : > { %2152 = vadd.xlane.f32.xlu1 %v2151_v54 }
 0x577   : > { %2158 = vadd.xlane.f32.xlu0 %v2157_v53 }
 0x57b   : > { %2029 = vmax.xlane.f32.xlu0 %v2028_v5 }
 0x57c   : > { %v6473_v51 = vpop.eup %5090 }
 0x57d   : > { %v2163_v53 = vsel %vm1924_vm9, %v6473_v51, 0.0  ;;  %v6478_v52 = vpop.eup %5092 }
 0x57e   : > { %v2166_v44 = vsel %vm1949_vm10, %v6478_v52, 0.0 }
 0x57f   : > { %2161 = vadd.xlane.f32.xlu0 %v2160_v39 }
 0x582   : > { %v1955_v57 = vpop.xlane.xlu1 %1954 }
 0x583   : > { %v2043_v1 = vsub.f32 %v6272_v11, %v1955_v57  ;;  %2032 = vmax.xlane.f32.xlu0 %v2031_v22 }
 0x585   : > { %v2088_v54 = vmul.f32 1.442695, %v2043_v1 }
 0x586   : > { %v1958_v30 = vpop.xlane.xlu0 %1957 }
 0x587   : > { %5094 = vpow2.f32 %v2088_v54  ;;  %v2044_v5 = vsub.f32 %v6276_v17, %v1958_v30  ;;  %2164 = vadd.xlane.f32.xlu0 %v2163_v53 }
 0x589   : > { %v2090_v39 = vmul.f32 1.442695, %v2044_v5 }
 0x58b   : > { %5096 = vpow2.f32 %v2090_v39  ;;  %2167 = vadd.xlane.f32.xlu0 %v2166_v44 }
 0x58e   : > { %v1964_v10 = vpop.xlane.xlu0 %1963 }
 0x58f   : > { %v2046_v11 = vsub.f32 %v6282_v26, %v1964_v10 }
 0x591   : > { %v2094_v57 = vmul.f32 1.442695, %v2046_v11 }
 0x593   : > { %5098 = vpow2.f32 %v2094_v57 }
 0x594   : > { %v6484_v22 = vpop.eup %5094 }
 0x595   : > { %v2169_v1 = vsel %vm1924_vm9, %v6484_v22, 0.0 }
 0x596   : > { %2170 = vadd.xlane.f32.xlu0 %v2169_v1 }
 0x598   : > { %v6488_v54 = vpop.eup %5096 }
 0x599   : > { %7309 = vst [vmem:[#allocation30_spill] sm:$0xff] %v6488_v54  ;;  %v2172_v17 = vsel %vm1924_vm9, %v6488_v54, 0.0 }
 0x59a   : > { %2173 = vadd.xlane.f32.xlu1 %v2172_v17 }
 0x59d   : > { %v1982_v30 = vpop.xlane.xlu1 %1981 }
 0x59e   : > { %v2052_v44 = vsub.f32 %v6308_v7, %v1982_v30 }
 0x5a0   : > { %v6493_v53 = vpop.eup %5098  ;;  %v2106_v26 = vmul.f32 1.442695, %v2052_v44 }
 0x5a1   : > { %7310 = vst [vmem:[#allocation31_spill] sm:$0xff] %v6493_v53  ;;  %v1985_v10 = vpop.xlane.xlu1 %1984  ;;  %v2178_v5 = vsel %vm1924_vm9, %v6493_v53, 0.0 }
 0x5a2   : > { %5100 = vpow2.f32 %v2106_v26  ;;  %v2053_v39 = vsub.f32 %v6320_v61, %v1985_v10  ;;  %2179 = vadd.xlane.f32.xlu1 %v2178_v5 }
 0x5a4   : > { %v2108_v11 = vmul.f32 1.442695, %v2053_v39 }
 0x5a5   : > { %v1961_v57 = vpop.xlane.xlu1 %1960 }
 0x5a6   : > { %5102 = vpow2.f32 %v2108_v11  ;;  %v2045_v1 = vsub.f32 %v6324_v3, %v1961_v57  ;;  %v1967_v3 = vpop.xlane.xlu0 %1966 }
 0x5a8   : > { %v2092_v17 = vmul.f32 1.442695, %v2045_v1 }
 0x5a9   : > { %v6511_v11 = vpop.permute.xlu1 %2820 }
 0x5aa   : > { %5104 = vpow2.f32 %v2092_v17  ;;  %v1970_v10 = vpop.xlane.xlu0 %1969  ;;  %7314 = vst [vmem:[#allocation35_spill] sm:$0xff] %v6511_v11 }
 0x5ab   : > { %v2048_v11 = vsub.f32 %v6296_v37, %v1970_v10 }
 0x5ae   : > { %v1973_v5 = vpop.xlane.xlu0 %1972 }
 0x5af   : > { %v6499_v60 = vpop.eup %5100 }
 0x5b0   : > { %7311 = vst [vmem:[#allocation32_spill] sm:$0xff] %v6499_v60  ;;  %v2196_v7 = vsel %vm1924_vm9, %v6499_v60, 0.0 }
 0x5b1   : > { %2197 = vadd.xlane.f32.xlu0 %v2196_v7 }
 0x5b2   : > { %v1976_v39 = vpop.xlane.xlu0 %1975 }
 0x5b3   : > { %v6503_v30 = vpop.eup %5102 }
 0x5b4   : > { %7312 = vst [vmem:[#allocation33_spill] sm:$0xff] %v6503_v30  ;;  %v2199_v44 = vsel %vm1924_vm9, %v6503_v30, 0.0  ;;  %v2047_v30 = vsub.f32 %v6288_v6, %v1967_v3  ;;  %v2098_v3 = vmul.f32 1.442695, %v2048_v11 }
 0x5b5   : > { %2200 = vadd.xlane.f32.xlu0 %v2199_v44 }
 0x5b6   : > { %v1979_v57 = vpop.xlane.xlu0 %1978 }
 0x5b7   : > { %v6507_v61 = vpop.eup %5104 }
 0x5b8   : > { %7313 = vst [vmem:[#allocation34_spill] sm:$0xff] %v6507_v61  ;;  %v2175_v26 = vsel %vm1924_vm9, %v6507_v61, 0.0 }
 0x5b9   : > { %2176 = vadd.xlane.f32.xlu0 %v2175_v26  ;;  %v2096_v26 = vmul.f32 1.442695, %v2047_v30 }
 0x5da   : > { %v1988_v1 = vpop.xlane.xlu1 %1987 }
 0x5db   : > { %v2054_v17 = vsub.f32 %v6371_v18, %v1988_v1 }
 0x5dc   : > { %v2009_v7 = vpop.xlane.xlu0 %2008 }
 0x5dd   : > { %v2110_v44 = vmul.f32 1.442695, %v2054_v17  ;;  %v2049_v17 = vsub.f32 %v6302_v45, %v1973_v5  ;;  %v2061_v30 = vsub.f32 %v6375_v41, %v2009_v7 }
 0x5de   : > { %v1991_v60 = vpop.xlane.xlu1 %1990 }
 0x5df   : > { %5106 = vpow2.f32 %v2110_v44  ;;  %v2055_v53 = vsub.f32 %v6373_v31, %v1991_v60  ;;  %v2051_v60 = vsub.f32 %v6322_v0, %v1979_v57  ;;  %v2100_v37 = vmul.f32 1.442695, %v2049_v17 }
 0x5e0   : > { %v2012_v61 = vpop.xlane.xlu0 %2011 }
 0x5e1   : > { %v2112_v33 = vmul.f32 1.442695, %v2055_v53  ;;  %v2062_v7 = vsub.f32 %v6384_v19, %v2012_v61 }
 0x5e2   : > { %v1994_v54 = vpop.xlane.xlu1 %1993 }
 0x5e3   : > { %5108 = vpow2.f32 %v2112_v33  ;;  %v2056_v12 = vsub.f32 %v6381_v58, %v1994_v54  ;;  %v2126_v17 = vmul.f32 1.442695, %v2062_v7 }
 0x5e4   : > { %v2015_v48 = vpop.xlane.xlu0 %2014  ;;  %5110 = vpow2.f32 %v2096_v26 }
 0x5e5   : > { %v2114_v18 = vmul.f32 1.442695, %v2056_v12  ;;  %v2050_v12 = vsub.f32 %v6310_v24, %v1976_v39  ;;  %v2124_v24 = vmul.f32 1.442695, %v2061_v30 }
 0x5e6   : > { %v1997_v1 = vpop.xlane.xlu1 %1996 }
 0x5e7   : > { %v2057_v6 = vsub.f32 %v6391_v63, %v1997_v1  ;;  %5112 = vpow2.f32 %v2114_v18  ;;  %v2104_v63 = vmul.f32 1.442695, %v2051_v60  ;;  %v2063_v60 = vsub.f32 %v6394_v40, %v2015_v48 }
 0x5e8   : > { %v2147_v44 = vpop.xlane.xlu0 %2146 }
 0x5e9   : > { %v2116_v31 = vmul.f32 1.442695, %v2057_v6 }
 0x5ea   : > { %v2000_v53 = vpop.xlane.xlu1 %1999 }
 0x5eb   : > { %5114 = vpow2.f32 %v2116_v31  ;;  %v2058_v33 = vsub.f32 %v6404_v47, %v2000_v53  ;;  %v2102_v47 = vmul.f32 1.442695, %v2050_v12 }
 0x5ec   : > { %v6522_v58 = vpop.eup %5106  ;;  %5116 = vpow2.f32 %v2098_v3  ;;  %v2018_v54 = vpop.xlane.xlu0 %2017 }
 0x5ed   : > { %v2118_v45 = vmul.f32 1.442695, %v2058_v33  ;;  %v2202_v0 = vsel %vm1924_vm9, %v6522_v58, 0.0 }
 0x5ee   : > { %v6528_v10 = vpop.xlane.xlu1 %2002  ;;  %2203 = vadd.xlane.f32.xlu0 %v2202_v0 }
 0x5ef   : > { %5118 = vpow2.f32 %v2118_v45 }
 0x5f0   : > { %v6530_v5 = vpop.eup %5108  ;;  %5120 = vpow2.f32 %v2100_v37  ;;  %v6532_v11 = vpop.xlane.xlu0 %2020  ;;  %v2128_v37 = vmul.f32 1.442695, %v2063_v60 }
 0x5f1   : > { %5122 = vpow2.f32 %v2104_v63  ;;  %v2205_v39 = vsel %vm1924_vm9, %v6530_v5, 0.0  ;;  %v6536_v41 = vpop.eup %5110 }
 0x5f2   : > { %v6538_v57 = vpop.xlane.xlu1 %2005  ;;  %2206 = vadd.xlane.f32.xlu1 %v2205_v39  ;;  %5124 = vpow2.f32 %v2102_v47  ;;  %v2181_v18 = vsel %vm1924_vm9, %v6536_v41, 0.0 }
 0x5f3   : > { %5126 = vpow2.f32 %v2124_v24 }
 0x5f4   : > { %v6541_v26 = vpop.xlane.xlu0 %2023  ;;  %v6545_v1 = vpop.eup %5112 }
 0x5f5   : > { %v2208_v19 = vsel %vm1924_vm9, %v6545_v1, 0.0 }
 0x5f6   : > { %v2144_v6 = vpop.xlane.xlu1 %2143  ;;  %2182 = vadd.xlane.f32.xlu1 %v2181_v18 }
 0x5f7   : > { %5128 = vrcp.f32 %v2144_v6 }
 0x5f8   : > { %v6547_v3 = vpop.eup %5114  ;;  %v2156_v31 = vpop.xlane.xlu0 %2155 }
 0x5f9   : > { %v6550_v53 = vpop.eup %5116  ;;  %v2211_v61 = vsel %vm1924_vm9, %v6547_v3, 0.0  ;;  %5130 = vrcp.f32 %v2156_v31 }
 0x5fa   : > { %2209 = vadd.xlane.f32.xlu1 %v2208_v19  ;;  %2212 = vadd.xlane.f32.xlu0 %v2211_v61  ;;  %5132 = vrcp.f32 %v2147_v44  ;;  %v2184_v48 = vsel %vm1924_vm9, %v6550_v53, 0.0  ;;  %v2150_v45 = vpop.xlane.xlu1 %2149  ;;  %v2064_v44 = vsub.f32 %v6408_v8, %v2018_v54 }
 0x5fb   : > { %5134 = vpow2.f32 %v2126_v17 }
 0x5fc   : > { %v6556_v33 = vpop.eup %5118  ;;  %v6558_v12 = vpop.xlane.xlu0 %2026  ;;  %5136 = vpow2.f32 %v2128_v37  ;;  %v2130_v18 = vmul.f32 1.442695, %v2064_v44 }
 0x5fd   : > { %v6560_v40 = vpop.eup %5120  ;;  %v2214_v63 = vsel %vm1924_vm9, %v6556_v33, 0.0  ;;  %5138 = vrcp.f32 %v2150_v45  ;;  %v7315_v45 = vmov 0.0  }
 0x5fe   : > { %v6566_v30 = vpop.eup %5122  ;;  %2185 = vadd.xlane.f32.xlu1 %v2184_v48  ;;  %2215 = vadd.xlane.f32.xlu0 %v2214_v63  ;;  %v2187_v24 = vsel %vm1924_vm9, %v6560_v40, 0.0  ;;  %v2153_v6 = vpop.xlane.xlu1 %2152 }
 0x5ff   : > { %v6569_v47 = vpop.eup %5124  ;;  %v2193_v39 = vsel %vm1949_vm10, %v6566_v30, 0.0 }
 0x600   : > { %v2159_v0 = vpop.xlane.xlu0 %2158  ;;  %v6575_v7 = vpop.eup %5126  ;;  %v2190_v54 = vsel %vm1924_vm9, %v6569_v47, 0.0 }
 0x601   : > { %5140 = vrcp.f32 %v2159_v0  ;;  %v2223_v60 = vsel %vm1924_vm9, %v6575_v7, 0.0 }
 0x602   : > { %2188 = vadd.xlane.f32.xlu1 %v2187_v24  ;;  %2194 = vadd.xlane.f32.xlu0 %v2193_v39  ;;  %5142 = vrcp.f32 %v2153_v6  ;;  %v7317_v39 = vld [vmem:[#allocation24_spill] sm:$0xff] }
 0x603   : > { %5144 = vpow2.f32 %v2130_v18  ;;  %v7321_v6 = vld [vmem:[#allocation28_spill] sm:$0xff] }
 0x604   : > { %v6577_v17 = vpop.xlane.xlu0 %2029  ;;  %v5129_v8 = vpop.eup %5128 }
 0x605   : > { %v2286_v31 = vmul.f32 %v5129_v8, %v6433_v50  ;;  %v2068_v8 = vsub.f32 %v7321_v6, %v6577_v17 }
 0x606   : > { %2191 = vadd.xlane.f32.xlu1 %v2190_v54  ;;  %2224 = vadd.xlane.f32.xlu0 %v2223_v60  ;;  %v5131_v19 = vpop.eup %5130  ;;  %v7322_v54 = vld [vmem:[#allocation18_spill] sm:$0xff]  ;;  %v7323_v60 = vld [vmem:[#allocation19_spill] sm:$0xff] }
 0x607   : > { %v5133_v61 = vpop.eup %5132  ;;  %v2290_v37 = vmul.f32 %v5131_v19, %v6437_v42  ;;  %4625 = vmatmul.mubr.msk.f32.vlgmr.msra.gmra.mxu0 %vm1924_vm9, %v2286_v31 }
 0x608   : > { %v2162_v48 = vpop.xlane.xlu0 %2161  ;;  %v6586_v63 = vpop.eup %5134  ;;  %4652 = vmatpush3.msk.msra.mxu0 %vm2375_vm8, %v6360_v59  ;;  %4627 = vmatprep.mubr.msk.f32.mxu0 %vm5364_vm6, %v7315_v45  ;;  %v2287_v50 = vmul.f32 %v5133_v61, %v6400_v4  ;;  %v2138_v61 = vmul.f32 1.442695, %v2068_v8 }
 0x609   : > { %4653 = vmatprep.subr.mxu0 %v7315_v45  ;;  %4637 = vmatmul.mubr.msk.f32.vlgmr.msra.gmra.mxu1 %vm1924_vm9, %v2290_v37  ;;  %5146 = vrcp.f32 %v2162_v48  ;;  %v2226_v59 = vsel %vm1924_vm9, %v6586_v63, 0.0  ;;  %v6604_v44 = vpop.eup %5136  ;;  %v7325_v37 = vld [vmem:[#allocation21_spill] sm:$0xff]  ;;  %v7326_v48 = vld [vmem:[#allocation22_spill] sm:$0xff] }
 0x60a   : > { %4654 = vmatpush3.msra.mxu0 %v6280_v20  ;;  %4697 = vmatpush3.msk.msra.mxu1 %vm2375_vm8, %v6364_v2  ;;  %v5139_v20 = vpop.eup %5138 }
 0x60b   : > { %4655 = vmatprep.subr.mxu0 %v7315_v45  ;;  %4698 = vmatprep.subr.mxu1 %v7315_v45 }
 0x60c   : > { %v6602_v42 = vpop.xlane.xlu0 %2032  ;;  %2227 = vadd.xlane.f32.xlu0 %v2226_v59  ;;  %4628 = vmatmul.mubr.msk.f32.gmra.mxu0 %vm1924_vm9, %v2287_v50  ;;  %v7327_v50 = vld [vmem:[#allocation29_spill] sm:$0xff] }
 0x60d   : > { %4656 = vmatpush3.msra.mxu0 %v6290_v32  ;;  %4699 = vmatpush3.msra.mxu1 %v6336_v23  ;;  %v2229_v32 = vsel %vm1924_vm9, %v6604_v44, 0.0  ;;  %v2288_v23 = vmul.f32 %v5139_v20, %v6441_v29  ;;  %v2069_v59 = vsub.f32 %v7327_v50, %v6602_v42 }
 0x60e   : > { %v5141_v2 = vpop.eup %5140  ;;  %4657 = vmatprep.subr.mxu0 %v7315_v45  ;;  %4700 = vmatprep.subr.mxu1 %v7315_v45 }
 0x60f   : > { %4658 = vmatpush3.msra.mxu0 %v6284_v27  ;;  %4701 = vmatpush3.msra.mxu1 %v6346_v46  ;;  %v2291_v0 = vmul.f32 %v5141_v2, %v6455_v21  ;;  %v5143_v27 = vpop.eup %5142  ;;  %v2066_v21 = vsub.f32 %v6427_v16, %v6541_v26  ;;  %v7318_v16 = vld [vmem:[#allocation30_spill] sm:$0xff]  ;;  %v7319_v26 = vld [vmem:[#allocation20_spill] sm:$0xff]  ;;  %v7328_v2 = vld [vmem:[#allocation23_spill] sm:$0xff] }
 0x610   : > { %v2165_v4 = vpop.xlane.xlu0 %2164  ;;  %4630 = vmatprep.mubr.msk.f32.mxu0 %vm5364_vm6, %v7315_v45  ;;  %4659 = vmatprep.subr.mxu0 %v7315_v45  ;;  %v6626_v24 = vpop.eup %5144 }
 0x611   : > { %4702 = vmatprep.subr.mxu1 %v7315_v45  ;;  %2230 = vadd.xlane.f32.xlu0 %v2229_v32  ;;  %5148 = vrcp.f32 %v2165_v4  ;;  %v7329_v32 = vld [vmem:[#allocation35_spill] sm:$0xff] }
 0x612   : > { %4631 = vmatmul.mubr.msk.f32.gmra.mxu0 %vm1924_vm9, %v2288_v23  ;;  %4703 = vmatpush3.msra.mxu1 %v6354_v55  ;;  %v2232_v55 = vsel %vm1924_vm9, %v6626_v24, 0.0  ;;  %v2140_v23 = vmul.f32 1.442695, %v2069_v59 }
 0x613   : > { %4660 = vmatpush3.msra.mxu0 %v6300_v43  ;;  %4639 = vmatprep.mubr.msk.f32.mxu1 %vm5364_vm6, %v7315_v45  ;;  %v2289_v43 = vmul.f32 %v5143_v27, %v6450_v35 }
 0x614   : > { %v2168_v46 = vpop.xlane.xlu0 %2167  ;;  %4661 = vmatprep.subr.mxu0 %v7315_v45  ;;  %4704 = vmatprep.subr.mxu1 %v7315_v45 }
 0x615   : > { %5150 = vrcp.f32 %v2168_v46  ;;  %4640 = vmatmul.mubr.msk.f32.gmra.mxu1 %vm1924_vm9, %v2291_v0  ;;  %4662 = vmatpush3.msra.mxu0 %v6294_v36 }
 0x616   : > { %4705 = vmatpush3.msra.mxu1 %v6338_v28  ;;  %4633 = vmatprep.mubr.msk.f32.mxu0 %vm5364_vm6, %v7315_v45  ;;  %v5147_v29 = vpop.eup %5146 }
 0x617   : > { %4663 = vmatprep.subr.mxu0 %v7315_v45  ;;  %4706 = vmatprep.subr.mxu1 %v7315_v45  ;;  %v2292_v36 = vmul.f32 %v5147_v29, %v6465_v15 }
 0x618   : > { %2233 = vadd.xlane.f32.xlu0 %v2232_v55  ;;  %4634 = vmatmul.mubr.msk.f32.gmra.mxu0 %vm1924_vm9, %v2289_v43 }
 0x619   : > { %4664 = vmatpush3.msra.mxu0 %v6314_v56  ;;  %4707 = vmatpush3.msra.mxu1 %v6342_v14 }
 0x61a   : > { %4665 = vmatprep.subr.mxu0 %v7315_v45  ;;  %4708 = vmatprep.subr.mxu1 %v7315_v45 }
 0x61b   : > { %4666 = vmatpush3.msra.mxu0 %v6304_v38  ;;  %4709 = vmatpush3.msra.mxu1 %v6348_v49  ;;  %v2065_v49 = vsub.f32 %v6417_v9, %v6532_v11  ;;  %v7316_v9 = vld [vmem:[#allocation27_spill] sm:$0xff] }
 0x61c   : > { %4667 = vmatprep.subr.mxu0 %v7315_v45  ;;  %4710 = vmatprep.subr.mxu1 %v7315_v45  ;;  %v2067_v11 = vsub.f32 %v7316_v9, %v6558_v12 }
 0x61d   : > { %4668 = vmatpush3.msra.mxu0 %v6330_v13  ;;  %2818 = vrot.lane.b32.xlu1 %v6018_v62, %s5369_s23  ;;  %v2132_v35 = vmul.f32 1.442695, %v2065_v49 }
 0x61e   : > { %v5149_v56 = vpop.eup %5148  ;;  %4711 = vmatpush3.msra.mxu1 %v6356_v25  ;;  %4642 = vmatprep.mubr.msk.f32.mxu1 %vm5364_vm6, %v7315_v45  ;;  %v2136_v12 = vmul.f32 1.442695, %v2067_v11 }
 0x61f   : > { %v2171_v38 = vpop.xlane.xlu0 %2170  ;;  %4643 = vmatmul.mubr.msk.f32.gmra.mxu1 %vm1924_vm9, %v2292_v36  ;;  %v2293_v28 = vmul.f32 %v5149_v56, %v6473_v51  ;;  %4669 = vmatprep.mubr.msk.f32.mxu0 %vm5364_vm6, %v7315_v45 }
 0x620   : > { %5152 = vrcp.f32 %v2171_v38  ;;  %4645 = vmatprep.mubr.msk.f32.mxu1 %vm5364_vm6, %v7315_v45  ;;  %4741 = vmatprep.subr.mxu0 %v7315_v45 }
 0x621   : > { %4712 = vmatprep.subr.mxu1 %v7315_v45 }
 0x622   : > { %v5151_v62 = vpop.eup %5150 }
 0x623   : > { %v2174_v13 = vpop.xlane.xlu1 %2173  ;;  %4646 = vmatmul.mubr.msk.f32.gmra.mxu1 %vm1924_vm9, %v2293_v28  ;;  %v2294_v14 = vmul.f32 %v5151_v62, %v6478_v52  ;;  %v2134_v52 = vmul.f32 1.442695, %v2066_v21 }
 0x624   : > { %5154 = vrcp.f32 %v2174_v13  ;;  %4648 = vmatprep.mubr.msk.f32.mxu1 %vm5364_vm6, %v7315_v45 }
 0x625   : > { %5156 = vpow2.f32 %v2132_v35 }
 0x626   : > { %5158 = vpow2.f32 %v2134_v52 }
 0x627   : > { %4649 = vmatmul.mubr.msk.f32.gmra.mxu1 %vm1924_vm9, %v2294_v14  ;;  %5160 = vpow2.f32 %v2136_v12 }
 0x628   : > { %4714 = vmatprep.mubr.msk.f32.mxu1 %vm5364_vm6, %v7315_v45 }
 0x62b   : > { %v2180_v27 = vpop.xlane.xlu1 %2179 }
 0x62d   : > { %v5153_v25 = vpop.eup %5152 }
 0x62e   : > { %v2295_v15 = vmul.f32 %v5153_v25, %v6484_v22  ;;  %2653 = vrot.lane.b32.xlu0 %v5932_v34, %s5369_s23  ;;  %v7320_v34 = vld [vmem:[#allocation25_spill] sm:$0xff]  ;;  %v7330_v25 = vld [vmem:[#allocation34_spill] sm:$0xff] }
 0x62f   : > { %v2059_v18 = vsub.f32 %v7320_v34, %v6528_v10  ;;  %v7324_v10 = vld [vmem:[#allocation26_spill] sm:$0xff] }
 0x630   : > { %4670 = vmatmul.mubr.msk.f32.vlgmr.msra.gmra.mxu0 %vm1924_vm9, %v2295_v15  ;;  %v2060_v19 = vsub.f32 %v7324_v10, %v6538_v57 }
 0x631   : > { %v5155_v51 = vpop.eup %5154  ;;  %4742 = vmatpush3.msk.msra.mxu0 %vm2375_vm8, %v7317_v39  ;;  %4672 = vmatprep.mubr.msk.f32.mxu0 %vm5364_vm6, %v7315_v45  ;;  %v2120_v31 = vmul.f32 1.442695, %v2059_v18 }
 0x632   : > { %4743 = vmatprep.subr.mxu0 %v7315_v45  ;;  %v2296_v22 = vmul.f32 %v5155_v51, %v7318_v16  ;;  %v2122_v20 = vmul.f32 1.442695, %v2060_v19  ;;  %v6711_v57 = vpop.eup %5156  ;;  %v7331_v51 = vld [vmem:[#allocation31_spill] sm:$0xff] }
 0x633   : > { %4744 = vmatpush3.msra.mxu0 %v7319_v26  ;;  %5162 = vpow2.f32 %v2120_v31  ;;  %v2235_v42 = vsel %vm1924_vm9, %v6711_v57, 0.0  ;;  %v6720_v0 = vpop.eup %5158 }
 0x634   : > { %4745 = vmatprep.subr.mxu0 %v7315_v45  ;;  %4673 = vmatmul.mubr.msk.f32.gmra.mxu0 %vm1924_vm9, %v2296_v22  ;;  %5164 = vpow2.f32 %v2138_v61  ;;  %v2238_v43 = vsel %vm1924_vm9, %v6720_v0, 0.0  ;;  %v6724_v55 = vpop.eup %5160 }
 0x635   : > { %4746 = vmatpush3.msra.mxu0 %v7322_v54  ;;  %4675 = vmatprep.mubr.msk.f32.mxu0 %vm5364_vm6, %v7315_v45  ;;  %5166 = vpow2.f32 %v2122_v20  ;;  %v2241_v36 = vsel %vm1924_vm9, %v6724_v55, 0.0 }
 0x636   : > { %4747 = vmatprep.subr.mxu0 %v7315_v45 }
 0x637   : > { %4748 = vmatpush3.msra.mxu0 %v7323_v60 }
 0x638   : > { %4749 = vmatprep.subr.mxu0 %v7315_v45 }
 0x639   : > { %4750 = vmatpush3.msra.mxu0 %v7325_v37 }
 0x63a   : > { %4751 = vmatprep.subr.mxu0 %v7315_v45  ;;  %v6704_v17 = vpop.xlane.xlu0 %2197 }
 0x63b   : > { %4752 = vmatpush3.msra.mxu0 %v7326_v48 }
 0x63c   : > { %4753 = vmatprep.subr.mxu0 %v7315_v45 }
 0x63d   : > { %4754 = vmatpush3.msra.mxu0 %v7328_v2 }
 0x63e   : > { %4755 = vmatprep.subr.mxu0 %v7315_v45  ;;  %v6714_v4 = vpop.xlane.xlu0 %2200 }
 0x63f   : > { %4756 = vmatpush3.msra.mxu0 %v7329_v32 }
 0x640   : > { %4757 = vmatprep.subr.mxu0 %v7315_v45  ;;  %v6726_v29 = vpop.eup %5162 }
 0x641   : > { %2236 = vadd.xlane.f32.xlu1 %v2235_v42  ;;  %v6730_v56 = vpop.eup %5164  ;;  %v2217_v28 = vsel %vm1924_vm9, %v6726_v29, 0.0 }
 0x642   : > { %v2177_v46 = vpop.xlane.xlu0 %2176  ;;  %v2244_v38 = vsel %vm1924_vm9, %v6730_v56, 0.0  ;;  %v6736_v62 = vpop.eup %5166 }
 0x643   : > { %5168 = vrcp.f32 %v2177_v46  ;;  %v2220_v49 = vsel %vm1949_vm10, %v6736_v62, 0.0  ;;  %v7333_v46 = vld [vmem:[#allocation33_spill] sm:$0xff] }
 0x644   : > { %5170 = vpow2.f32 %v2140_v23 }
 0x645   : > { %5172 = vrcp.f32 %v2180_v27  ;;  %2239 = vadd.xlane.f32.xlu1 %v2238_v43 }
 0x649   : > { %2242 = vadd.xlane.f32.xlu1 %v2241_v36 }
 0x64d   : > { %2245 = vadd.xlane.f32.xlu1 %v2244_v38  ;;  %2218 = vadd.xlane.f32.xlu0 %v2217_v28 }
 0x650   : > { %v5169_v13 = vpop.eup %5168 }
 0x651   : > { %v6738_v14 = vpop.eup %5170  ;;  %v2297_v35 = vmul.f32 %v5169_v13, %v7330_v25  ;;  %2221 = vadd.xlane.f32.xlu0 %v2220_v49 }
 0x652   : > { %v5173_v21 = vpop.eup %5172  ;;  %v2247_v15 = vsel %vm1949_vm10, %v6738_v14, 0.0 }
 0x653   : > { %4676 = vmatmul.mubr.msk.f32.gmra.mxu0 %vm1924_vm9, %v2297_v35  ;;  %v2298_v52 = vmul.f32 %v5173_v21, %v7331_v51 }
 0x654   : > { %4678 = vmatprep.mubr.msk.f32.mxu0 %vm5364_vm6, %v7315_v45 }
 0x655   : > { %2248 = vadd.xlane.f32.xlu0 %v2247_v15 }
 0x657   : > { %4679 = vmatmul.mubr.msk.f32.gmra.mxu0 %vm1924_vm9, %v2298_v52 }
 0x658   : > { %4681 = vmatprep.mubr.msk.f32.mxu0 %vm5364_vm6, %v7315_v45 }
 0x677   : > { %v2204_v11 = vpop.xlane.xlu0 %2203 }
 0x67b   : > { %v2207_v9 = vpop.xlane.xlu1 %2206 }
 0x67f   : > { %v2183_v39 = vpop.xlane.xlu1 %2182 }
 0x680   : > { %5174 = vrcp.f32 %v2183_v39 }
 0x683   : > { %v2210_v16 = vpop.xlane.xlu1 %2209  ;;  %v2213_v22 = vpop.xlane.xlu0 %2212 }
 0x687   : > { %v2186_v26 = vpop.xlane.xlu1 %2185  ;;  %v6752_v34 = vpop.xlane.xlu0 %2215 }
 0x688   : > { %5176 = vrcp.f32 %v2186_v26 }
 0x68b   : > { %v2189_v18 = vpop.xlane.xlu1 %2188  ;;  %v2195_v12 = vpop.xlane.xlu0 %2194 }
 0x68c   : > { %5178 = vrcp.f32 %v2189_v18 }
 0x68d   : > { %v5175_v6 = vpop.eup %5174 }
 0x68e   : > { %v2299_v8 = vmul.f32 %v5175_v6, %v6536_v41 }
 0x68f   : > { %v2192_v54 = vpop.xlane.xlu1 %2191  ;;  %v2225_v60 = vpop.xlane.xlu0 %2224 }
 0x690   : > { %5180 = vrcp.f32 %v2192_v54  ;;  %4682 = vmatmul.mubr.msk.f32.gmra.mxu0 %vm1924_vm9, %v2299_v8 }
 0x691   : > { %4684 = vmatprep.mubr.msk.f32.mxu0 %vm5364_vm6, %v7315_v45  ;;  %5182 = vrcp.f32 %v2195_v12 }
 0x692   : > { %5184 = vrcp.f32 %v6704_v17 }
 0x693   : > { %v2819_v31 = vpop.permute.xlu1 %2818  ;;  %5186 = vrcp.f32 %v2225_v60 }
 0x694   : > { %4758 = vmatpush3.msra.mxu0 %v2819_v31  ;;  %5188 = vrcp.f32 %v6714_v4 }
 0x695   : > { %v5177_v10 = vpop.eup %5176  ;;  %4810 = vmatprep.subr.bf16.mxu0 %v7315_v45  ;;  %v2228_v19 = vpop.xlane.xlu0 %2227 }
 0x696   : > { %v2300_v41 = vmul.f32 %v5177_v10, %v6550_v53  ;;  %5190 = vrcp.f32 %v2228_v19 }
 0x697   : > { %5192 = vrcp.f32 %v2204_v11 }
 0x698   : > { %4685 = vmatmul.mubr.msk.f32.gmra.mxu0 %vm1924_vm9, %v2300_v41 }
 0x699   : > { %v5179_v61 = vpop.eup %5178  ;;  %4687 = vmatprep.mubr.msk.f32.mxu0 %vm5364_vm6, %v7315_v45 }
 0x69a   : > { %v2301_v37 = vmul.f32 %v5179_v61, %v6560_v40  ;;  %v2231_v48 = vpop.xlane.xlu0 %2230 }
 0x69b   : > { %5194 = vrcp.f32 %v2231_v48 }
 0x69c   : > { %4688 = vmatmul.mubr.msk.f32.gmra.mxu0 %vm1924_vm9, %v2301_v37  ;;  %5196 = vrcp.f32 %v2207_v9 }
 0x69d   : > { %v5181_v17 = vpop.eup %5180  ;;  %4690 = vmatprep.mubr.msk.f32.mxu0 %vm5364_vm6, %v7315_v45 }
 0x69e   : > { %v2302_v53 = vmul.f32 %v5181_v17, %v6569_v47  ;;  %v5183_v50 = vpop.eup %5182  ;;  %v7332_v47 = vld [vmem:[#allocation32_spill] sm:$0xff] }
 0x69f   : > { %v5185_v59 = vpop.eup %5184  ;;  %v2303_v20 = vmul.f32 %v5183_v50, %v6566_v30 }
 0x6a0   : > { %4691 = vmatmul.mubr.msk.f32.gmra.mxu0 %vm1924_vm9, %v2302_v53  ;;  %v5187_v2 = vpop.eup %5186  ;;  %v2304_v32 = vmul.f32 %v5185_v59, %v7332_v47 }
 0x6a1   : > { %4693 = vmatprep.mubr.msk.f32.mxu0 %vm5364_vm6, %v7315_v45  ;;  %v2234_v40 = vpop.xlane.xlu0 %2233  ;;  %v5189_v4 = vpop.eup %5188  ;;  %v2313_v23 = vmul.f32 %v5187_v2, %v6575_v7 }
 0x6a2   : > { %5198 = vrcp.f32 %v2234_v40  ;;  %v2305_v43 = vmul.f32 %v5189_v4, %v7333_v46 }
 0x6a3   : > { %5200 = vrcp.f32 %v2210_v16  ;;  %v5191_v27 = vpop.eup %5190 }
 0x6a4   : > { %4694 = vmatmul.mubr.msk.f32.gmra.mxu0 %vm1924_vm9, %v2303_v20  ;;  %v5193_v30 = vpop.eup %5192  ;;  %5202 = vrcp.f32 %v2213_v22  ;;  %v2314_v36 = vmul.f32 %v5191_v27, %v6586_v63 }
 0x6a5   : > { %4759 = vmatprep.mubr.msk.f32.mxu0 %vm5364_vm6, %v7315_v45  ;;  %v2654_v42 = vpop.permute.xlu0 %2653  ;;  %5204 = vrcp.f32 %v6752_v34  ;;  %v2306_v38 = vmul.f32 %v5193_v30, %v6522_v58 }
 0x6a6   : > { %4713 = vmatpush3.msra.mxu1 %v2654_v42 }
 0x6a7   : > { %4715 = vmatmul.mubr.msk.f32.vlgmr.msra.gmra.mxu1 %vm1924_vm9, %v2304_v32  ;;  %4786 = vmatprep.subr.bf16.mxu1 %v7315_v45 }
 0x6a8   : > { %4760 = vmatmul.mubr.msk.f32.vlgmr.msra.gmra.mxu0 %vm1924_vm9, %v2313_v23  ;;  %4717 = vmatprep.mubr.msk.f32.mxu1 %vm5364_vm6, %v7315_v45  ;;  %v5195_v7 = vpop.eup %5194 }
 0x6a9   : > { %4762 = vmatprep.mubr.msk.f32.mxu0 %vm5364_vm6, %v7315_v45  ;;  %v2315_v28 = vmul.f32 %v5195_v7, %v6604_v44  ;;  %v5197_v63 = vpop.eup %5196 }
 0x6aa   : > { %v2307_v49 = vmul.f32 %v5197_v63, %v6530_v5 }
 0x6ab   : > { %4718 = vmatmul.mubr.msk.f32.gmra.mxu1 %vm1924_vm9, %v2305_v43 }
 0x6ac   : > { %4763 = vmatmul.mubr.msk.f32.gmra.mxu0 %vm1924_vm9, %v2314_v36  ;;  %4720 = vmatprep.mubr.msk.f32.mxu1 %vm5364_vm6, %v7315_v45 }
 0x6ad   : > { %4765 = vmatprep.mubr.msk.f32.mxu0 %vm5364_vm6, %v7315_v45 }
 0x6af   : > { %v5199_v13 = vpop.eup %5198  ;;  %4721 = vmatmul.mubr.msk.f32.gmra.mxu1 %vm1924_vm9, %v2306_v38 }
 0x6b0   : > { %4766 = vmatmul.mubr.msk.f32.gmra.mxu0 %vm1924_vm9, %v2315_v28  ;;  %4723 = vmatprep.mubr.msk.f32.mxu1 %vm5364_vm6, %v7315_v45  ;;  %v2316_v25 = vmul.f32 %v5199_v13, %v6626_v24  ;;  %v5201_v35 = vpop.eup %5200 }
 0x6b1   : > { %4768 = vmatprep.mubr.msk.f32.mxu0 %vm5364_vm6, %v7315_v45  ;;  %v2308_v58 = vmul.f32 %v5201_v35, %v6545_v1  ;;  %v5203_v44 = vpop.eup %5202 }
 0x6b2   : > { %v2309_v5 = vmul.f32 %v5203_v44, %v6547_v3  ;;  %v5205_v24 = vpop.eup %5204 }
 0x6b3   : > { %4724 = vmatmul.mubr.msk.f32.gmra.mxu1 %vm1924_vm9, %v2307_v49  ;;  %v2310_v21 = vmul.f32 %v5205_v24, %v6556_v33 }
 0x6b4   : > { %4769 = vmatmul.mubr.msk.f32.gmra.mxu0 %vm1924_vm9, %v2316_v25  ;;  %4726 = vmatprep.mubr.msk.f32.mxu1 %vm5364_vm6, %v7315_v45 }
 0x6b5   : > { %4771 = vmatprep.mubr.msk.f32.mxu0 %vm5364_vm6, %v7315_v45 }
 0x6b7   : > { %4727 = vmatmul.mubr.msk.f32.gmra.mxu1 %vm1924_vm9, %v2308_v58  ;;  %v5046_v58 = vld [vmem:[%s5571_s1 + $0x8] sm:$0xff]  }
 0x6b8   : > { %4729 = vmatprep.mubr.msk.f32.mxu1 %vm5364_vm6, %v7315_v45  ;;  %4787 = vmatpush3.bf16.msra.mxu1 %v5046_v58 }
 0x6b9   : > { %4788 = vmatprep.subr.bf16.mxu1 %v7315_v45 }
 0x6bb   : > { %4730 = vmatmul.mubr.msk.f32.gmra.mxu1 %vm1924_vm9, %v2309_v5 }
 0x6bc   : > { %4732 = vmatprep.mubr.msk.f32.mxu1 %vm5364_vm6, %v7315_v45 }
 0x6bf   : > { %4733 = vmatmul.mubr.msk.f32.gmra.mxu1 %vm1924_vm9, %v2310_v21 }
 0x6c0   : > { %4735 = vmatprep.mubr.msk.f32.mxu1 %vm5364_vm6, %v7315_v45 }
 0x6c7   : > { %v6823_v1 = vpop.f32.mrf.mxu0 }
 0x6c9   : > { %v4626_v15 = vpop.f32.mrf.mxu0  ;;  %v6825_v51 = vpop.f32.mrf.mxu1 }
 0x6ca   : > { %v2237_v52 = vpop.xlane.xlu1 %2236 }
 0x6cb   : > { %5206 = vrcp.f32 %v2237_v52  ;;  %v4638_v3 = vpop.f32.mrf.mxu1  ;;  %v5047_v52 = vld [vmem:[%s5571_s1] sm:$0xff]  }
 0x6cc   : > { %v6827_v9 = vpop.f32.mrf.mxu0  ;;  %4789 = vmatpush3.bf16.msra.mxu1 %v5047_v52 }
 0x6cd   : > { %4834 = vmatprep.subr.bf16.mxu1 %v7315_v45 }
 0x6ce   : > { %v2240_v11 = vpop.xlane.xlu1 %2239  ;;  %v4629_v39 = vpop.f32.mrf.mxu0 }
 0x6cf   : > { %5208 = vrcp.f32 %v2240_v11 }
 0x6d2   : > { %v2243_v16 = vpop.xlane.xlu1 %2242  ;;  %v6829_v33 = vpop.f32.mrf.mxu0 }
 0x6d3   : > { %5210 = vrcp.f32 %v2243_v16 }
 0x6d4   : > { %v4632_v22 = vpop.f32.mrf.mxu0 }
 0x6d5   : > { %v6831_v26 = vpop.f32.mrf.mxu1 }
 0x6d6   : > { %v2246_v34 = vpop.xlane.xlu1 %2245  ;;  %v2219_v18 = vpop.xlane.xlu0 %2218 }
 0x6d7   : > { %5212 = vrcp.f32 %v2246_v34  ;;  %v4641_v12 = vpop.f32.mrf.mxu1 }
 0x6d8   : > { %v5207_v6 = vpop.eup %5206  ;;  %5214 = vrcp.f32 %v2219_v18  ;;  %v6833_v8 = vpop.f32.mrf.mxu0 }
 0x6d9   : > { %v2317_v54 = vmul.f32 %v5207_v6, %v6711_v57 }
 0x6da   : > { %v2222_v60 = vpop.xlane.xlu0 %2221  ;;  %v4635_v31 = vpop.f32.mrf.mxu0 }
 0x6db   : > { %5216 = vrcp.f32 %v2222_v60  ;;  %4772 = vmatmul.mubr.msk.f32.gmra.mxu0 %vm1924_vm9, %v2317_v54 }
 0x6dc   : > { %v5209_v10 = vpop.eup %5208  ;;  %4774 = vmatprep.mubr.msk.f32.mxu0 %vm5364_vm6, %v7315_v45 }
 0x6dd   : > { %v2318_v19 = vmul.f32 %v5209_v10, %v6720_v0 }
 0x6de   : > { %v2249_v41 = vpop.xlane.xlu0 %2248 }
 0x6df   : > { %5218 = vrcp.f32 %v2249_v41  ;;  %v6840_v61 = vpop.f32.mrf.mxu1  ;;  %4775 = vmatmul.mubr.msk.f32.gmra.mxu0 %vm1924_vm9, %v2318_v19 }
 0x6e0   : > { %v5211_v37 = vpop.eup %5210  ;;  %4777 = vmatprep.mubr.msk.f32.mxu0 %vm5364_vm6, %v7315_v45 }
 0x6e1   : > { %v4644_v57 = vpop.f32.mrf.mxu1  ;;  %v2319_v48 = vmul.f32 %v5211_v37, %v6724_v55 }
 0x6e3   : > { %4778 = vmatmul.mubr.msk.f32.gmra.mxu0 %vm1924_vm9, %v2319_v48  ;;  %v6847_v17 = vpop.f32.mrf.mxu1 }
 0x6e4   : > { %v5213_v53 = vpop.eup %5212  ;;  %4780 = vmatprep.mubr.msk.f32.mxu0 %vm5364_vm6, %v7315_v45 }
 0x6e5   : > { %v5215_v0 = vpop.eup %5214  ;;  %v2320_v50 = vmul.f32 %v5213_v53, %v6730_v56  ;;  %v4647_v59 = vpop.f32.mrf.mxu1 }
 0x6e6   : > { %v2311_v40 = vmul.f32 %v5215_v0, %v6726_v29 }
 0x6e7   : > { %4781 = vmatmul.mubr.msk.f32.gmra.mxu0 %vm1924_vm9, %v2320_v50  ;;  %v6854_v20 = vpop.f32.mrf.mxu1 }
 0x6e8   : > { %v5217_v2 = vpop.eup %5216  ;;  %4736 = vmatmul.mubr.msk.f32.gmra.mxu1 %vm1924_vm9, %v2311_v40  ;;  %4783 = vmatprep.mubr.msk.f32.mxu0 %vm5364_vm6, %v7315_v45 }
 0x6e9   : > { %4738 = vmatprep.mubr.msk.f32.mxu1 %vm5364_vm6, %v7315_v45  ;;  %v2312_v55 = vmul.f32 %v5217_v2, %v6736_v62  ;;  %v4650_v4 = vpop.f32.mrf.mxu1 }
 0x6ec   : > { %v5219_v56 = vpop.eup %5218  ;;  %4739 = vmatmul.mubr.msk.f32.gmra.mxu1 %vm1924_vm9, %v2312_v55 }
 0x6ed   : > { %v2321_v29 = vmul.f32 %v5219_v56, %v6738_v14  ;;  %4790 = vmatprep.mubr.msk.bf16.mxu1 %vm5364_vm6, %v7315_v45 }
 0x6ef   : > { %4784 = vmatmul.mubr.msk.f32.gmra.mxu0 %vm1924_vm9, %v2321_v29 }
 0x6f0   : > { %v2609_v47 = vpop.f32.mrf.mxu0  ;;  %4814 = vmatprep.mubr.msk.bf16.mxu0 %vm5364_vm6, %v7315_v45 }
 0x6f2   : > { %v4671_v32 = vpop.f32.mrf.mxu0 }
 0x6f4   : > { %v2614_v23 = vpop.f32.mrf.mxu0 }
 0x6f5   : > { %v4984_v42 = vpack.i.bf16 %v2614_v23, %v2609_v47 }
 0x6f6   : > { %v4674_v27 = vpop.f32.mrf.mxu0 }
 0x6f7   : > { %4985 = vrot.lane.b32.xlu0 %v4984_v42, %s5370_s22 }
 0x713   : > { %v2619_v62 = vpop.f32.mrf.mxu0 }
 0x715   : > { %v4677_v30 = vpop.f32.mrf.mxu0 }
 0x717   : > { %v2624_v14 = vpop.f32.mrf.mxu0 }
 0x718   : > { %v4999_v46 = vpack.i.bf16 %v2624_v14, %v2619_v62 }
 0x719   : > { %v4680_v43 = vpop.f32.mrf.mxu0 }
 0x750   : > { %v2629_v36 = vpop.f32.mrf.mxu0 }
 0x752   : > { %v4683_v7 = vpop.f32.mrf.mxu0 }
 0x758   : > { %v2634_v38 = vpop.f32.mrf.mxu0 }
 0x759   : > { %v5014_v48 = vpack.i.bf16 %v2634_v38, %v2629_v36 }
 0x75a   : > { %v4686_v28 = vpop.f32.mrf.mxu0 }
 0x75c   : > { %v2639_v63 = vpop.f32.mrf.mxu0 }
 0x75e   : > { %v4689_v13 = vpop.f32.mrf.mxu0 }
 0x760   : > { %v2644_v49 = vpop.f32.mrf.mxu0 }
 0x761   : > { %v5029_v2 = vpack.i.bf16 %v2644_v49, %v2639_v63 }
 0x762   : > { %v4692_v25 = vpop.f32.mrf.mxu0 }
 0x764   : > { %v6870_v35 = vpop.f32.mrf.mxu0 }
 0x766   : > { %v4695_v44 = vpop.f32.mrf.mxu0 }
 0x767   : > { %v2774_v5 = vpop.f32.mrf.mxu1 }
 0x768   : > { %v2939_v24 = vpop.f32.mrf.mxu0 }
 0x769   : > { %v4716_v21 = vpop.f32.mrf.mxu1  ;;  %v4986_v63 = vpop.permute.xlu0 %4985 }
 0x76a   : > { %v4761_v15 = vpop.f32.mrf.mxu0  ;;  %v4988_v13 = vunpack.i.h.bf16 %v4986_v63  ;;  %v4987_v49 = vunpack.i.l.bf16 %v4986_v63 }
 0x76b   : > { %v2779_v3 = vpop.f32.mrf.mxu1 }
 0x76c   : > { %v2944_v11 = vpop.f32.mrf.mxu0  ;;  %v4989_v39 = vpack.i.bf16 %v2779_v3, %v2774_v5  ;;  %v3092_v15 = vsel %vm1249_vm7, %v6827_v9, %v4988_v13 }
 0x76d   : > { %v4994_v16 = vpack.i.bf16 %v2944_v11, %v2939_v24  ;;  %v4719_v22 = vpop.f32.mrf.mxu1 }
 0x76e   : > { %v4764_v34 = vpop.f32.mrf.mxu0  ;;  %4990 = vrot.lane.b32.xlu1 %v4989_v39, %s5371_s18 }
 0x76f   : > { %4995 = vrot.lane.b32.xlu0 %v4994_v16, %s5372_s0  ;;  %v2784_v18 = vpop.f32.mrf.mxu1 }
 0x770   : > { %v2949_v12 = vpop.f32.mrf.mxu0 }
 0x771   : > { %v4722_v6 = vpop.f32.mrf.mxu1 }
 0x772   : > { %v4767_v54 = vpop.f32.mrf.mxu0 }
 0x773   : > { %5000 = vrot.lane.b32.xlu0 %v4999_v46, %s5370_s22  ;;  %v2789_v60 = vpop.f32.mrf.mxu1 }
 0x774   : > { %v2954_v31 = vpop.f32.mrf.mxu0  ;;  %v5004_v10 = vpack.i.bf16 %v2789_v60, %v2784_v18 }
 0x775   : > { %v5009_v19 = vpack.i.bf16 %v2954_v31, %v2949_v12  ;;  %v4725_v41 = vpop.f32.mrf.mxu1 }
 0x776   : > { %v4770_v37 = vpop.f32.mrf.mxu0  ;;  %5005 = vrot.lane.b32.xlu1 %v5004_v10, %s5371_s18 }
 0x777   : > { %5010 = vrot.lane.b32.xlu0 %v5009_v19, %s5372_s0  ;;  %v2794_v57 = vpop.f32.mrf.mxu1 }
 0x779   : > { %v4728_v53 = vpop.f32.mrf.mxu1 }
 0x77a   : > { %5015 = vrot.lane.b32.xlu1 %v5014_v48, %s5370_s22 }
 0x77b   : > { %v2799_v0 = vpop.f32.mrf.mxu1 }
 0x77c   : > { %v5019_v50 = vpack.i.bf16 %v2799_v0, %v2794_v57 }
 0x77d   : > { %v4731_v59 = vpop.f32.mrf.mxu1 }
 0x77e   : > { %5020 = vrot.lane.b32.xlu0 %v5019_v50, %s5371_s18 }
 0x77f   : > { %v2804_v40 = vpop.f32.mrf.mxu1 }
 0x781   : > { %v4734_v55 = vpop.f32.mrf.mxu1 }
 0x782   : > { %5030 = vrot.lane.b32.xlu0 %v5029_v2, %s5370_s22 }
 0x79b   : > { %v2959_v4 = vpop.f32.mrf.mxu0 }
 0x79d   : > { %v4773_v56 = vpop.f32.mrf.mxu0 }
 0x79f   : > { %v2964_v29 = vpop.f32.mrf.mxu0 }
 0x7a0   : > { %v5024_v47 = vpack.i.bf16 %v2964_v29, %v2959_v4 }
 0x7a1   : > { %v4776_v32 = vpop.f32.mrf.mxu0 }
 0x7a2   : > { %5025 = vrot.lane.b32.xlu1 %v5024_v47, %s5372_s0 }
 0x7a3   : > { %v2969_v23 = vpop.f32.mrf.mxu0 }
 0x7a5   : > { %v4779_v42 = vpop.f32.mrf.mxu0 }
 0x7a7   : > { %v2974_v27 = vpop.f32.mrf.mxu0 }
 0x7a8   : > { %v2809_v62 = vpop.f32.mrf.mxu1  ;;  %v5039_v30 = vpack.i.bf16 %v2974_v27, %v2969_v23 }
 0x7a9   : > { %v5034_v14 = vpack.i.bf16 %v2809_v62, %v2804_v40  ;;  %v4782_v46 = vpop.f32.mrf.mxu0 }
 0x7aa   : > { %v4737_v43 = vpop.f32.mrf.mxu1  ;;  %5040 = vrot.lane.b32.xlu0 %v5039_v30, %s5372_s0 }
 0x7ab   : > { %5035 = vrot.lane.b32.xlu1 %v5034_v14, %s5371_s18 }
 0x7ac   : > { %v2814_v36 = vpop.f32.mrf.mxu1 }
 0x7ae   : > { %v4740_v7 = vpop.f32.mrf.mxu1  ;;  %3044 = vrot.lane.b32.xlu0 %v2814_v36, %s5371_s18 }
 0x7af   : > { %3008 = vrot.lane.b32.xlu1 %v6870_v35, %s5370_s22  ;;  %v2979_v38 = vpop.f32.mrf.mxu0  ;;  %v3091_v35 = vsel %vm1249_vm7, %v6823_v1, %v4987_v49 }
 0x7b1   : > { %v4785_v28 = vpop.f32.mrf.mxu0 }
 0x7b3   : > { %3080 = vrot.lane.b32.xlu1 %v2979_v38, %s5372_s0  ;;  %s7337_s0 = sld [smem:[#allocation45_spill]] (!%p4194_p1) }
 0x7e0   : > { %v4991_v25 = vpop.permute.xlu1 %4990 }
 0x7e1   : > { %v4996_v58 = vpop.permute.xlu0 %4995  ;;  %v4993_v44 = vunpack.i.h.bf16 %v4991_v25  ;;  %v4992_v5 = vunpack.i.l.bf16 %v4991_v25 }
 0x7e2   : > { %v4998_v24 = vunpack.i.h.bf16 %v4996_v58  ;;  %v4997_v21 = vunpack.i.l.bf16 %v4996_v58 }
 0x7e3   : > { %v3101_v52 = vsel %vm3100_vm11, %v3091_v35, %v4992_v5  ;;  %v3102_v3 = vsel %vm3100_vm11, %v3092_v15, %v4993_v44 }
 0x7e4   : > { %v3112_v11 = vsel %vm3110_vm12, %v3102_v3, %v4998_v24  ;;  %v3111_v39 = vsel %vm3110_vm12, %v3101_v52, %v4997_v21  ;;  %v5256_v3 = vld [vmem:[#allocation2] sm:$0xff] }
 0x7e5   : > { %v5001_v16 = vpop.permute.xlu0 %5000  ;;  %v3125_v22 = vpack.c.bf16 %v3112_v11, %v3111_v39 }
 0x7e6   : > { %v5003_v34 = vunpack.i.h.bf16 %v5001_v16  ;;  %v5002_v18 = vunpack.i.l.bf16 %v5001_v16 }
 0x7e7   : > { %4791 = vmatmul.mubr.msk.bf16.vlgmr.msra.gmra.mxu1 %vm907_vm4, %v3125_v22 }
 0x7e8   : > { %v5006_v12 = vpop.permute.xlu1 %5005  ;;  %v3094_v9 = vsel %vm1249_vm7, %v6833_v8, %v5003_v34  ;;  %v3093_v1 = vsel %vm1249_vm7, %v6829_v33, %v5002_v18  ;;  %4794 = vmatprep.mubr.msk.bf16.mxu1 %vm5364_vm6, %v7315_v45  ;;  %v5257_v18 = vld [vmem:[#allocation2 + $0x8] sm:$0xff] }
 0x7e9   : > { %v5011_v6 = vpop.permute.xlu0 %5010  ;;  %v5008_v54 = vunpack.i.h.bf16 %v5006_v12  ;;  %v5007_v60 = vunpack.i.l.bf16 %v5006_v12 }
 0x7ea   : > { %v5013_v31 = vunpack.i.h.bf16 %v5011_v6  ;;  %v5012_v10 = vunpack.i.l.bf16 %v5011_v6 }
 0x7eb   : > { %v3103_v19 = vsel %vm3100_vm11, %v3093_v1, %v5007_v60  ;;  %v3104_v41 = vsel %vm3100_vm11, %v3094_v9, %v5008_v54  ;;  %v5258_v60 = vld [vmem:[#allocation2 + $0x10] sm:$0xff] }
 0x7ec   : > { %v3114_v37 = vsel %vm3110_vm12, %v3104_v41, %v5013_v31  ;;  %v3113_v57 = vsel %vm3110_vm12, %v3103_v19, %v5012_v10  ;;  %v5016_v33 = vpop.permute.xlu1 %5015 }
 0x7ed   : > { %v3126_v8 = vpack.c.bf16 %v3114_v37, %v3113_v57  ;;  %v5018_v53 = vunpack.i.h.bf16 %v5016_v33  ;;  %v5017_v0 = vunpack.i.l.bf16 %v5016_v33  ;;  %v5259_v57 = vld [vmem:[#allocation2 + $0x18] sm:$0xff] }
 0x7ef   : > { %4795 = vmatmul.mubr.msk.bf16.gmra.mxu1 %vm907_vm4, %v3126_v8  ;;  %v3096_v2 = vsel %vm1249_vm7, %v6831_v26, %v5018_v53  ;;  %v3095_v55 = vsel %vm1249_vm7, %v6825_v51, %v5017_v0 }
 0x7f0   : > { %4798 = vmatprep.mubr.msk.bf16.mxu1 %vm5364_vm6, %v7315_v45  ;;  %v5021_v48 = vpop.permute.xlu0 %5020 }
 0x7f1   : > { %v5023_v50 = vunpack.i.h.bf16 %v5021_v48  ;;  %v5022_v59 = vunpack.i.l.bf16 %v5021_v48 }
 0x7f3   : > { %v3106_v29 = vsel %vm3100_vm11, %v3096_v2, %v5023_v50  ;;  %v3105_v47 = vsel %vm3100_vm11, %v3095_v55, %v5022_v59  ;;  %v5260_v50 = vld [vmem:[#allocation2 + $0x20] sm:$0xff] }
 0x7f4   : > { %v5031_v42 = vpop.permute.xlu0 %5030 }
 0x7f5   : > { %v5033_v62 = vunpack.i.h.bf16 %v5031_v42  ;;  %v5032_v30 = vunpack.i.l.bf16 %v5031_v42 }
 0x7f7   : > { %v3098_v7 = vsel %vm1249_vm7, %v6847_v17, %v5033_v62  ;;  %v3097_v38 = vsel %vm1249_vm7, %v6840_v61, %v5032_v30 }
 0x814   : > { %v5026_v40 = vpop.permute.xlu1 %5025 }
 0x815   : > { %v5028_v4 = vunpack.i.h.bf16 %v5026_v40  ;;  %v5027_v56 = vunpack.i.l.bf16 %v5026_v40 }
 0x817   : > { %v3116_v32 = vsel %vm3110_vm12, %v3106_v29, %v5028_v4  ;;  %v3115_v23 = vsel %vm3110_vm12, %v3105_v47, %v5027_v56  ;;  %v5261_v56 = vld [vmem:[#allocation2 + $0x28] sm:$0xff] }
 0x818   : > { %v3127_v27 = vpack.c.bf16 %v3116_v32, %v3115_v23 }
 0x81a   : > { %4799 = vmatmul.mubr.msk.bf16.gmra.mxu1 %vm907_vm4, %v3127_v27  ;;  %v5262_v27 = vld [vmem:[#allocation2 + $0x30] sm:$0xff] }
 0x81b   : > { %4802 = vmatprep.mubr.msk.bf16.mxu1 %vm5364_vm6, %v7315_v45 }
 0x81c   : > { %v5041_v51 = vpop.permute.xlu0 %5040 }
 0x81d   : > { %v5036_v26 = vpop.permute.xlu1 %5035  ;;  %v5043_v14 = vunpack.i.h.bf16 %v5041_v51  ;;  %v5042_v46 = vunpack.i.l.bf16 %v5041_v51 }
 0x81e   : > { %v5038_v43 = vunpack.i.h.bf16 %v5036_v26  ;;  %v5037_v36 = vunpack.i.l.bf16 %v5036_v26 }
 0x820   : > { %v3108_v28 = vsel %vm3100_vm11, %v3098_v7, %v5038_v43  ;;  %v3107_v63 = vsel %vm3100_vm11, %v3097_v38, %v5037_v36  ;;  %v3045_v5 = vpop.permute.xlu0 %3044 }
 0x821   : > { %v3118_v13 = vsel %vm3110_vm12, %v3108_v28, %v5043_v14  ;;  %v3117_v49 = vsel %vm3110_vm12, %v3107_v63, %v5042_v46  ;;  %v3009_v25 = vpop.permute.xlu1 %3008  ;;  %v5263_v46 = vld [vmem:[#allocation2 + $0x38] sm:$0xff]  ;;  %v5264_v63 = vld [vmem:[#allocation2 + $0x40] sm:$0x1] }
 0x822   : > { %v3128_v58 = vpack.c.bf16 %v3118_v13, %v3117_v49  ;;  %v3099_v44 = vsel %vm1249_vm7, %v6854_v20, %v3009_v25  ;;  %v4167_v20 = vld [vmem:[%s7334_s24] ss:$0 sm:$0xff] }
 0x823   : > { %v3109_v61 = vsel %vm3100_vm11, %v3099_v44, %v3045_v5 }
 0x824   : > { %4803 = vmatmul.mubr.msk.bf16.gmra.mxu1 %vm907_vm4, %v3128_v58 }
 0x825   : > { %v3081_v17 = vpop.permute.xlu1 %3080  ;;  %4806 = vmatprep.mubr.msk.bf16.mxu1 %vm5364_vm6, %v7315_v45 }
 0x826   : > { %v3119_v24 = vsel %vm3110_vm12, %v3109_v61, %v3081_v17 }
 0x827   : > { %v3129_v21 = vpack.c.bf16 %v3119_v24, %v3119_v24 }
 0x82c   : > { %4807 = vmatmul.mubr.msk.bf16.gmra.mxu1 %vm907_vm4, %v3129_v21 }
 0x82d   : > { %4850 = vmatprep.mubr.msk.bf16.mxu1 %vm5364_vm6, %v7315_v45 }
 0x8a7   : > { %v3197_v15 = vpop.f32.mrf.mxu1 }
 0x8a8   : > { %v3198_v35 = vadd.f32 %v4167_v20, %v3197_v15 }
 0x8a9   : > { %v4792_v52 = vpop.f32.mrf.mxu1 }
 0x8aa   : > { %v6947_v11 = vadd.f32 %v5256_v3, %v3198_v35 }
 0x8ab   : > { %v3200_v39 = vpop.f32.mrf.mxu1 }
 0x8ac   : > { %v3201_v16 = vadd.f32 %v4167_v20, %v3200_v39  ;;  %v3246_v22 = vsel %vm907_vm4, %v6947_v11, 0.0 }
 0x8ad   : > { %v4793_v34 = vpop.f32.mrf.mxu1  ;;  %3247 = vadd.xlane.f32.xlu0 %v3246_v22 }
 0x8ae   : > { %v6951_v12 = vadd.f32 %v5257_v18, %v3201_v16 }
 0x8af   : > { %v3205_v9 = vpop.f32.mrf.mxu1 }
 0x8b0   : > { %v3206_v1 = vadd.f32 %v4167_v20, %v3205_v9  ;;  %v3249_v6 = vsel %vm907_vm4, %v6951_v12, 0.0 }
 0x8b1   : > { %v4796_v54 = vpop.f32.mrf.mxu1  ;;  %3250 = vadd.xlane.f32.xlu1 %v3249_v6 }
 0x8b2   : > { %v6955_v31 = vadd.f32 %v5258_v60, %v3206_v1  ;;  %v5048_v60 = vld [vmem:[%s5585_s6 + $0x8] sm:$0xff]  }
 0x8b3   : > { %v3208_v10 = vpop.f32.mrf.mxu1  ;;  %4811 = vmatpush3.bf16.msra.mxu0 %v5048_v60 }
 0x8b4   : > { %v3209_v19 = vadd.f32 %v4167_v20, %v3208_v10  ;;  %v3252_v41 = vsel %vm907_vm4, %v6955_v31, 0.0  ;;  %v5049_v10 = vld [vmem:[%s5585_s6] sm:$0xff]   ;;  %4812 = vmatprep.subr.bf16.mxu0 %v7315_v45 }
 0x8b5   : > { %v4797_v37 = vpop.f32.mrf.mxu1  ;;  %3253 = vadd.xlane.f32.xlu0 %v3252_v41 }
 0x8b6   : > { %v6959_v8 = vadd.f32 %v5259_v57, %v3209_v19 }
 0x8b7   : > { %4813 = vmatpush3.bf16.msra.mxu0 %v5049_v10 }
 0x8b8   : > { %v3255_v33 = vsel %vm907_vm4, %v6959_v8, 0.0 }
 0x8b9   : > { %3256 = vadd.xlane.f32.xlu0 %v3255_v33 }
 0x8da   : > { %v3213_v48 = vpop.f32.mrf.mxu1 }
 0x8db   : > { %v3214_v53 = vadd.f32 %v4167_v20, %v3213_v48 }
 0x8dc   : > { %v4800_v0 = vpop.f32.mrf.mxu1 }
 0x8dd   : > { %v6963_v59 = vadd.f32 %v5260_v50, %v3214_v53 }
 0x8de   : > { %v3216_v40 = vpop.f32.mrf.mxu1 }
 0x8df   : > { %v3217_v2 = vadd.f32 %v4167_v20, %v3216_v40  ;;  %v3258_v55 = vsel %vm907_vm4, %v6963_v59, 0.0 }
 0x8e0   : > { %v4801_v4 = vpop.f32.mrf.mxu1  ;;  %3259 = vadd.xlane.f32.xlu1 %v3258_v55 }
 0x8e1   : > { %v6967_v29 = vadd.f32 %v5261_v56, %v3217_v2 }
 0x8e3   : > { %v3261_v47 = vsel %vm907_vm4, %v6967_v29, 0.0 }
 0x8e4   : > { %v3221_v32 = vpop.f32.mrf.mxu1  ;;  %3262 = vadd.xlane.f32.xlu0 %v3261_v47 }
 0x8e5   : > { %v3222_v23 = vadd.f32 %v4167_v20, %v3221_v32 }
 0x8e6   : > { %v4804_v42 = vpop.f32.mrf.mxu1 }
 0x8e7   : > { %v6971_v62 = vadd.f32 %v5262_v27, %v3222_v23 }
 0x8e8   : > { %v3224_v30 = vpop.f32.mrf.mxu1 }
 0x8e9   : > { %v3225_v51 = vadd.f32 %v4167_v20, %v3224_v30  ;;  %v3264_v26 = vsel %vm907_vm4, %v6971_v62, 0.0 }
 0x8ea   : > { %v4805_v14 = vpop.f32.mrf.mxu1  ;;  %3265 = vadd.xlane.f32.xlu1 %v3264_v26 }
 0x8eb   : > { %v6975_v43 = vadd.f32 %v5263_v46, %v3225_v51 }
 0x8ec   : > { %v3229_v36 = vpop.f32.mrf.mxu1 }
 0x8ed   : > { %v3230_v7 = vadd.f32 %v4167_v20, %v3229_v36  ;;  %v3267_v38 = vsel %vm907_vm4, %v6975_v43, 0.0 }
 0x8ee   : > { %3268 = vadd.xlane.f32.xlu0 %v3267_v38  ;;  %v4808_v28 = vpop.f32.mrf.mxu1 }
 0x8ef   : > { %v6979_v13 = vadd.f32 %v5264_v63, %v3230_v7 }
 0x8f0   : > { %v3232_v49 = vpop.f32.mrf.mxu1 }
 0x8f1   : > { %v3270_v25 = vsel %vm932_vm5, %v6979_v13, 0.0 }
 0x8f2   : > { %3271 = vadd.xlane.f32.xlu1 %v3270_v25  ;;  %v4809_v58 = vpop.f32.mrf.mxu1 }
 0x936   : > { %v3248_v44 = vpop.xlane.xlu0 %3247 }
 0x937   : > { %v3273_v5 = vmul.f32 0.03125, %v3248_v44 }
 0x939   : > { %v6984_v17 = vsub.f32 %v6947_v11, %v3273_v5 }
 0x93a   : > { %v3251_v61 = vpop.xlane.xlu1 %3250 }
 0x93b   : > { %v3274_v24 = vmul.f32 0.03125, %v3251_v61  ;;  %v3291_v21 = vmul.f32 %v6984_v17, %v6984_v17 }
 0x93d   : > { %v6989_v20 = vsub.f32 %v6951_v12, %v3274_v24  ;;  %v3300_v15 = vsel %vm907_vm4, %v3291_v21, 0.0 }
 0x93e   : > { %v3254_v35 = vpop.xlane.xlu0 %3253  ;;  %3301 = vadd.xlane.f32.xlu0 %v3300_v15 }
 0x93f   : > { %v3275_v52 = vmul.f32 0.03125, %v3254_v35  ;;  %v3292_v3 = vmul.f32 %v6989_v20, %v6989_v20 }
 0x941   : > { %v6995_v39 = vsub.f32 %v6955_v31, %v3275_v52  ;;  %v3303_v16 = vsel %vm907_vm4, %v3292_v3, 0.0  ;;  %v7042_v52 = vld [vmem:[%s5580_s20] ss:$0 sm:$0xff] }
 0x942   : > { %v3257_v22 = vpop.xlane.xlu0 %3256  ;;  %3304 = vadd.xlane.f32.xlu1 %v3303_v16 }
 0x943   : > { %v3276_v34 = vmul.f32 0.03125, %v3257_v22  ;;  %v3293_v18 = vmul.f32 %v6995_v39, %v6995_v39 }
 0x945   : > { %v7001_v9 = vsub.f32 %v6959_v8, %v3276_v34  ;;  %v3306_v1 = vsel %vm907_vm4, %v3293_v18, 0.0  ;;  %v7047_v34 = vld [vmem:[%s5580_s20 + $0x1] ss:$0 sm:$0xff] }
 0x946   : > { %3307 = vadd.xlane.f32.xlu0 %v3306_v1 }
 0x947   : > { %v3294_v6 = vmul.f32 %v7001_v9, %v7001_v9 }
 0x949   : > { %v3309_v54 = vsel %vm907_vm4, %v3294_v6, 0.0 }
 0x94a   : > { %3310 = vadd.xlane.f32.xlu1 %v3309_v54 }
 0x969   : > { %v3260_v19 = vpop.xlane.xlu1 %3259 }
 0x96a   : > { %v3277_v41 = vmul.f32 0.03125, %v3260_v19 }
 0x96c   : > { %v7011_v37 = vsub.f32 %v6963_v59, %v3277_v41 }
 0x96d   : > { %v3263_v57 = vpop.xlane.xlu0 %3262 }
 0x96e   : > { %v3278_v33 = vmul.f32 0.03125, %v3263_v57  ;;  %v3295_v48 = vmul.f32 %v7011_v37, %v7011_v37 }
 0x970   : > { %v7016_v53 = vsub.f32 %v6967_v29, %v3278_v33  ;;  %v3312_v0 = vsel %vm907_vm4, %v3295_v48, 0.0 }
 0x971   : > { %3313 = vadd.xlane.f32.xlu0 %v3312_v0 }
 0x972   : > { %v3296_v50 = vmul.f32 %v7016_v53, %v7016_v53 }
 0x973   : > { %v3266_v40 = vpop.xlane.xlu1 %3265 }
 0x974   : > { %v3279_v2 = vmul.f32 0.03125, %v3266_v40  ;;  %v3315_v55 = vsel %vm907_vm4, %v3296_v50, 0.0 }
 0x975   : > { %3316 = vadd.xlane.f32.xlu1 %v3315_v55 }
 0x976   : > { %v7023_v4 = vsub.f32 %v6971_v62, %v3279_v2 }
 0x977   : > { %v3269_v56 = vpop.xlane.xlu0 %3268 }
 0x978   : > { %v3280_v47 = vmul.f32 0.03125, %v3269_v56  ;;  %v3297_v32 = vmul.f32 %v7023_v4, %v7023_v4 }
 0x97a   : > { %v7028_v23 = vsub.f32 %v6975_v43, %v3280_v47  ;;  %v3318_v42 = vsel %vm907_vm4, %v3297_v32, 0.0 }
 0x97b   : > { %3319 = vadd.xlane.f32.xlu0 %v3318_v42  ;;  %v3272_v27 = vpop.xlane.xlu1 %3271 }
 0x97c   : > { %v3281_v30 = vmul.f32 0.03125, %v3272_v27  ;;  %v3298_v51 = vmul.f32 %v7028_v23, %v7028_v23 }
 0x97e   : > { %v7034_v26 = vsub.f32 %v6979_v13, %v3281_v30  ;;  %v3321_v14 = vsel %vm907_vm4, %v3298_v51, 0.0 }
 0x97f   : > { %3322 = vadd.xlane.f32.xlu1 %v3321_v14 }
 0x980   : > { %v3299_v46 = vmul.f32 %v7034_v26, %v7034_v26 }
 0x982   : > { %v3324_v36 = vsel %vm932_vm5, %v3299_v46, 0.0 }
 0x983   : > { %3325 = vadd.xlane.f32.xlu0 %v3324_v36 }
 0x9c7   : > { %v3302_v7 = vpop.xlane.xlu0 %3301 }
 0x9c8   : > { %v3327_v38 = vmul.f32 0.03125, %v3302_v7 }
 0x9ca   : > { %v3336_v28 = vadd.f32 1e-05, %v3327_v38 }
 0x9cb   : > { %v3305_v63 = vpop.xlane.xlu1 %3304 }
 0x9cc   : > { %5220 = vrsqrt.f32 %v3336_v28  ;;  %v3328_v49 = vmul.f32 0.03125, %v3305_v63 }
 0x9ce   : > { %v3337_v25 = vadd.f32 1e-05, %v3328_v49 }
 0x9cf   : > { %v3308_v58 = vpop.xlane.xlu0 %3307 }
 0x9d0   : > { %5222 = vrsqrt.f32 %v3337_v25  ;;  %v3329_v44 = vmul.f32 0.03125, %v3308_v58 }
 0x9d2   : > { %v3338_v5 = vadd.f32 1e-05, %v3329_v44 }
 0x9d3   : > { %v3311_v61 = vpop.xlane.xlu1 %3310 }
 0x9d4   : > { %5224 = vrsqrt.f32 %v3338_v5  ;;  %v3330_v24 = vmul.f32 0.03125, %v3311_v61 }
 0x9d6   : > { %v3339_v21 = vadd.f32 1e-05, %v3330_v24 }
 0x9d8   : > { %5226 = vrsqrt.f32 %v3339_v21 }
 0x9d9   : > { %v5221_v15 = vpop.eup %5220 }
 0x9da   : > { %v3354_v35 = vmul.f32 %v5221_v15, %v6984_v17 }
 0x9dc   : > { %v3367_v16 = vmul.f32 %v7042_v52, %v3354_v35 }
 0x9dd   : > { %v5223_v3 = vpop.eup %5222 }
 0x9de   : > { %v3355_v22 = vmul.f32 %v5223_v3, %v6989_v20  ;;  %v3380_v6 = vadd.f32 %v7047_v34, %v3367_v16 }
 0x9e0   : > { %v3368_v18 = vmul.f32 %v7042_v52, %v3355_v22 }
 0x9e1   : > { %v5225_v1 = vpop.eup %5224 }
 0x9e2   : > { %v3381_v54 = vadd.f32 %v7047_v34, %v3368_v18  ;;  %v3356_v60 = vmul.f32 %v5225_v1, %v6995_v39  ;;  %v5051_v18 = vld [vmem:[%s5595_s26 + $0x30] sm:$0xff]   ;;  %v5053_v1 = vld [vmem:[%s5595_s26 + $0x20] sm:$0xff]  }
 0x9e4   : > { %v3394_v10 = vpack.c.bf16 %v3381_v54, %v3380_v6  ;;  %v3369_v41 = vmul.f32 %v7042_v52, %v3356_v60  ;;  %v5055_v6 = vld [vmem:[%s5595_s26 + $0x10] sm:$0xff]   ;;  %v5056_v54 = vld [vmem:[%s5595_s26 + $0x8] sm:$0xff]   ;;  %v5057_v60 = vld [vmem:[%s5595_s26] sm:$0xff]  }
 0x9e5   : > { %v5227_v17 = vpop.eup %5226 }
 0x9e6   : > { %4815 = vmatmul.mubr.msk.bf16.vlgmr.msra.gmra.mxu0 %vm907_vm4, %v3394_v10  ;;  %v3357_v19 = vmul.f32 %v5227_v17, %v7001_v9  ;;  %v3382_v57 = vadd.f32 %v7047_v34, %v3369_v41  ;;  %v7106_v10 = vld [vmem:[%s746_s3] ss:$0 sm:$0xff] }
 0x9e7   : > { %4818 = vmatprep.mubr.msk.bf16.mxu0 %vm5364_vm6, %v7315_v45 }
 0x9e8   : > { %v3370_v20 = vmul.f32 %v7042_v52, %v3357_v19 }
 0x9ea   : > { %v3383_v33 = vadd.f32 %v7047_v34, %v3370_v20 }
 0x9ec   : > { %v3395_v48 = vpack.c.bf16 %v3383_v33, %v3382_v57 }
 0x9ee   : > { %4819 = vmatmul.mubr.msk.bf16.gmra.mxu0 %vm907_vm4, %v3395_v48 }
 0x9ef   : > { %4822 = vmatprep.mubr.msk.bf16.mxu0 %vm5364_vm6, %v7315_v45 }
 0x9fa   : > { %v3314_v39 = vpop.xlane.xlu0 %3313 }
 0x9fb   : > { %v3331_v0 = vmul.f32 0.03125, %v3314_v39 }
 0x9fd   : > { %v3340_v9 = vadd.f32 1e-05, %v3331_v0 }
 0x9fe   : > { %v3317_v50 = vpop.xlane.xlu1 %3316 }
 0x9ff   : > { %5228 = vrsqrt.f32 %v3340_v9  ;;  %v3332_v40 = vmul.f32 0.03125, %v3317_v50 }
 0xa01   : > { %v3341_v2 = vadd.f32 1e-05, %v3332_v40 }
 0xa03   : > { %5230 = vrsqrt.f32 %v3341_v2 }
 0xa04   : > { %v3320_v55 = vpop.xlane.xlu0 %3319 }
 0xa05   : > { %v3333_v56 = vmul.f32 0.03125, %v3320_v55 }
 0xa07   : > { %v3342_v47 = vadd.f32 1e-05, %v3333_v56 }
 0xa08   : > { %v3323_v32 = vpop.xlane.xlu1 %3322 }
 0xa09   : > { %5232 = vrsqrt.f32 %v3342_v47  ;;  %v3334_v42 = vmul.f32 0.03125, %v3323_v32 }
 0xa0b   : > { %v3343_v27 = vadd.f32 1e-05, %v3334_v42 }
 0xa0c   : > { %v5229_v30 = vpop.eup %5228  ;;  %v3326_v51 = vpop.xlane.xlu0 %3325 }
 0xa0d   : > { %5234 = vrsqrt.f32 %v3343_v27  ;;  %v3335_v14 = vmul.f32 0.03125, %v3326_v51  ;;  %v3358_v46 = vmul.f32 %v5229_v30, %v7011_v37 }
 0xa0f   : > { %v3344_v36 = vadd.f32 1e-05, %v3335_v14  ;;  %v3371_v28 = vmul.f32 %v7042_v52, %v3358_v46 }
 0xa10   : > { %v5231_v7 = vpop.eup %5230 }
 0xa11   : > { %5236 = vrsqrt.f32 %v3344_v36  ;;  %v3359_v38 = vmul.f32 %v5231_v7, %v7016_v53  ;;  %v3384_v49 = vadd.f32 %v7047_v34, %v3371_v28 }
 0xa13   : > { %v3372_v63 = vmul.f32 %v7042_v52, %v3359_v38 }
 0xa15   : > { %v3385_v25 = vadd.f32 %v7047_v34, %v3372_v63 }
 0xa16   : > { %v5233_v58 = vpop.eup %5232 }
 0xa17   : > { %v3360_v44 = vmul.f32 %v5233_v58, %v7023_v4  ;;  %v3396_v5 = vpack.c.bf16 %v3385_v25, %v3384_v49 }
 0xa19   : > { %4823 = vmatmul.mubr.msk.bf16.gmra.mxu0 %vm907_vm4, %v3396_v5  ;;  %v3373_v61 = vmul.f32 %v7042_v52, %v3360_v44 }
 0xa1a   : > { %v5235_v37 = vpop.eup %5234  ;;  %4826 = vmatprep.mubr.msk.bf16.mxu0 %vm5364_vm6, %v7315_v45 }
 0xa1b   : > { %v3361_v53 = vmul.f32 %v5235_v37, %v7028_v23  ;;  %v3386_v4 = vadd.f32 %v7047_v34, %v3373_v61 }
 0xa1d   : > { %v3374_v24 = vmul.f32 %v7042_v52, %v3361_v53 }
 0xa1e   : > { %v5237_v21 = vpop.eup %5236 }
 0xa1f   : > { %v3362_v15 = vmul.f32 %v5237_v21, %v7034_v26  ;;  %v3387_v35 = vadd.f32 %v7047_v34, %v3374_v24  ;;  %v5050_v26 = vld [vmem:[%s5595_s26 + $0x38] sm:$0xff]  }
 0xa20   : > { %4835 = vmatpush3.bf16.msra.mxu1 %v5050_v26 }
 0xa21   : > { %v3397_v3 = vpack.c.bf16 %v3387_v35, %v3386_v4  ;;  %v3375_v16 = vmul.f32 %v7042_v52, %v3362_v15  ;;  %4836 = vmatprep.subr.bf16.mxu1 %v7315_v45  ;;  %v5052_v52 = vld [vmem:[%s5595_s26 + $0x28] sm:$0xff]  }
 0xa23   : > { %4827 = vmatmul.mubr.msk.bf16.gmra.mxu0 %vm907_vm4, %v3397_v3  ;;  %v3388_v23 = vadd.f32 %v7047_v34, %v3375_v16  ;;  %v5054_v34 = vld [vmem:[%s5595_s26 + $0x18] sm:$0xff]  }
 0xa24   : > { %4830 = vmatprep.mubr.msk.bf16.mxu0 %vm5364_vm6, %v7315_v45  ;;  %4837 = vmatpush3.bf16.msra.mxu1 %v5051_v18 }
 0xa25   : > { %v3398_v22 = vpack.c.bf16 %v3388_v23, %v3388_v23  ;;  %4838 = vmatprep.subr.bf16.mxu1 %v7315_v45 }
 0xa28   : > { %4839 = vmatpush3.bf16.msra.mxu1 %v5052_v52 }
 0xa29   : > { %4840 = vmatprep.subr.bf16.mxu1 %v7315_v45 }
 0xa2b   : > { %4831 = vmatmul.mubr.msk.bf16.gmra.mxu0 %vm907_vm4, %v3398_v22 }
 0xa2c   : > { %4841 = vmatpush3.bf16.msra.mxu1 %v5053_v1 }
 0xa2d   : > { %4842 = vmatprep.subr.bf16.mxu1 %v7315_v45 }
 0xa30   : > { %4843 = vmatpush3.bf16.msra.mxu1 %v5054_v34 }
 0xa31   : > { %4844 = vmatprep.subr.bf16.mxu1 %v7315_v45 }
 0xa34   : > { %4845 = vmatpush3.bf16.msra.mxu1 %v5055_v6 }
 0xa35   : > { %4846 = vmatprep.subr.bf16.mxu1 %v7315_v45 }
 0xa38   : > { %4847 = vmatpush3.bf16.msra.mxu1 %v5056_v54 }
 0xa39   : > { %4848 = vmatprep.subr.bf16.mxu1 %v7315_v45 }
 0xa3c   : > { %4849 = vmatpush3.bf16.msra.mxu1 %v5057_v60 }
 0xaa6   : > { %v3466_v17 = vpop.f32.mrf.mxu0 }
 0xaa7   : > { %v3467_v19 = vadd.f32 %v7106_v10, %v3466_v17 }
 0xaa8   : > { %v4816_v41 = vpop.f32.mrf.mxu0 }
 0xaa9   : > { %v3513_v20 = vmul.f32 0.044715, %v3467_v19  ;;  %v3504_v61 = vmul.f32 0.5, %v3467_v19 }
 0xaaa   : > { %v3469_v57 = vpop.f32.mrf.mxu0 }
 0xaab   : > { %v3522_v33 = vmul.f32 %v3513_v20, %v3467_v19  ;;  %v3470_v48 = vadd.f32 %v7106_v10, %v3469_v57 }
 0xaac   : > { %v4817_v39 = vpop.f32.mrf.mxu0 }
 0xaad   : > { %v3531_v0 = vmul.f32 %v3522_v33, %v3467_v19  ;;  %v3514_v9 = vmul.f32 0.044715, %v3470_v48  ;;  %v3505_v24 = vmul.f32 0.5, %v3470_v48 }
 0xaae   : > { %v3474_v50 = vpop.f32.mrf.mxu0 }
 0xaaf   : > { %v3540_v40 = vadd.f32 %v3531_v0, %v3467_v19  ;;  %v3523_v2 = vmul.f32 %v3514_v9, %v3470_v48  ;;  %v3475_v55 = vadd.f32 %v7106_v10, %v3474_v50 }
 0xab0   : > { %v4820_v56 = vpop.f32.mrf.mxu0 }
 0xab1   : > { %v3549_v47 = vmul.f32 0.7978846, %v3540_v40  ;;  %v3532_v32 = vmul.f32 %v3523_v2, %v3470_v48  ;;  %v3515_v42 = vmul.f32 0.044715, %v3475_v55  ;;  %v3506_v22 = vmul.f32 0.5, %v3475_v55 }
 0xab2   : > { %v3477_v27 = vpop.f32.mrf.mxu0 }
 0xab3   : > { %5238 = vtanh.f32 %v3549_v47  ;;  %v3541_v30 = vadd.f32 %v3532_v32, %v3470_v48  ;;  %v3524_v51 = vmul.f32 %v3515_v42, %v3475_v55  ;;  %v3478_v14 = vadd.f32 %v7106_v10, %v3477_v27 }
 0xab4   : > { %v4821_v46 = vpop.f32.mrf.mxu0 }
 0xab5   : > { %v3550_v36 = vmul.f32 0.7978846, %v3541_v30  ;;  %v3533_v7 = vmul.f32 %v3524_v51, %v3475_v55  ;;  %v3516_v38 = vmul.f32 0.044715, %v3478_v14  ;;  %v3507_v26 = vmul.f32 0.5, %v3478_v14 }
 0xab7   : > { %5240 = vtanh.f32 %v3550_v36  ;;  %v3525_v28 = vmul.f32 %v3516_v38, %v3478_v14  ;;  %v3542_v63 = vadd.f32 %v3533_v7, %v3475_v55 }
 0xab9   : > { %v3534_v49 = vmul.f32 %v3525_v28, %v3478_v14  ;;  %v3551_v25 = vmul.f32 0.7978846, %v3542_v63 }
 0xabb   : > { %v3543_v58 = vadd.f32 %v3534_v49, %v3478_v14  ;;  %5242 = vtanh.f32 %v3551_v25 }
 0xabd   : > { %v3552_v44 = vmul.f32 0.7978846, %v3543_v58 }
 0xabf   : > { %5244 = vtanh.f32 %v3552_v44 }
 0xac0   : > { %v5239_v5 = vpop.eup %5238 }
 0xac1   : > { %v3567_v37 = vadd.f32 1.0, %v5239_v5 }
 0xac3   : > { %v3576_v15 = vmul.f32 %v3567_v37, %v3504_v61 }
 0xac4   : > { %v5241_v53 = vpop.eup %5240 }
 0xac5   : > { %v3568_v21 = vadd.f32 1.0, %v5241_v53 }
 0xac7   : > { %v3577_v4 = vmul.f32 %v3568_v21, %v3505_v24 }
 0xac8   : > { %v5243_v35 = vpop.eup %5242 }
 0xac9   : > { %v3602_v3 = vpack.c.bf16 %v3577_v4, %v3576_v15  ;;  %v3569_v16 = vadd.f32 1.0, %v5243_v35 }
 0xacb   : > { %4851 = vmatmul.mubr.bf16.vlgmr.msra.gmra.mxu1 %v3602_v3  ;;  %v3578_v52 = vmul.f32 %v3569_v16, %v3506_v22 }
 0xacc   : > { %v5245_v23 = vpop.eup %5244  ;;  %4854 = vmatprep.mubr.msk.bf16.mxu1 %vm5364_vm6, %v7315_v45 }
 0xacd   : > { %v3570_v18 = vadd.f32 1.0, %v5245_v23 }
 0xacf   : > { %v3579_v1 = vmul.f32 %v3570_v18, %v3507_v26 }
 0xad1   : > { %v3603_v34 = vpack.c.bf16 %v3579_v1, %v3578_v52 }
 0xad3   : > { %4855 = vmatmul.mubr.bf16.gmra.mxu1 %v3603_v34 }
 0xad4   : > { %4858 = vmatprep.mubr.msk.bf16.mxu1 %vm5364_vm6, %v7315_v45 }
 0xad9   : > { %v3482_v6 = vpop.f32.mrf.mxu0 }
 0xada   : > { %v3483_v54 = vadd.f32 %v7106_v10, %v3482_v6 }
 0xadb   : > { %v4824_v60 = vpop.f32.mrf.mxu0 }
 0xadc   : > { %v3517_v17 = vmul.f32 0.044715, %v3483_v54  ;;  %v3508_v16 = vmul.f32 0.5, %v3483_v54 }
 0xadd   : > { %v3485_v19 = vpop.f32.mrf.mxu0 }
 0xade   : > { %v3526_v41 = vmul.f32 %v3517_v17, %v3483_v54  ;;  %v3486_v20 = vadd.f32 %v7106_v10, %v3485_v19 }
 0xadf   : > { %v4825_v57 = vpop.f32.mrf.mxu0 }
 0xae0   : > { %v3535_v33 = vmul.f32 %v3526_v41, %v3483_v54  ;;  %v3518_v48 = vmul.f32 0.044715, %v3486_v20 }
 0xae2   : > { %v3527_v39 = vmul.f32 %v3518_v48, %v3486_v20  ;;  %v3544_v0 = vadd.f32 %v3535_v33, %v3483_v54 }
 0xae3   : > { %v3490_v9 = vpop.f32.mrf.mxu0 }
 0xae4   : > { %v3536_v50 = vmul.f32 %v3527_v39, %v3486_v20  ;;  %v3491_v40 = vadd.f32 %v7106_v10, %v3490_v9  ;;  %v3553_v2 = vmul.f32 0.7978846, %v3544_v0  ;;  %v4185_v0 = vld [vmem:[%s754_s5] ss:$0 sm:$0xff] }
 0xae5   : > { %v4828_v55 = vpop.f32.mrf.mxu0 }
 0xae6   : > { %v3519_v56 = vmul.f32 0.044715, %v3491_v40  ;;  %v3545_v47 = vadd.f32 %v3536_v50, %v3486_v20  ;;  %5246 = vtanh.f32 %v3553_v2  ;;  %v3510_v6 = vmul.f32 0.5, %v3491_v40 }
 0xae7   : > { %v3493_v32 = vpop.f32.mrf.mxu0 }
 0xae8   : > { %v3528_v42 = vmul.f32 %v3519_v56, %v3491_v40  ;;  %v3494_v27 = vadd.f32 %v7106_v10, %v3493_v32  ;;  %v3554_v30 = vmul.f32 0.7978846, %v3545_v47 }
 0xae9   : > { %v4829_v51 = vpop.f32.mrf.mxu0 }
 0xaea   : > { %v3537_v14 = vmul.f32 %v3528_v42, %v3491_v40  ;;  %v3520_v46 = vmul.f32 0.044715, %v3494_v27  ;;  %5248 = vtanh.f32 %v3554_v30  ;;  %v3511_v60 = vmul.f32 0.5, %v3494_v27 }
 0xaeb   : > { %v3498_v36 = vpop.f32.mrf.mxu0 }
 0xaec   : > { %v3529_v7 = vmul.f32 %v3520_v46, %v3494_v27  ;;  %v3499_v38 = vadd.f32 %v7106_v10, %v3498_v36  ;;  %v3546_v28 = vadd.f32 %v3537_v14, %v3491_v40  ;;  %v3509_v10 = vmul.f32 0.5, %v3486_v20 }
 0xaed   : > { %v4832_v63 = vpop.f32.mrf.mxu0 }
 0xaee   : > { %v3538_v49 = vmul.f32 %v3529_v7, %v3494_v27  ;;  %v3521_v25 = vmul.f32 0.044715, %v3499_v38  ;;  %v3555_v58 = vmul.f32 0.7978846, %v3546_v28  ;;  %v3512_v33 = vmul.f32 0.5, %v3499_v38 }
 0xaef   : > { %v3501_v44 = vpop.f32.mrf.mxu0 }
 0xaf0   : > { %v3530_v5 = vmul.f32 %v3521_v25, %v3499_v38  ;;  %v3547_v37 = vadd.f32 %v3538_v49, %v3494_v27  ;;  %5250 = vtanh.f32 %v3555_v58 }
 0xaf1   : > { %v4833_v53 = vpop.f32.mrf.mxu0 }
 0xaf2   : > { %v3556_v61 = vmul.f32 0.7978846, %v3547_v37  ;;  %v3539_v24 = vmul.f32 %v3530_v5, %v3499_v38 }
 0xaf3   : > { %v5247_v21 = vpop.eup %5246 }
 0xaf4   : > { %5252 = vtanh.f32 %v3556_v61  ;;  %v3548_v15 = vadd.f32 %v3539_v24, %v3499_v38  ;;  %v3571_v4 = vadd.f32 1.0, %v5247_v21 }
 0xaf6   : > { %v3557_v35 = vmul.f32 0.7978846, %v3548_v15  ;;  %v3580_v22 = vmul.f32 %v3571_v4, %v3508_v16 }
 0xaf7   : > { %v5249_v3 = vpop.eup %5248 }
 0xaf8   : > { %v3572_v23 = vadd.f32 1.0, %v5249_v3  ;;  %5254 = vtanh.f32 %v3557_v35 }
 0xafa   : > { %v3581_v26 = vmul.f32 %v3572_v23, %v3509_v10 }
 0xafc   : > { %v3604_v18 = vpack.c.bf16 %v3581_v26, %v3580_v22 }
 0xafd   : > { %v5251_v52 = vpop.eup %5250 }
 0xafe   : > { %4859 = vmatmul.mubr.bf16.gmra.mxu1 %v3604_v18  ;;  %v3573_v1 = vadd.f32 1.0, %v5251_v52 }
 0xaff   : > { %4862 = vmatprep.mubr.msk.bf16.mxu1 %vm5364_vm6, %v7315_v45 }
 0xb00   : > { %v3582_v19 = vmul.f32 %v3573_v1, %v3510_v6 }
 0xb01   : > { %v5253_v34 = vpop.eup %5252 }
 0xb02   : > { %v3574_v17 = vadd.f32 1.0, %v5253_v34 }
 0xb04   : > { %v3583_v41 = vmul.f32 %v3574_v17, %v3511_v60 }
 0xb05   : > { %v5255_v54 = vpop.eup %5254 }
 0xb06   : > { %v3605_v20 = vpack.c.bf16 %v3583_v41, %v3582_v19  ;;  %v3575_v57 = vadd.f32 1.0, %v5255_v54 }
 0xb08   : > { %4863 = vmatmul.mubr.bf16.gmra.mxu1 %v3605_v20  ;;  %v3584_v48 = vmul.f32 %v3575_v57, %v3512_v33 }
 0xb09   : > { %4866 = vmatprep.mubr.msk.bf16.mxu1 %vm5364_vm6, %v7315_v45 }
 0xb0a   : > { %v3606_v39 = vpack.c.bf16 %v3584_v48, %v3584_v48 }
 0xb10   : > { %4867 = vmatmul.mubr.bf16.gmra.mxu1 %v3606_v39 }
 0xb8b   : > { %v3695_v9 = vpop.f32.mrf.mxu1 }
 0xb8c   : > { %v3696_v50 = vadd.f32 %v4185_v0, %v3695_v9 }
 0xb8d   : > { %v4852_v40 = vpop.f32.mrf.mxu1 }
 0xb8e   : > { %v3733_v2 = vadd.f32 %v3696_v50, %v6947_v11 }
 0xb8f   : > { %v3698_v55 = vpop.f32.mrf.mxu1 }
 0xb90   : > { %3742 = vst.msk [vmem:[#allocation2] sm:$0xff] %vm907_vm4, %v3733_v2  ;;  %v3699_v56 = vadd.f32 %v4185_v0, %v3698_v55 }
 0xb91   : > { %v4853_v47 = vpop.f32.mrf.mxu1 }
 0xb92   : > { %v3734_v45 = vadd.f32 %v3699_v56, %v6951_v12 }
 0xb93   : > { %v3703_v32 = vpop.f32.mrf.mxu1 }
 0xb94   : > { %3743 = vst.msk [vmem:[#allocation2 + $0x8] sm:$0xff] %vm907_vm4, %v3734_v45  ;;  %v3704_v42 = vadd.f32 %v4185_v0, %v3703_v32 }
 0xb95   : > { %v4856_v27 = vpop.f32.mrf.mxu1 }
 0xb96   : > { %v3735_v30 = vadd.f32 %v3704_v42, %v6955_v31 }
 0xb97   : > { %v3706_v51 = vpop.f32.mrf.mxu1 }
 0xb98   : > { %3744 = vst.msk [vmem:[#allocation2 + $0x10] sm:$0xff] %vm907_vm4, %v3735_v30  ;;  %v3707_v14 = vadd.f32 %v4185_v0, %v3706_v51 }
 0xb99   : > { %v4857_v46 = vpop.f32.mrf.mxu1 }
 0xb9a   : > { %v3736_v11 = vadd.f32 %v3707_v14, %v6959_v8 }
 0xb9c   : > { %3745 = vst.msk [vmem:[#allocation2 + $0x18] sm:$0xff] %vm907_vm4, %v3736_v11 }
 0xbbe   : > { %v3711_v36 = vpop.f32.mrf.mxu1 }
 0xbbf   : > { %v3712_v7 = vadd.f32 %v4185_v0, %v3711_v36 }
 0xbc0   : > { %v4860_v38 = vpop.f32.mrf.mxu1 }
 0xbc1   : > { %v3737_v12 = vadd.f32 %v3712_v7, %v6963_v59 }
 0xbc2   : > { %v3714_v28 = vpop.f32.mrf.mxu1 }
 0xbc3   : > { %3746 = vst.msk [vmem:[#allocation2 + $0x20] sm:$0xff] %vm907_vm4, %v3737_v12  ;;  %v3715_v63 = vadd.f32 %v4185_v0, %v3714_v28 }
 0xbc4   : > { %v4861_v49 = vpop.f32.mrf.mxu1 }
 0xbc5   : > { %v3738_v31 = vadd.f32 %v3715_v63, %v6967_v29 }
 0xbc7   : > { %3747 = vst.msk [vmem:[#allocation2 + $0x28] sm:$0xff] %vm907_vm4, %v3738_v31 }
 0xbc8   : > { %v3719_v25 = vpop.f32.mrf.mxu1 }
 0xbc9   : > { %v3720_v58 = vadd.f32 %v4185_v0, %v3719_v25 }
 0xbca   : > { %v4864_v44 = vpop.f32.mrf.mxu1 }
 0xbcb   : > { %v3739_v8 = vadd.f32 %v3720_v58, %v6971_v62 }
 0xbcc   : > { %v3722_v5 = vpop.f32.mrf.mxu1 }
 0xbcd   : > { %3748 = vst.msk [vmem:[#allocation2 + $0x30] sm:$0xff] %vm907_vm4, %v3739_v8  ;;  %v3723_v37 = vadd.f32 %v4185_v0, %v3722_v5 }
 0xbce   : > { %v4865_v53 = vpop.f32.mrf.mxu1 }
 0xbcf   : > { %v3740_v59 = vadd.f32 %v3723_v37, %v6975_v43 }
 0xbd0   : > { %v3727_v61 = vpop.f32.mrf.mxu1 }
 0xbd1   : > { %3749 = vst.msk [vmem:[#allocation2 + $0x38] sm:$0xff] %vm907_vm4, %v3740_v59  ;;  %v3728_v24 = vadd.f32 %v4185_v0, %v3727_v61 }
 0xbd2   : > { %v4868_v21 = vpop.f32.mrf.mxu1  ;;  %3754 = sbr.rel (%p4194_p1) target bundleno = 3540 (0xdd4), region = 100 }
 0xbd3   : > { %v3741_v29 = vadd.f32 %v3728_v24, %v6979_v13 }
 0xbd4   : > { %v3730_v15 = vpop.f32.mrf.mxu1 }
 0xbd5   : > { %3750 = vst.msk [vmem:[#allocation2 + $0x40] sm:$0x1] %vm932_vm5, %v3741_v29 }
 0xbd6   : > { %v4869_v4 = vpop.f32.mrf.mxu1 }
 0xbd7   : > { %v3757_v62 = vsel %vm932_vm5, %v3741_v29, 0.0  ;;  %v5265_v13 = vld [vmem:[%s7335_s8 + $0x8] sm:$0xff]   ;;  %v5373_v23 = vmov 0.0   ;;  %vm5374_vm13 = vmmov 0   ;;  %v5266_v22 = vld [vmem:[%s7335_s8] sm:$0xff]  }
 0xbd8   : > { %3758 = vadd.xlane.f32.xlu0 %v3757_v62  ;;  %4870 = vmatprep.subr.bf16.mxu0 %v5373_v23  ;;  %v3755_v34 = vld [vmem:[%s7336_s16] sm:$0x1]  ;;  %v3756_v60 = vld [vmem:[%s7336_s16 + $0x1] sm:$0x1] }
 0xbd9   : > { %4874 = vmatprep.mubr.msk.bf16.mxu0 %vm5374_vm13, %v5373_v23  ;;  %4871 = vmatpush3.bf16.msra.mxu0 %v5265_v13  ;;  %v3776_v54 = vld [vmem:[%s7337_s0] sm:$0x1] }
 0xbda   : > { %4872 = vmatprep.subr.bf16.mxu0 %v5373_v23 }
 0xbdd   : > { %4873 = vmatpush3.bf16.msra.mxu0 %v5266_v22 }
 0xc61   : > { %v3759_v35 = vpop.xlane.xlu0 %3758 }
 0xc62   : > { %v3760_v3 = vmul.f32 0.03125, %v3759_v35 }
 0xc64   : > { %v3761_v43 = vsub.f32 %v3741_v29, %v3760_v3 }
 0xc66   : > { %v3762_v16 = vmul.f32 %v3761_v43, %v3761_v43 }
 0xc68   : > { %v3763_v10 = vsel %vm932_vm5, %v3762_v16, 0.0 }
 0xc69   : > { %3764 = vadd.xlane.f32.xlu0 %v3763_v10 }
 0xcf2   : > { %v3765_v26 = vpop.xlane.xlu0 %3764 }
 0xcf3   : > { %v3766_v18 = vmul.f32 0.03125, %v3765_v26 }
 0xcf5   : > { %v3767_v52 = vadd.f32 1e-05, %v3766_v18 }
 0xcf7   : > { %5267 = vrsqrt.f32 %v3767_v52 }
 0xd04   : > { %v5268_v1 = vpop.eup %5267 }
 0xd05   : > { %v3769_v6 = vmul.f32 %v5268_v1, %v3761_v43 }
 0xd07   : > { %v3770_v17 = vmul.f32 %v3769_v6, %v3755_v34 }
 0xd09   : > { %v3771_v19 = vadd.f32 %v3770_v17, %v3756_v60 }
 0xd0b   : > { %v3777_v41 = vpack.c.bf16 %v3771_v19, %v3771_v19 }
 0xd0d   : > { %4875 = vmatmul.mubr.msk.bf16.vlgmr.msra.gmra.mxu0 %vm907_vm4, %v3777_v41 }
 0xdcd   : > { %v3827_v20 = vpop.f32.mrf.mxu0 }
 0xdce   : > { %v3828_v57 = vadd.f32 %v3827_v20, %v3776_v54 }
 0xdcf   : > { %v4876_v33 = vpop.f32.mrf.mxu0 }
 0xdd0   : > { %3833 = vst [vmem:[%s5603_s25] sm:$0x1] %v3828_v57 }
 0xdd1   : > { %v3830_v48 = vpop.f32.mrf.mxu0 }
 0xdd3   : > { %v4877_v39 = vpop.f32.mrf.mxu0 }
 0xdd4 PF: > { %s7338_s1 = sld [smem:[#allocation8_spill]]  ;;  %s3847_s27 = sshll.u32 %s5603_s25, 4  ;;  %s3848_s27 = int_to_ptr.vmem [resolvable:$true] %s3847_s27 }
 0xdd5   : > { %s7340_s3 = sld [smem:[#allocation46_spill]]  ;;  %s7341_s5 = sand.u32 1, %s5337_s28  }
 0xdd6   : > { %s3835_s30 = scalar_lea.sflag [#allocation4], %s7341_s5  ;;  %s5269_s19 = scalar_lea.vmem %s3848_s27, 16 }
 0xdd7   : > { %p5270_p2 = scmp.ne.s32.totalorder %s3848_s27, %s5269_s19  ;;  %s5375_s29 = smov [#allocation3]  }
 0xdd8   : > { %s5273_s15 = sshll.u32 %s5375_s29, 4  ;;  %s5274_s15 = int_to_ptr.vmem [resolvable:$false] %s5273_s15 }
 0xdd9   : > { %p5271_p4 = pnand %p5270_p2, %p5520_p3  ;;  %s5275_s2 = scalar_lea.vmem %s5274_s15, 32 }
 0xdda   : > { %s4198_s24 = sshll.u32 %s7338_s1, 4  ;;  %p5276_p6 = scmp.lt.s32.totalorder %s3848_s27, %s5274_s15 }
 0xddb   : > { %s3845_s26 = scalar_lea.hbm %s7340_s3, %s4198_s24  ;;  %p5272_p5 = pneg %p5271_p4 }
 0xddc   : > { %p5277_p7 = scmp.lt.s32.totalorder %s5275_s2, %s5269_s19 }
 0xdde   : > { %p5278_p8 = por %p5277_p7, %p5276_p6 }
 0xde0   : > { %p5279_p10 = pnand %p5278_p8, %p5272_p5 }
 0xde2   : > { %5282 = shalt.err (!%p5279_p10)
}
 0xde3   : > { %s5283_s23 = scalar_lea.hbm %s3845_s26, 16  ;;  %s5287_s18 = scalar_lea.hbm %s7340_s3, 32 }
 0xde4   : > { %p5284_p11 = scmp.ne.s32.totalorder %s3845_s26, %s5283_s23  ;;  %p5288_p0 = scmp.lt.s32.totalorder %s3845_s26, %s7340_s3 }
 0xde5   : > { %p5289_p1 = scmp.lt.s32.totalorder %s5287_s18, %s5283_s23 }
 0xde6   : > { %p5285_p12 = pnand %p5284_p11, %p5520_p3 }
 0xde7   : > { %p5290_p2 = por %p5289_p1, %p5288_p0 }
 0xde8   : > { %p5286_p13 = pneg %p5285_p12 }
 0xdea   : > { %p5291_p4 = pnand %p5290_p2, %p5286_p13 }
 0xdec   : > { %5294 = shalt.err (!%p5291_p4)
}
 0xded   : > { %4900 = dma.vmem_to_hbm [thread:$0]  (%p5520_p3), %s3848_s27, 16, %s3845_s26, %s3835_s30  }
 0xdee PF: > { %s7342_s24 = sld [smem:[#allocation11_spill]] }
 0xdef   : > { %s7343_s6 = sld [smem:[#allocation6_spill]] }
 0xdf4   : > { %p4906_p5 = scmp.ge.s32.totalorder %s7342_s24, 2 }
 0xdf5   : > { %s3859_s5 = sand.u32 1, %s7343_s6  }
 0xdf6   : > { %p4903_p6 = pnand %p4906_p5, %p5530_p9  ;;  %s3860_s19 = scalar_lea.sflag [#allocation4], %s3859_s5 }
 0xdf8   : > { %p4904_p7 = pneg %p4903_p6 }
 0xdfa   : > { %5328 = dma.done.wait (%p4904_p7), %s3860_s19, 16  }
 0xdfb   : > { %5330 = vsyncadd (%p4904_p7), %s3860_s19, 4294967280  ;;  %s31_s20 = sadd.s32 1, %s7342_s24   ;;  %s7345_s29 = sld [smem:[#allocation7_spill]] }
 0xdfc   : > { %p28_p8 = scmp.ge.s32.totalorder %s31_s20, 6   ;;  %s7346_s15 = sld [smem:[#allocation16_spill]] }
 0xdfd   : > { %s7347_s30 = sld [smem:[#allocation9_spill]]  ;;  %s7351_s27 = smov %s5337_s28 }
 0xdfe   : > { %s7348_s0 = sld [smem:[#allocation10_spill]]  ;;  %30 = sbr.rel (!%p28_p8) target bundleno = 17 (0x11), region = 165 }
 0xdff   : > { %s7349_s19 = sld [smem:[#allocation12_spill]] }
 0xe00   : > { %s7350_s1 = sld [smem:[#allocation14_spill]] }
 0xe01   : > { %s7352_s28 = smov %s7345_s29 }
 0xe02   : > { %s7353_s29 = smov %s7346_s15 }
 0xe03   :  { %3864 = vsyncpa [#allocation4], 1 }
 0xe04   :  { %3866 = vsyncpa [#allocation4 + $0x1], 1 }

</bundles_post_ra>
